<compile_context>
chip_gen: v6e
topology: v6e:2x2x1
jax: 0.10.0
libtpu: 0.0.40
codegen_flags: <defaults>
</compile_context>

<pallas_src>
import functools

import jax
import jax.numpy as jnp
from jax import lax
from jax.experimental import pallas as pl
from jax.experimental.pallas import tpu as pltpu

_MXU_DTYPE = jnp.bfloat16   # matmul operand dtype (accumulation stays f32)
_LANE = 128
_SUBLANE_BF16 = 16          # bf16 packs 16 sublanes per vreg


def _round_up(x, m):
    return ((x + m - 1) // m) * m


# ----------------------------- Pallas kernels ------------------------------

def _matmul_bias_kernel(x_ref, w_ref, b_ref, o_ref):
    """One (M, K) x (K, tn) tile of X @ W + b.  X may be f32 or bf16; it is
    cast to the MXU operand dtype here.  Accumulation is f32."""
    o_ref[...] = (
        jnp.dot(x_ref[...].astype(_MXU_DTYPE), w_ref[...],
                preferred_element_type=jnp.float32)
        + b_ref[...]
    )


def _matmul_bias(x, w, b, *, tn=_LANE):
    """X @ W + b with the output (N) dimension tiled on a 'parallel' grid axis
    (megacore-sharded).  K is small here (E_pad / H_pad = 128) so it is not
    tiled.  Used for the batched gi precompute and the output projection."""
    M, K = x.shape
    N = w.shape[1]
    # TODO(synk): for realistic H/V tile K and M as well and set
    # vmem_limit_bytes; constant-index blocks (x here) could be single-buffered
    # via pipeline_mode=pl.Buffered(1) to halve their VMEM residency.
    return pl.pallas_call(
        _matmul_bias_kernel,
        out_shape=jax.ShapeDtypeStruct((M, N), jnp.float32),
        grid=(N // tn,),
        in_specs=[
            pl.BlockSpec((M, K), lambda j: (0, 0)),
            pl.BlockSpec((K, tn), lambda j: (0, j)),
            pl.BlockSpec((1, tn), lambda j: (0, j)),
        ],
        out_specs=pl.BlockSpec((M, tn), lambda j: (0, j)),
        compiler_params=pltpu.CompilerParams(
            dimension_semantics=("parallel",)),
    )(x, w, b)


def _gru_step_precomp(gi, h, whh_ref, bhn_ref):
    """One GRU cell update given the PRECOMPUTED input gates gi = x@W_ih + b
    (gate order r, z, n — identical to torch.nn.GRU).  Only h @ W_hh remains
    on the serial path.  gi/h are f32; W_hh is bf16 (MXU), math is f32."""
    H = h.shape[-1]
    gh = jnp.dot(h.astype(_MXU_DTYPE), whh_ref[...],
                 preferred_element_type=jnp.float32)
    r = jax.nn.sigmoid(gi[:, :H] + gh[:, :H])
    z = jax.nn.sigmoid(gi[:, H:2 * H] + gh[:, H:2 * H])
    n = jnp.tanh(gi[:, 2 * H:] + r * (gh[:, 2 * H:] + bhn_ref[...]))
    # TODO(synk): at realistic H (>=512) compute the r/z/n slices strip-wise to
    # keep live vregs bounded instead of materializing full gi/gh at once.
    return (1.0 - z) * n + z * h


def _recurrent_kernel(gi_enc_ref, gi_dec_ref, whh_e_ref, whh_d_ref,
                      bhn_e_ref, bhn_d_ref, hid_ref):
    """Fused encoder + decoder GRU recurrence in a single Pallas invocation.
    All per-step input gates are precomputed and VMEM-resident; the hidden
    state is carried in vregs through unrolled fori_loops.  Decoder hidden
    states are written per step; the logits projection happens outside."""
    L = gi_enc_ref.shape[0]
    T = gi_dec_ref.shape[0]
    B_pad = gi_enc_ref.shape[1]
    H_pad = whh_e_ref.shape[0]

    h0 = jnp.zeros((B_pad, H_pad), jnp.float32)

    def enc_step(t, h):
        return _gru_step_precomp(gi_enc_ref[t], h, whh_e_ref, bhn_e_ref)

    h = lax.fori_loop(0, L, enc_step, h0, unroll=True)

    def dec_step(t, h):
        h_new = _gru_step_precomp(gi_dec_ref[t], h, whh_d_ref, bhn_d_ref)
        hid_ref[t] = h_new
        return h_new

    lax.fori_loop(0, T, dec_step, h, unroll=True)
    # TODO(synk): for long sequences, chunk the time axis (grid over T-chunks,
    # "arbitrary" axis, multi-step blocks) instead of holding the whole gi
    # sequences in VMEM.


def _run_recurrence(gi_enc, gi_dec, enc_p, dec_p):
    """gi_enc: (L, B_pad, 3H_pad) f32, gi_dec: (T, B_pad, 3H_pad) f32
       -> decoder hidden states (T, B_pad, H_pad) f32."""
    T, B_pad, _ = gi_dec.shape
    H_pad = enc_p["whh"].shape[0]
    # Single invocation (no grid): every operand is a whole-array VMEM block,
    # so the GRU weights are DMA'd exactly once and there is no per-step
    # pipeline overhead.
    return pl.pallas_call(
        _recurrent_kernel,
        out_shape=jax.ShapeDtypeStruct((T, B_pad, H_pad), jnp.float32),
    )(gi_enc, gi_dec, enc_p["whh"], dec_p["whh"], enc_p["b_hn"], dec_p["b_hn"])


# ----------------------------- parameter setup -----------------------------

def init_params(key, src_vocab, tgt_vocab, emb_dim, hid_dim):
    """PyTorch-equivalent parameters at their logical sizes.  GRU weights are
    stored transposed vs. torch: (in_features, 3*hidden), gate order r, z, n."""
    ks = jax.random.split(key, 12)
    s_h = 1.0 / jnp.sqrt(hid_dim)
    u = lambda k, shape: jax.random.uniform(k, shape, jnp.float32, -s_h, s_h)
    return dict(
        enc_emb=jax.random.normal(ks[0], (src_vocab, emb_dim), jnp.float32) * 0.1,
        enc_wih=u(ks[1], (emb_dim, 3 * hid_dim)),
        enc_whh=u(ks[2], (hid_dim, 3 * hid_dim)),
        enc_bih=u(ks[3], (1, 3 * hid_dim)),
        enc_bhh=u(ks[4], (1, 3 * hid_dim)),
        dec_emb=jax.random.normal(ks[5], (tgt_vocab, emb_dim), jnp.float32) * 0.1,
        dec_wih=u(ks[6], (emb_dim, 3 * hid_dim)),
        dec_whh=u(ks[7], (hid_dim, 3 * hid_dim)),
        dec_bih=u(ks[8], (1, 3 * hid_dim)),
        dec_bhh=u(ks[9], (1, 3 * hid_dim)),
        dec_wout=u(ks[10], (hid_dim, tgt_vocab)),
        dec_bout=u(ks[11], (1, tgt_vocab)),
    )


def prepare_params(params, emb_dim, hid_dim, out_dim):
    """Pad to TPU-friendly shapes and pre-pack:
      * each gate block padded to H_pad (multiple of 128)  -> lane-aligned slices
      * E / V padded to multiples of 128                   -> lane-dense tiles
      * matmul weights & embedding tables cast to bf16; biases stay f32
      * r/z hidden biases folded into the input bias (b_hn kept separate)
    Zero padding is exact: padded hidden/logit lanes stay identically zero."""
    E_pad = _round_up(emb_dim, _LANE)
    H_pad = _round_up(hid_dim, _LANE)
    V_pad = _round_up(out_dim, _LANE)
    H = hid_dim

    def pad2(x, rows, cols):
        return jnp.pad(x, ((0, rows - x.shape[0]), (0, cols - x.shape[1])))

    def pad_gates(x, rows):          # (rows_in, 3H) -> (rows, 3*H_pad)
        return jnp.concatenate(
            [pad2(x[:, g * H:(g + 1) * H], rows, H_pad) for g in range(3)],
            axis=1)

    def pack_gru(wih, whh, bih, bhh, in_dim):
        in_pad = _round_up(in_dim, _LANE)
        bhh_r, bhh_z, bhh_n = bhh[:, :H], bhh[:, H:2 * H], bhh[:, 2 * H:]
        b_gates = bih + jnp.concatenate(
            [bhh_r, bhh_z, jnp.zeros_like(bhh_n)], axis=1)
        return dict(
            wih=pad_gates(wih, in_pad).astype(_MXU_DTYPE),
            whh=pad_gates(whh, H_pad).astype(_MXU_DTYPE),
            b_gates=pad_gates(b_gates, 1),              # f32 (1, 3*H_pad)
            b_hn=pad2(bhh_n, 1, H_pad),                 # f32 (1, H_pad)
        )

    return dict(
        enc_emb=pad2(params["enc_emb"], params["enc_emb"].shape[0],
                     E_pad).astype(_MXU_DTYPE),
        dec_emb=pad2(params["dec_emb"], params["dec_emb"].shape[0],
                     E_pad).astype(_MXU_DTYPE),
        enc=pack_gru(params["enc_wih"], params["enc_whh"],
                     params["enc_bih"], params["enc_bhh"], emb_dim),
        dec=pack_gru(params["dec_wih"], params["dec_whh"],
                     params["dec_bih"], params["dec_bhh"], emb_dim),
        wout=pad2(params["dec_wout"], H_pad, V_pad).astype(_MXU_DTYPE),
        bout=pad2(params["dec_bout"], 1, V_pad),
    )


# ------------------------------ Seq2Seq forward ----------------------------

@functools.partial(jax.jit, static_argnames=("out_dim", "teacher_forcing_ratio"))
def seq2seq_forward(prep, src, tgt, *, out_dim, teacher_forcing_ratio=1.0):
    """src: (B, src_len) int32, tgt: (B, tgt_len) int32 -> (B, tgt_len, out_dim).

    Matches PyTorch Seq2Seq.forward: outputs[:, 0] stays zero; outputs[:, t]
    holds the decoder logits produced from input tgt[:, t-1] (teacher forcing)."""
    if teacher_forcing_ratio < 1.0:
        # TODO(synk): scheduled sampling (ratio < 1.0) and the inference()
        # method need per-step argmax feedback into the embedding; that path
        # (in-kernel argmax + data-dependent token gather) is not implemented.
        raise NotImplementedError("only teacher_forcing_ratio=1.0 is supported")

    B, src_len = src.shape
    tgt_len = tgt.shape[1]
    T_dec = tgt_len - 1
    B_pad = _round_up(max(B, _SUBLANE_BF16), _SUBLANE_BF16)

    E_pad = prep["enc_emb"].shape[1]
    H_pad = prep["enc"]["whh"].shape[0]

    def embed_seq(table, tokens):            # (B, T) -> (T*B_pad, E_pad) bf16
        x = jnp.take(table, tokens, axis=0)  # single gather for the sequence
        x = jnp.transpose(x, (1, 0, 2))      # (T, B, E_pad)
        x = jnp.pad(x, ((0, 0), (0, B_pad - B), (0, 0)))
        return x.reshape(-1, E_pad)

    # ---- Batched input-gate precompute (off the recurrent critical path) ----
    gi_enc = _matmul_bias(embed_seq(prep["enc_emb"], src),
                          prep["enc"]["wih"], prep["enc"]["b_gates"])
    gi_dec = _matmul_bias(embed_seq(prep["dec_emb"], tgt[:, :T_dec]),
                          prep["dec"]["wih"], prep["dec"]["b_gates"])
    gi_enc = gi_enc.reshape(src_len, B_pad, -1)
    gi_dec = gi_dec.reshape(T_dec, B_pad, -1)

    # ---- Fused encoder + decoder recurrence (single Pallas invocation) ------
    hid = _run_recurrence(gi_enc, gi_dec, prep["enc"], prep["dec"])

    # ---- Batched, V-tiled output projection (off the serial path) -----------
    logits = _matmul_bias(hid.reshape(T_dec * B_pad, H_pad),
                          prep["wout"], prep["bout"])
    logits = logits.reshape(T_dec, B_pad, -1)[:, :B, :out_dim]
    logits = jnp.transpose(logits, (1, 0, 2))               # (B, T-1, V)
    return jnp.concatenate(
        [jnp.zeros((B, 1, out_dim), jnp.float32), logits], axis=1)


# --------------------------- pure-JAX reference -----------------------------

def _reference_forward(params, src, tgt, hid_dim, out_dim):
    """Pure-JAX f32 reference with exact torch.nn.GRU semantics (validation)."""
    B, src_len = src.shape
    tgt_len = tgt.shape[1]
    H = hid_dim

    def cell(x, h, wih, whh, bih, bhh):
        gi = x @ wih + bih
        gh = h @ whh + bhh
        r = jax.nn.sigmoid(gi[:, :H] + gh[:, :H])
        z = jax.nn.sigmoid(gi[:, H:2 * H] + gh[:, H:2 * H])
        n = jnp.tanh(gi[:, 2 * H:] + r * gh[:, 2 * H:])
        return (1.0 - z) * n + z * h

    h = jnp.zeros((B, H), jnp.float32)
    src_emb = jnp.take(params["enc_emb"], src, axis=0)
    for t in range(src_len):
        h = cell(src_emb[:, t], h, params["enc_wih"], params["enc_whh"],
                 params["enc_bih"], params["enc_bhh"])

    outputs = jnp.zeros((B, tgt_len, out_dim), jnp.float32)
    token = tgt[:, 0]
    for t in range(1, tgt_len):
        x = jnp.take(params["dec_emb"], token, axis=0)
        h = cell(x, h, params["dec_wih"], params["dec_whh"],
                 params["dec_bih"], params["dec_bhh"])
        outputs = outputs.at[:, t].set(h @ params["dec_wout"] + params["dec_bout"])
        token = tgt[:, t]
    return outputs


# ---------------------------------- main ------------------------------------

if __name__ == "__main__":
    B, SRC_LEN, TGT_LEN = 2, 8, 8
    EMB, HID = 16, 32
    SRC_VOCAB = TGT_VOCAB = 24   # decoder.output_dim

    key = jax.random.PRNGKey(0)
    kp, ks, kt = jax.random.split(key, 3)
    params = init_params(kp, SRC_VOCAB, TGT_VOCAB, EMB, HID)
    prep = prepare_params(params, EMB, HID, TGT_VOCAB)

    src = jax.random.randint(ks, (B, SRC_LEN), 0, SRC_VOCAB, dtype=jnp.int32)
    tgt = jax.random.randint(kt, (B, TGT_LEN), 0, TGT_VOCAB, dtype=jnp.int32)

    out = seq2seq_forward(prep, src, tgt, out_dim=TGT_VOCAB)
    out = jax.block_until_ready(out)

    assert out.shape == (B, TGT_LEN, TGT_VOCAB)
    assert bool(jnp.all(jnp.isfinite(out)))

    # Validate against a pure-JAX f32 reference (loose tol: bf16 MXU operands).
    ref = _reference_forward(params, src, tgt, HID, TGT_VOCAB)
    assert float(jnp.max(jnp.abs(out - ref))) < 0.15

    print("KERNEL_OK")
</pallas_src>

<mosaic_0001>
module attributes {stable_mosaic.version = 11 : i64} {
  func.func @_matmul_bias_kernel(%arg0: i32, %arg1: memref<112x128xbf16, #tpu.memory_space<vmem>>, %arg2: memref<128x128xbf16, #tpu.memory_space<vmem>>, %arg3: memref<1x128xf32, #tpu.memory_space<vmem>>, %arg4: memref<112x128xf32, #tpu.memory_space<vmem>>) attributes {dimension_semantics = [#tpu.dimension_semantics<parallel>], iteration_bounds = array<i64: 3>, scalar_prefetch = 0 : i64, scratch_operands = 0 : i64, tpu.core_type = #tpu.core_type<tc>, window_params = [{pipeline_mode = #tpu.pipeline_mode<synchronous>, transform_indices = @transform_0, window_bounds = array<i64: 112, 128>}, {transform_indices = @transform_1, window_bounds = array<i64: 128, 128>}, {transform_indices = @transform_2, window_bounds = array<i64: 1, 128>}, {transform_indices = @transform_3, window_bounds = array<i64: 112, 128>}]} {
    %c0 = arith.constant 0 : index
    %c0_0 = arith.constant 0 : index
    %0 = vector.load %arg1[%c0, %c0_0] : memref<112x128xbf16, #tpu.memory_space<vmem>>, vector<112x128xbf16>
    %c0_1 = arith.constant 0 : index
    %c0_2 = arith.constant 0 : index
    %1 = vector.load %arg2[%c0_1, %c0_2] : memref<128x128xbf16, #tpu.memory_space<vmem>>, vector<128x128xbf16>
    %cst = arith.constant dense<0.000000e+00> : vector<112x128xf32>
    %2 = tpu.matmul %0, %1, %cst {dimension_numbers = #tpu.dot_dimension_numbers<[1], [0], [0], [1], [0, 0, 1, 1], [], []>} : vector<112x128xbf16>, vector<128x128xbf16>, vector<112x128xf32> -> vector<112x128xf32>
    %c0_3 = arith.constant 0 : index
    %c0_4 = arith.constant 0 : index
    %3 = vector.load %arg3[%c0_3, %c0_4] : memref<1x128xf32, #tpu.memory_space<vmem>>, vector<1x128xf32>
    %4 = vector.broadcast %3 : vector<1x128xf32> to vector<112x128xf32>
    %5 = arith.addf %2, %4 : vector<112x128xf32>
    %c0_5 = arith.constant 0 : index
    %c0_6 = arith.constant 0 : index
    %6 = vector.load %arg4[%c0_5, %c0_6] : memref<112x128xf32, #tpu.memory_space<vmem>>, vector<112x128xf32>
    tpu.vector_store %arg4[%c0_5, %c0_6], %5 {strides = array<i32>} : memref<112x128xf32, #tpu.memory_space<vmem>>, vector<112x128xf32>,
    return
  }
  func.func @transform_0(%arg0: i32) -> (i32, i32) {
    %c0_i32 = arith.constant 0 : i32
    %c0_i32_0 = arith.constant 0 : i32
    %c0_i32_1 = arith.constant 0 : i32
    return %c0_i32, %c0_i32_0 : i32, i32
  }
  func.func @transform_1(%arg0: i32) -> (i32, i32) {
    %c0_i32 = arith.constant 0 : i32
    %c0_i32_0 = arith.constant 0 : i32
    return %c0_i32, %arg0 : i32, i32
  }
  func.func @transform_2(%arg0: i32) -> (i32, i32) {
    %c0_i32 = arith.constant 0 : i32
    %c0_i32_0 = arith.constant 0 : i32
    return %c0_i32, %arg0 : i32, i32
  }
  func.func @transform_3(%arg0: i32) -> (i32, i32) {
    %c0_i32 = arith.constant 0 : i32
    %c0_i32_0 = arith.constant 0 : i32
    return %c0_i32, %arg0 : i32, i32
  }
}

module attributes {stable_mosaic.version = 11 : i64} {
  func.func @_matmul_bias_kernel(%arg0: i32, %arg1: memref<128x128xbf16, #tpu.memory_space<vmem>>, %arg2: memref<128x128xbf16, #tpu.memory_space<vmem>>, %arg3: memref<1x128xf32, #tpu.memory_space<vmem>>, %arg4: memref<128x128xf32, #tpu.memory_space<vmem>>) attributes {dimension_semantics = [#tpu.dimension_semantics<parallel>], iteration_bounds = array<i64: 3>, scalar_prefetch = 0 : i64, scratch_operands = 0 : i64, tpu.core_type = #tpu.core_type<tc>, window_params = [{pipeline_mode = #tpu.pipeline_mode<synchronous>, transform_indices = @transform_0, window_bounds = array<i64: 128, 128>}, {transform_indices = @transform_1, window_bounds = array<i64: 128, 128>}, {transform_indices = @transform_2, window_bounds = array<i64: 1, 128>}, {transform_indices = @transform_3, window_bounds = array<i64: 128, 128>}]} {
    %c0 = arith.constant 0 : index
    %c0_0 = arith.constant 0 : index
    %0 = vector.load %arg1[%c0, %c0_0] : memref<128x128xbf16, #tpu.memory_space<vmem>>, vector<128x128xbf16>
    %c0_1 = arith.constant 0 : index
    %c0_2 = arith.constant 0 : index
    %1 = vector.load %arg2[%c0_1, %c0_2] : memref<128x128xbf16, #tpu.memory_space<vmem>>, vector<128x128xbf16>
    %cst = arith.constant dense<0.000000e+00> : vector<128x128xf32>
    %2 = tpu.matmul %0, %1, %cst {dimension_numbers = #tpu.dot_dimension_numbers<[1], [0], [0], [1], [0, 0, 1, 1], [], []>} : vector<128x128xbf16>, vector<128x128xbf16>, vector<128x128xf32> -> vector<128x128xf32>
    %c0_3 = arith.constant 0 : index
    %c0_4 = arith.constant 0 : index
    %3 = vector.load %arg3[%c0_3, %c0_4] : memref<1x128xf32, #tpu.memory_space<vmem>>, vector<1x128xf32>
    %4 = vector.broadcast %3 : vector<1x128xf32> to vector<128x128xf32>
    %5 = arith.addf %2, %4 : vector<128x128xf32>
    %c0_5 = arith.constant 0 : index
    %c0_6 = arith.constant 0 : index
    %6 = vector.load %arg4[%c0_5, %c0_6] : memref<128x128xf32, #tpu.memory_space<vmem>>, vector<128x128xf32>
    tpu.vector_store %arg4[%c0_5, %c0_6], %5 {strides = array<i32>} : memref<128x128xf32, #tpu.memory_space<vmem>>, vector<128x128xf32>,
    return
  }
  func.func @transform_0(%arg0: i32) -> (i32, i32) {
    %c0_i32 = arith.constant 0 : i32
    %c0_i32_0 = arith.constant 0 : i32
    %c0_i32_1 = arith.constant 0 : i32
    return %c0_i32, %c0_i32_0 : i32, i32
  }
  func.func @transform_1(%arg0: i32) -> (i32, i32) {
    %c0_i32 = arith.constant 0 : i32
    %c0_i32_0 = arith.constant 0 : i32
    return %c0_i32, %arg0 : i32, i32
  }
  func.func @transform_2(%arg0: i32) -> (i32, i32) {
    %c0_i32 = arith.constant 0 : i32
    %c0_i32_0 = arith.constant 0 : i32
    return %c0_i32, %arg0 : i32, i32
  }
  func.func @transform_3(%arg0: i32) -> (i32, i32) {
    %c0_i32 = arith.constant 0 : i32
    %c0_i32_0 = arith.constant 0 : i32
    return %c0_i32, %arg0 : i32, i32
  }
}

module attributes {stable_mosaic.version = 11 : i64} {
  func.func @_matmul_bias_kernel(%arg0: i32, %arg1: memref<112x128xf32, #tpu.memory_space<vmem>>, %arg2: memref<128x128xbf16, #tpu.memory_space<vmem>>, %arg3: memref<1x128xf32, #tpu.memory_space<vmem>>, %arg4: memref<112x128xf32, #tpu.memory_space<vmem>>) attributes {dimension_semantics = [#tpu.dimension_semantics<parallel>], iteration_bounds = array<i64: 1>, scalar_prefetch = 0 : i64, scratch_operands = 0 : i64, tpu.core_type = #tpu.core_type<tc>, window_params = [{pipeline_mode = #tpu.pipeline_mode<synchronous>, transform_indices = @transform_0, window_bounds = array<i64: 112, 128>}, {transform_indices = @transform_1, window_bounds = array<i64: 128, 128>}, {transform_indices = @transform_2, window_bounds = array<i64: 1, 128>}, {transform_indices = @transform_3, window_bounds = array<i64: 112, 128>}]} {
    %c0 = arith.constant 0 : index
    %c0_0 = arith.constant 0 : index
    %0 = vector.load %arg1[%c0, %c0_0] : memref<112x128xf32, #tpu.memory_space<vmem>>, vector<112x128xf32>
    %1 = arith.truncf %0 : vector<112x128xf32> to vector<112x128xbf16>
    %c0_1 = arith.constant 0 : index
    %c0_2 = arith.constant 0 : index
    %2 = vector.load %arg2[%c0_1, %c0_2] : memref<128x128xbf16, #tpu.memory_space<vmem>>, vector<128x128xbf16>
    %cst = arith.constant dense<0.000000e+00> : vector<112x128xf32>
    %3 = tpu.matmul %1, %2, %cst {dimension_numbers = #tpu.dot_dimension_numbers<[1], [0], [0], [1], [0, 0, 1, 1], [], []>} : vector<112x128xbf16>, vector<128x128xbf16>, vector<112x128xf32> -> vector<112x128xf32>
    %c0_3 = arith.constant 0 : index
    %c0_4 = arith.constant 0 : index
    %4 = vector.load %arg3[%c0_3, %c0_4] : memref<1x128xf32, #tpu.memory_space<vmem>>, vector<1x128xf32>
    %5 = vector.broadcast %4 : vector<1x128xf32> to vector<112x128xf32>
    %6 = arith.addf %3, %5 : vector<112x128xf32>
    %c0_5 = arith.constant 0 : index
    %c0_6 = arith.constant 0 : index
    %7 = vector.load %arg4[%c0_5, %c0_6] : memref<112x128xf32, #tpu.memory_space<vmem>>, vector<112x128xf32>
    tpu.vector_store %arg4[%c0_5, %c0_6], %6 {strides = array<i32>} : memref<112x128xf32, #tpu.memory_space<vmem>>, vector<112x128xf32>,
    return
  }
  func.func @transform_0(%arg0: i32) -> (i32, i32) {
    %c0_i32 = arith.constant 0 : i32
    %c0_i32_0 = arith.constant 0 : i32
    %c0_i32_1 = arith.constant 0 : i32
    return %c0_i32, %c0_i32_0 : i32, i32
  }
  func.func @transform_1(%arg0: i32) -> (i32, i32) {
    %c0_i32 = arith.constant 0 : i32
    %c0_i32_0 = arith.constant 0 : i32
    return %c0_i32, %arg0 : i32, i32
  }
  func.func @transform_2(%arg0: i32) -> (i32, i32) {
    %c0_i32 = arith.constant 0 : i32
    %c0_i32_0 = arith.constant 0 : i32
    return %c0_i32, %arg0 : i32, i32
  }
  func.func @transform_3(%arg0: i32) -> (i32, i32) {
    %c0_i32 = arith.constant 0 : i32
    %c0_i32_0 = arith.constant 0 : i32
    return %c0_i32, %arg0 : i32, i32
  }
}

module attributes {stable_mosaic.version = 11 : i64} {
  func.func @_recurrent_kernel(%arg0: memref<8x16x384xf32, #tpu.memory_space<vmem>>, %arg1: memref<7x16x384xf32, #tpu.memory_space<vmem>>, %arg2: memref<128x384xbf16, #tpu.memory_space<vmem>>, %arg3: memref<128x384xbf16, #tpu.memory_space<vmem>>, %arg4: memref<1x128xf32, #tpu.memory_space<vmem>>, %arg5: memref<1x128xf32, #tpu.memory_space<vmem>>, %arg6: memref<7x16x128xf32, #tpu.memory_space<vmem>>) attributes {dimension_semantics = [], scalar_prefetch = 0 : i64, scratch_operands = 0 : i64, tpu.core_type = #tpu.core_type<tc>} {
    %cst = arith.constant 0.000000e+00 : f32
    %0 = vector.broadcast %cst : f32 to vector<16x128xf32>
    %c0_i32 = arith.constant 0 : i32
    %1 = arith.index_cast %c0_i32 : i32 to index
    %c0 = arith.constant 0 : index
    %c0_0 = arith.constant 0 : index
    %2 = vector.load %arg0[%1, %c0, %c0_0] : memref<8x16x384xf32, #tpu.memory_space<vmem>>, vector<1x16x384xf32>
    %3 = vector.shape_cast %2 : vector<1x16x384xf32> to vector<16x384xf32>
    %4 = arith.truncf %0 : vector<16x128xf32> to vector<16x128xbf16>
    %c0_1 = arith.constant 0 : index
    %c0_2 = arith.constant 0 : index
    %5 = vector.load %arg2[%c0_1, %c0_2] : memref<128x384xbf16, #tpu.memory_space<vmem>>, vector<128x384xbf16>
    %cst_3 = arith.constant dense<0.000000e+00> : vector<16x384xf32>
    %6 = tpu.matmul %4, %5, %cst_3 {dimension_numbers = #tpu.dot_dimension_numbers<[1], [0], [0], [1], [0, 0, 1, 1], [], []>} : vector<16x128xbf16>, vector<128x384xbf16>, vector<16x384xf32> -> vector<16x384xf32>
    %7 = vector.extract_strided_slice %3 {offsets = [0, 0], sizes = [16, 128], strides = [1, 1]} : vector<16x384xf32> to vector<16x128xf32>
    %8 = vector.extract_strided_slice %6 {offsets = [0, 0], sizes = [16, 128], strides = [1, 1]} : vector<16x384xf32> to vector<16x128xf32>
    %9 = arith.addf %7, %8 : vector<16x128xf32>
    %10 = arith.negf %9 : vector<16x128xf32>
    %11 = math.exp %10 : vector<16x128xf32>
    %cst_4 = arith.constant 1.000000e+00 : f32
    %12 = vector.broadcast %cst_4 : f32 to vector<16x128xf32>
    %13 = arith.addf %12, %11 : vector<16x128xf32>
    %14 = arith.divf %12, %13 : vector<16x128xf32>
    %15 = vector.extract_strided_slice %3 {offsets = [0, 128], sizes = [16, 128], strides = [1, 1]} : vector<16x384xf32> to vector<16x128xf32>
    %16 = vector.extract_strided_slice %6 {offsets = [0, 128], sizes = [16, 128], strides = [1, 1]} : vector<16x384xf32> to vector<16x128xf32>
    %17 = arith.addf %15, %16 : vector<16x128xf32>
    %18 = arith.negf %17 : vector<16x128xf32>
    %19 = math.exp %18 : vector<16x128xf32>
    %cst_5 = arith.constant 1.000000e+00 : f32
    %20 = vector.broadcast %cst_5 : f32 to vector<16x128xf32>
    %21 = arith.addf %20, %19 : vector<16x128xf32>
    %22 = arith.divf %20, %21 : vector<16x128xf32>
    %23 = vector.extract_strided_slice %3 {offsets = [0, 256], sizes = [16, 128], strides = [1, 1]} : vector<16x384xf32> to vector<16x128xf32>
    %24 = vector.extract_strided_slice %6 {offsets = [0, 256], sizes = [16, 128], strides = [1, 1]} : vector<16x384xf32> to vector<16x128xf32>
    %c0_6 = arith.constant 0 : index
    %c0_7 = arith.constant 0 : index
    %25 = vector.load %arg4[%c0_6, %c0_7] : memref<1x128xf32, #tpu.memory_space<vmem>>, vector<1x128xf32>
    %26 = vector.broadcast %25 : vector<1x128xf32> to vector<16x128xf32>
    %27 = arith.addf %24, %26 : vector<16x128xf32>
    %28 = arith.mulf %14, %27 : vector<16x128xf32>
    %29 = arith.addf %23, %28 : vector<16x128xf32>
    %30 = math.tanh %29 : vector<16x128xf32>
    %cst_8 = arith.constant 1.000000e+00 : f32
    %31 = vector.broadcast %cst_8 : f32 to vector<16x128xf32>
    %32 = arith.subf %31, %22 : vector<16x128xf32>
    %33 = arith.mulf %32, %30 : vector<16x128xf32>
    %34 = arith.mulf %22, %0 : vector<16x128xf32>
    %35 = arith.addf %33, %34 : vector<16x128xf32>
    %c1_i32 = arith.constant 1 : i32
    %36 = arith.index_cast %c1_i32 : i32 to index
    %c0_9 = arith.constant 0 : index
    %c0_10 = arith.constant 0 : index
    %37 = vector.load %arg0[%36, %c0_9, %c0_10] : memref<8x16x384xf32, #tpu.memory_space<vmem>>, vector<1x16x384xf32>
    %38 = vector.shape_cast %37 : vector<1x16x384xf32> to vector<16x384xf32>
    %39 = arith.truncf %35 : vector<16x128xf32> to vector<16x128xbf16>
    %c0_11 = arith.constant 0 : index
    %c0_12 = arith.constant 0 : index
    %40 = vector.load %arg2[%c0_11, %c0_12] : memref<128x384xbf16, #tpu.memory_space<vmem>>, vector<128x384xbf16>
    %cst_13 = arith.constant dense<0.000000e+00> : vector<16x384xf32>
    %41 = tpu.matmul %39, %40, %cst_13 {dimension_numbers = #tpu.dot_dimension_numbers<[1], [0], [0], [1], [0, 0, 1, 1], [], []>} : vector<16x128xbf16>, vector<128x384xbf16>, vector<16x384xf32> -> vector<16x384xf32>
    %42 = vector.extract_strided_slice %38 {offsets = [0, 0], sizes = [16, 128], strides = [1, 1]} : vector<16x384xf32> to vector<16x128xf32>
    %43 = vector.extract_strided_slice %41 {offsets = [0, 0], sizes = [16, 128], strides = [1, 1]} : vector<16x384xf32> to vector<16x128xf32>
    %44 = arith.addf %42, %43 : vector<16x128xf32>
    %45 = arith.negf %44 : vector<16x128xf32>
    %46 = math.exp %45 : vector<16x128xf32>
    %cst_14 = arith.constant 1.000000e+00 : f32
    %47 = vector.broadcast %cst_14 : f32 to vector<16x128xf32>
    %48 = arith.addf %47, %46 : vector<16x128xf32>
    %49 = arith.divf %47, %48 : vector<16x128xf32>
    %50 = vector.extract_strided_slice %38 {offsets = [0, 128], sizes = [16, 128], strides = [1, 1]} : vector<16x384xf32> to vector<16x128xf32>
    %51 = vector.extract_strided_slice %41 {offsets = [0, 128], sizes = [16, 128], strides = [1, 1]} : vector<16x384xf32> to vector<16x128xf32>
    %52 = arith.addf %50, %51 : vector<16x128xf32>
    %53 = arith.negf %52 : vector<16x128xf32>
    %54 = math.exp %53 : vector<16x128xf32>
    %cst_15 = arith.constant 1.000000e+00 : f32
    %55 = vector.broadcast %cst_15 : f32 to vector<16x128xf32>
    %56 = arith.addf %55, %54 : vector<16x128xf32>
    %57 = arith.divf %55, %56 : vector<16x128xf32>
    %58 = vector.extract_strided_slice %38 {offsets = [0, 256], sizes = [16, 128], strides = [1, 1]} : vector<16x384xf32> to vector<16x128xf32>
    %59 = vector.extract_strided_slice %41 {offsets = [0, 256], sizes = [16, 128], strides = [1, 1]} : vector<16x384xf32> to vector<16x128xf32>
    %c0_16 = arith.constant 0 : index
    %c0_17 = arith.constant 0 : index
    %60 = vector.load %arg4[%c0_16, %c0_17] : memref<1x128xf32, #tpu.memory_space<vmem>>, vector<1x128xf32>
    %61 = vector.broadcast %60 : vector<1x128xf32> to vector<16x128xf32>
    %62 = arith.addf %59, %61 : vector<16x128xf32>
    %63 = arith.mulf %49, %62 : vector<16x128xf32>
    %64 = arith.addf %58, %63 : vector<16x128xf32>
    %65 = math.tanh %64 : vector<16x128xf32>
    %cst_18 = arith.constant 1.000000e+00 : f32
    %66 = vector.broadcast %cst_18 : f32 to vector<16x128xf32>
    %67 = arith.subf %66, %57 : vector<16x128xf32>
    %68 = arith.mulf %67, %65 : vector<16x128xf32>
    %69 = arith.mulf %57, %35 : vector<16x128xf32>
    %70 = arith.addf %68, %69 : vector<16x128xf32>
    %c2_i32 = arith.constant 2 : i32
    %71 = arith.index_cast %c2_i32 : i32 to index
    %c0_19 = arith.constant 0 : index
    %c0_20 = arith.constant 0 : index
    %72 = vector.load %arg0[%71, %c0_19, %c0_20] : memref<8x16x384xf32, #tpu.memory_space<vmem>>, vector<1x16x384xf32>
    %73 = vector.shape_cast %72 : vector<1x16x384xf32> to vector<16x384xf32>
    %74 = arith.truncf %70 : vector<16x128xf32> to vector<16x128xbf16>
    %c0_21 = arith.constant 0 : index
    %c0_22 = arith.constant 0 : index
    %75 = vector.load %arg2[%c0_21, %c0_22] : memref<128x384xbf16, #tpu.memory_space<vmem>>, vector<128x384xbf16>
    %cst_23 = arith.constant dense<0.000000e+00> : vector<16x384xf32>
    %76 = tpu.matmul %74, %75, %cst_23 {dimension_numbers = #tpu.dot_dimension_numbers<[1], [0], [0], [1], [0, 0, 1, 1], [], []>} : vector<16x128xbf16>, vector<128x384xbf16>, vector<16x384xf32> -> vector<16x384xf32>
    %77 = vector.extract_strided_slice %73 {offsets = [0, 0], sizes = [16, 128], strides = [1, 1]} : vector<16x384xf32> to vector<16x128xf32>
    %78 = vector.extract_strided_slice %76 {offsets = [0, 0], sizes = [16, 128], strides = [1, 1]} : vector<16x384xf32> to vector<16x128xf32>
    %79 = arith.addf %77, %78 : vector<16x128xf32>
    %80 = arith.negf %79 : vector<16x128xf32>
    %81 = math.exp %80 : vector<16x128xf32>
    %cst_24 = arith.constant 1.000000e+00 : f32
    %82 = vector.broadcast %cst_24 : f32 to vector<16x128xf32>
    %83 = arith.addf %82, %81 : vector<16x128xf32>
    %84 = arith.divf %82, %83 : vector<16x128xf32>
    %85 = vector.extract_strided_slice %73 {offsets = [0, 128], sizes = [16, 128], strides = [1, 1]} : vector<16x384xf32> to vector<16x128xf32>
    %86 = vector.extract_strided_slice %76 {offsets = [0, 128], sizes = [16, 128], strides = [1, 1]} : vector<16x384xf32> to vector<16x128xf32>
    %87 = arith.addf %85, %86 : vector<16x128xf32>
    %88 = arith.negf %87 : vector<16x128xf32>
    %89 = math.exp %88 : vector<16x128xf32>
    %cst_25 = arith.constant 1.000000e+00 : f32
    %90 = vector.broadcast %cst_25 : f32 to vector<16x128xf32>
    %91 = arith.addf %90, %89 : vector<16x128xf32>
    %92 = arith.divf %90, %91 : vector<16x128xf32>
    %93 = vector.extract_strided_slice %73 {offsets = [0, 256], sizes = [16, 128], strides = [1, 1]} : vector<16x384xf32> to vector<16x128xf32>
    %94 = vector.extract_strided_slice %76 {offsets = [0, 256], sizes = [16, 128], strides = [1, 1]} : vector<16x384xf32> to vector<16x128xf32>
    %c0_26 = arith.constant 0 : index
    %c0_27 = arith.constant 0 : index
    %95 = vector.load %arg4[%c0_26, %c0_27] : memref<1x128xf32, #tpu.memory_space<vmem>>, vector<1x128xf32>
    %96 = vector.broadcast %95 : vector<1x128xf32> to vector<16x128xf32>
    %97 = arith.addf %94, %96 : vector<16x128xf32>
    %98 = arith.mulf %84, %97 : vector<16x128xf32>
    %99 = arith.addf %93, %98 : vector<16x128xf32>
    %100 = math.tanh %99 : vector<16x128xf32>
    %cst_28 = arith.constant 1.000000e+00 : f32
    %101 = vector.broadcast %cst_28 : f32 to vector<16x128xf32>
    %102 = arith.subf %101, %92 : vector<16x128xf32>
    %103 = arith.mulf %102, %100 : vector<16x128xf32>
    %104 = arith.mulf %92, %70 : vector<16x128xf32>
    %105 = arith.addf %103, %104 : vector<16x128xf32>
    %c3_i32 = arith.constant 3 : i32
    %106 = arith.index_cast %c3_i32 : i32 to index
    %c0_29 = arith.constant 0 : index
    %c0_30 = arith.constant 0 : index
    %107 = vector.load %arg0[%106, %c0_29, %c0_30] : memref<8x16x384xf32, #tpu.memory_space<vmem>>, vector<1x16x384xf32>
    %108 = vector.shape_cast %107 : vector<1x16x384xf32> to vector<16x384xf32>
    %109 = arith.truncf %105 : vector<16x128xf32> to vector<16x128xbf16>
    %c0_31 = arith.constant 0 : index
    %c0_32 = arith.constant 0 : index
    %110 = vector.load %arg2[%c0_31, %c0_32] : memref<128x384xbf16, #tpu.memory_space<vmem>>, vector<128x384xbf16>
    %cst_33 = arith.constant dense<0.000000e+00> : vector<16x384xf32>
    %111 = tpu.matmul %109, %110, %cst_33 {dimension_numbers = #tpu.dot_dimension_numbers<[1], [0], [0], [1], [0, 0, 1, 1], [], []>} : vector<16x128xbf16>, vector<128x384xbf16>, vector<16x384xf32> -> vector<16x384xf32>
    %112 = vector.extract_strided_slice %108 {offsets = [0, 0], sizes = [16, 128], strides = [1, 1]} : vector<16x384xf32> to vector<16x128xf32>
    %113 = vector.extract_strided_slice %111 {offsets = [0, 0], sizes = [16, 128], strides = [1, 1]} : vector<16x384xf32> to vector<16x128xf32>
    %114 = arith.addf %112, %113 : vector<16x128xf32>
    %115 = arith.negf %114 : vector<16x128xf32>
    %116 = math.exp %115 : vector<16x128xf32>
    %cst_34 = arith.constant 1.000000e+00 : f32
    %117 = vector.broadcast %cst_34 : f32 to vector<16x128xf32>
    %118 = arith.addf %117, %116 : vector<16x128xf32>
    %119 = arith.divf %117, %118 : vector<16x128xf32>
    %120 = vector.extract_strided_slice %108 {offsets = [0, 128], sizes = [16, 128], strides = [1, 1]} : vector<16x384xf32> to vector<16x128xf32>
    %121 = vector.extract_strided_slice %111 {offsets = [0, 128], sizes = [16, 128], strides = [1, 1]} : vector<16x384xf32> to vector<16x128xf32>
    %122 = arith.addf %120, %121 : vector<16x128xf32>
    %123 = arith.negf %122 : vector<16x128xf32>
    %124 = math.exp %123 : vector<16x128xf32>
    %cst_35 = arith.constant 1.000000e+00 : f32
    %125 = vector.broadcast %cst_35 : f32 to vector<16x128xf32>
    %126 = arith.addf %125, %124 : vector<16x128xf32>
    %127 = arith.divf %125, %126 : vector<16x128xf32>
    %128 = vector.extract_strided_slice %108 {offsets = [0, 256], sizes = [16, 128], strides = [1, 1]} : vector<16x384xf32> to vector<16x128xf32>
    %129 = vector.extract_strided_slice %111 {offsets = [0, 256], sizes = [16, 128], strides = [1, 1]} : vector<16x384xf32> to vector<16x128xf32>
    %c0_36 = arith.constant 0 : index
    %c0_37 = arith.constant 0 : index
    %130 = vector.load %arg4[%c0_36, %c0_37] : memref<1x128xf32, #tpu.memory_space<vmem>>, vector<1x128xf32>
    %131 = vector.broadcast %130 : vector<1x128xf32> to vector<16x128xf32>
    %132 = arith.addf %129, %131 : vector<16x128xf32>
    %133 = arith.mulf %119, %132 : vector<16x128xf32>
    %134 = arith.addf %128, %133 : vector<16x128xf32>
    %135 = math.tanh %134 : vector<16x128xf32>
    %cst_38 = arith.constant 1.000000e+00 : f32
    %136 = vector.broadcast %cst_38 : f32 to vector<16x128xf32>
    %137 = arith.subf %136, %127 : vector<16x128xf32>
    %138 = arith.mulf %137, %135 : vector<16x128xf32>
    %139 = arith.mulf %127, %105 : vector<16x128xf32>
    %140 = arith.addf %138, %139 : vector<16x128xf32>
    %c4_i32 = arith.constant 4 : i32
    %141 = arith.index_cast %c4_i32 : i32 to index
    %c0_39 = arith.constant 0 : index
    %c0_40 = arith.constant 0 : index
    %142 = vector.load %arg0[%141, %c0_39, %c0_40] : memref<8x16x384xf32, #tpu.memory_space<vmem>>, vector<1x16x384xf32>
    %143 = vector.shape_cast %142 : vector<1x16x384xf32> to vector<16x384xf32>
    %144 = arith.truncf %140 : vector<16x128xf32> to vector<16x128xbf16>
    %c0_41 = arith.constant 0 : index
    %c0_42 = arith.constant 0 : index
    %145 = vector.load %arg2[%c0_41, %c0_42] : memref<128x384xbf16, #tpu.memory_space<vmem>>, vector<128x384xbf16>
    %cst_43 = arith.constant dense<0.000000e+00> : vector<16x384xf32>
    %146 = tpu.matmul %144, %145, %cst_43 {dimension_numbers = #tpu.dot_dimension_numbers<[1], [0], [0], [1], [0, 0, 1, 1], [], []>} : vector<16x128xbf16>, vector<128x384xbf16>, vector<16x384xf32> -> vector<16x384xf32>
    %147 = vector.extract_strided_slice %143 {offsets = [0, 0], sizes = [16, 128], strides = [1, 1]} : vector<16x384xf32> to vector<16x128xf32>
    %148 = vector.extract_strided_slice %146 {offsets = [0, 0], sizes = [16, 128], strides = [1, 1]} : vector<16x384xf32> to vector<16x128xf32>
    %149 = arith.addf %147, %148 : vector<16x128xf32>
    %150 = arith.negf %149 : vector<16x128xf32>
    %151 = math.exp %150 : vector<16x128xf32>
    %cst_44 = arith.constant 1.000000e+00 : f32
    %152 = vector.broadcast %cst_44 : f32 to vector<16x128xf32>
    %153 = arith.addf %152, %151 : vector<16x128xf32>
    %154 = arith.divf %152, %153 : vector<16x128xf32>
    %155 = vector.extract_strided_slice %143 {offsets = [0, 128], sizes = [16, 128], strides = [1, 1]} : vector<16x384xf32> to vector<16x128xf32>
    %156 = vector.extract_strided_slice %146 {offsets = [0, 128], sizes = [16, 128], strides = [1, 1]} : vector<16x384xf32> to vector<16x128xf32>
    %157 = arith.addf %155, %156 : vector<16x128xf32>
    %158 = arith.negf %157 : vector<16x128xf32>
    %159 = math.exp %158 : vector<16x128xf32>
    %cst_45 = arith.constant 1.000000e+00 : f32
    %160 = vector.broadcast %cst_45 : f32 to vector<16x128xf32>
    %161 = arith.addf %160, %159 : vector<16x128xf32>
    %162 = arith.divf %160, %161 : vector<16x128xf32>
    %163 = vector.extract_strided_slice %143 {offsets = [0, 256], sizes = [16, 128], strides = [1, 1]} : vector<16x384xf32> to vector<16x128xf32>
    %164 = vector.extract_strided_slice %146 {offsets = [0, 256], sizes = [16, 128], strides = [1, 1]} : vector<16x384xf32> to vector<16x128xf32>
    %c0_46 = arith.constant 0 : index
    %c0_47 = arith.constant 0 : index
    %165 = vector.load %arg4[%c0_46, %c0_47] : memref<1x128xf32, #tpu.memory_space<vmem>>, vector<1x128xf32>
    %166 = vector.broadcast %165 : vector<1x128xf32> to vector<16x128xf32>
    %167 = arith.addf %164, %166 : vector<16x128xf32>
    %168 = arith.mulf %154, %167 : vector<16x128xf32>
    %169 = arith.addf %163, %168 : vector<16x128xf32>
    %170 = math.tanh %169 : vector<16x128xf32>
    %cst_48 = arith.constant 1.000000e+00 : f32
    %171 = vector.broadcast %cst_48 : f32 to vector<16x128xf32>
    %172 = arith.subf %171, %162 : vector<16x128xf32>
    %173 = arith.mulf %172, %170 : vector<16x128xf32>
    %174 = arith.mulf %162, %140 : vector<16x128xf32>
    %175 = arith.addf %173, %174 : vector<16x128xf32>
    %c5_i32 = arith.constant 5 : i32
    %176 = arith.index_cast %c5_i32 : i32 to index
    %c0_49 = arith.constant 0 : index
    %c0_50 = arith.constant 0 : index
    %177 = vector.load %arg0[%176, %c0_49, %c0_50] : memref<8x16x384xf32, #tpu.memory_space<vmem>>, vector<1x16x384xf32>
    %178 = vector.shape_cast %177 : vector<1x16x384xf32> to vector<16x384xf32>
    %179 = arith.truncf %175 : vector<16x128xf32> to vector<16x128xbf16>
    %c0_51 = arith.constant 0 : index
    %c0_52 = arith.constant 0 : index
    %180 = vector.load %arg2[%c0_51, %c0_52] : memref<128x384xbf16, #tpu.memory_space<vmem>>, vector<128x384xbf16>
    %cst_53 = arith.constant dense<0.000000e+00> : vector<16x384xf32>
    %181 = tpu.matmul %179, %180, %cst_53 {dimension_numbers = #tpu.dot_dimension_numbers<[1], [0], [0], [1], [0, 0, 1, 1], [], []>} : vector<16x128xbf16>, vector<128x384xbf16>, vector<16x384xf32> -> vector<16x384xf32>
    %182 = vector.extract_strided_slice %178 {offsets = [0, 0], sizes = [16, 128], strides = [1, 1]} : vector<16x384xf32> to vector<16x128xf32>
    %183 = vector.extract_strided_slice %181 {offsets = [0, 0], sizes = [16, 128], strides = [1, 1]} : vector<16x384xf32> to vector<16x128xf32>
    %184 = arith.addf %182, %183 : vector<16x128xf32>
    %185 = arith.negf %184 : vector<16x128xf32>
    %186 = math.exp %185 : vector<16x128xf32>
    %cst_54 = arith.constant 1.000000e+00 : f32
    %187 = vector.broadcast %cst_54 : f32 to vector<16x128xf32>
    %188 = arith.addf %187, %186 : vector<16x128xf32>
    %189 = arith.divf %187, %188 : vector<16x128xf32>
    %190 = vector.extract_strided_slice %178 {offsets = [0, 128], sizes = [16, 128], strides = [1, 1]} : vector<16x384xf32> to vector<16x128xf32>
    %191 = vector.extract_strided_slice %181 {offsets = [0, 128], sizes = [16, 128], strides = [1, 1]} : vector<16x384xf32> to vector<16x128xf32>
    %192 = arith.addf %190, %191 : vector<16x128xf32>
    %193 = arith.negf %192 : vector<16x128xf32>
    %194 = math.exp %193 : vector<16x128xf32>
    %cst_55 = arith.constant 1.000000e+00 : f32
    %195 = vector.broadcast %cst_55 : f32 to vector<16x128xf32>
    %196 = arith.addf %195, %194 : vector<16x128xf32>
    %197 = arith.divf %195, %196 : vector<16x128xf32>
    %198 = vector.extract_strided_slice %178 {offsets = [0, 256], sizes = [16, 128], strides = [1, 1]} : vector<16x384xf32> to vector<16x128xf32>
    %199 = vector.extract_strided_slice %181 {offsets = [0, 256], sizes = [16, 128], strides = [1, 1]} : vector<16x384xf32> to vector<16x128xf32>
    %c0_56 = arith.constant 0 : index
    %c0_57 = arith.constant 0 : index
    %200 = vector.load %arg4[%c0_56, %c0_57] : memref<1x128xf32, #tpu.memory_space<vmem>>, vector<1x128xf32>
    %201 = vector.broadcast %200 : vector<1x128xf32> to vector<16x128xf32>
    %202 = arith.addf %199, %201 : vector<16x128xf32>
    %203 = arith.mulf %189, %202 : vector<16x128xf32>
    %204 = arith.addf %198, %203 : vector<16x128xf32>
    %205 = math.tanh %204 : vector<16x128xf32>
    %cst_58 = arith.constant 1.000000e+00 : f32
    %206 = vector.broadcast %cst_58 : f32 to vector<16x128xf32>
    %207 = arith.subf %206, %197 : vector<16x128xf32>
    %208 = arith.mulf %207, %205 : vector<16x128xf32>
    %209 = arith.mulf %197, %175 : vector<16x128xf32>
    %210 = arith.addf %208, %209 : vector<16x128xf32>
    %c6_i32 = arith.constant 6 : i32
    %211 = arith.index_cast %c6_i32 : i32 to index
    %c0_59 = arith.constant 0 : index
    %c0_60 = arith.constant 0 : index
    %212 = vector.load %arg0[%211, %c0_59, %c0_60] : memref<8x16x384xf32, #tpu.memory_space<vmem>>, vector<1x16x384xf32>
    %213 = vector.shape_cast %212 : vector<1x16x384xf32> to vector<16x384xf32>
    %214 = arith.truncf %210 : vector<16x128xf32> to vector<16x128xbf16>
    %c0_61 = arith.constant 0 : index
    %c0_62 = arith.constant 0 : index
    %215 = vector.load %arg2[%c0_61, %c0_62] : memref<128x384xbf16, #tpu.memory_space<vmem>>, vector<128x384xbf16>
    %cst_63 = arith.constant dense<0.000000e+00> : vector<16x384xf32>
    %216 = tpu.matmul %214, %215, %cst_63 {dimension_numbers = #tpu.dot_dimension_numbers<[1], [0], [0], [1], [0, 0, 1, 1], [], []>} : vector<16x128xbf16>, vector<128x384xbf16>, vector<16x384xf32> -> vector<16x384xf32>
    %217 = vector.extract_strided_slice %213 {offsets = [0, 0], sizes = [16, 128], strides = [1, 1]} : vector<16x384xf32> to vector<16x128xf32>
    %218 = vector.extract_strided_slice %216 {offsets = [0, 0], sizes = [16, 128], strides = [1, 1]} : vector<16x384xf32> to vector<16x128xf32>
    %219 = arith.addf %217, %218 : vector<16x128xf32>
    %220 = arith.negf %219 : vector<16x128xf32>
    %221 = math.exp %220 : vector<16x128xf32>
    %cst_64 = arith.constant 1.000000e+00 : f32
    %222 = vector.broadcast %cst_64 : f32 to vector<16x128xf32>
    %223 = arith.addf %222, %221 : vector<16x128xf32>
    %224 = arith.divf %222, %223 : vector<16x128xf32>
    %225 = vector.extract_strided_slice %213 {offsets = [0, 128], sizes = [16, 128], strides = [1, 1]} : vector<16x384xf32> to vector<16x128xf32>
    %226 = vector.extract_strided_slice %216 {offsets = [0, 128], sizes = [16, 128], strides = [1, 1]} : vector<16x384xf32> to vector<16x128xf32>
    %227 = arith.addf %225, %226 : vector<16x128xf32>
    %228 = arith.negf %227 : vector<16x128xf32>
    %229 = math.exp %228 : vector<16x128xf32>
    %cst_65 = arith.constant 1.000000e+00 : f32
    %230 = vector.broadcast %cst_65 : f32 to vector<16x128xf32>
    %231 = arith.addf %230, %229 : vector<16x128xf32>
    %232 = arith.divf %230, %231 : vector<16x128xf32>
    %233 = vector.extract_strided_slice %213 {offsets = [0, 256], sizes = [16, 128], strides = [1, 1]} : vector<16x384xf32> to vector<16x128xf32>
    %234 = vector.extract_strided_slice %216 {offsets = [0, 256], sizes = [16, 128], strides = [1, 1]} : vector<16x384xf32> to vector<16x128xf32>
    %c0_66 = arith.constant 0 : index
    %c0_67 = arith.constant 0 : index
    %235 = vector.load %arg4[%c0_66, %c0_67] : memref<1x128xf32, #tpu.memory_space<vmem>>, vector<1x128xf32>
    %236 = vector.broadcast %235 : vector<1x128xf32> to vector<16x128xf32>
    %237 = arith.addf %234, %236 : vector<16x128xf32>
    %238 = arith.mulf %224, %237 : vector<16x128xf32>
    %239 = arith.addf %233, %238 : vector<16x128xf32>
    %240 = math.tanh %239 : vector<16x128xf32>
    %cst_68 = arith.constant 1.000000e+00 : f32
    %241 = vector.broadcast %cst_68 : f32 to vector<16x128xf32>
    %242 = arith.subf %241, %232 : vector<16x128xf32>
    %243 = arith.mulf %242, %240 : vector<16x128xf32>
    %244 = arith.mulf %232, %210 : vector<16x128xf32>
    %245 = arith.addf %243, %244 : vector<16x128xf32>
    %c7_i32 = arith.constant 7 : i32
    %246 = arith.index_cast %c7_i32 : i32 to index
    %c0_69 = arith.constant 0 : index
    %c0_70 = arith.constant 0 : index
    %247 = vector.load %arg0[%246, %c0_69, %c0_70] : memref<8x16x384xf32, #tpu.memory_space<vmem>>, vector<1x16x384xf32>
    %248 = vector.shape_cast %247 : vector<1x16x384xf32> to vector<16x384xf32>
    %249 = arith.truncf %245 : vector<16x128xf32> to vector<16x128xbf16>
    %c0_71 = arith.constant 0 : index
    %c0_72 = arith.constant 0 : index
    %250 = vector.load %arg2[%c0_71, %c0_72] : memref<128x384xbf16, #tpu.memory_space<vmem>>, vector<128x384xbf16>
    %cst_73 = arith.constant dense<0.000000e+00> : vector<16x384xf32>
    %251 = tpu.matmul %249, %250, %cst_73 {dimension_numbers = #tpu.dot_dimension_numbers<[1], [0], [0], [1], [0, 0, 1, 1], [], []>} : vector<16x128xbf16>, vector<128x384xbf16>, vector<16x384xf32> -> vector<16x384xf32>
    %252 = vector.extract_strided_slice %248 {offsets = [0, 0], sizes = [16, 128], strides = [1, 1]} : vector<16x384xf32> to vector<16x128xf32>
    %253 = vector.extract_strided_slice %251 {offsets = [0, 0], sizes = [16, 128], strides = [1, 1]} : vector<16x384xf32> to vector<16x128xf32>
    %254 = arith.addf %252, %253 : vector<16x128xf32>
    %255 = arith.negf %254 : vector<16x128xf32>
    %256 = math.exp %255 : vector<16x128xf32>
    %cst_74 = arith.constant 1.000000e+00 : f32
    %257 = vector.broadcast %cst_74 : f32 to vector<16x128xf32>
    %258 = arith.addf %257, %256 : vector<16x128xf32>
    %259 = arith.divf %257, %258 : vector<16x128xf32>
    %260 = vector.extract_strided_slice %248 {offsets = [0, 128], sizes = [16, 128], strides = [1, 1]} : vector<16x384xf32> to vector<16x128xf32>
    %261 = vector.extract_strided_slice %251 {offsets = [0, 128], sizes = [16, 128], strides = [1, 1]} : vector<16x384xf32> to vector<16x128xf32>
    %262 = arith.addf %260, %261 : vector<16x128xf32>
    %263 = arith.negf %262 : vector<16x128xf32>
    %264 = math.exp %263 : vector<16x128xf32>
    %cst_75 = arith.constant 1.000000e+00 : f32
    %265 = vector.broadcast %cst_75 : f32 to vector<16x128xf32>
    %266 = arith.addf %265, %264 : vector<16x128xf32>
    %267 = arith.divf %265, %266 : vector<16x128xf32>
    %268 = vector.extract_strided_slice %248 {offsets = [0, 256], sizes = [16, 128], strides = [1, 1]} : vector<16x384xf32> to vector<16x128xf32>
    %269 = vector.extract_strided_slice %251 {offsets = [0, 256], sizes = [16, 128], strides = [1, 1]} : vector<16x384xf32> to vector<16x128xf32>
    %c0_76 = arith.constant 0 : index
    %c0_77 = arith.constant 0 : index
    %270 = vector.load %arg4[%c0_76, %c0_77] : memref<1x128xf32, #tpu.memory_space<vmem>>, vector<1x128xf32>
    %271 = vector.broadcast %270 : vector<1x128xf32> to vector<16x128xf32>
    %272 = arith.addf %269, %271 : vector<16x128xf32>
    %273 = arith.mulf %259, %272 : vector<16x128xf32>
    %274 = arith.addf %268, %273 : vector<16x128xf32>
    %275 = math.tanh %274 : vector<16x128xf32>
    %cst_78 = arith.constant 1.000000e+00 : f32
    %276 = vector.broadcast %cst_78 : f32 to vector<16x128xf32>
    %277 = arith.subf %276, %267 : vector<16x128xf32>
    %278 = arith.mulf %277, %275 : vector<16x128xf32>
    %279 = arith.mulf %267, %245 : vector<16x128xf32>
    %280 = arith.addf %278, %279 : vector<16x128xf32>
    %c8_i32 = arith.constant 8 : i32
    %c0_i32_79 = arith.constant 0 : i32
    %281 = arith.index_cast %c0_i32_79 : i32 to index
    %c0_80 = arith.constant 0 : index
    %c0_81 = arith.constant 0 : index
    %282 = vector.load %arg1[%281, %c0_80, %c0_81] : memref<7x16x384xf32, #tpu.memory_space<vmem>>, vector<1x16x384xf32>
    %283 = vector.shape_cast %282 : vector<1x16x384xf32> to vector<16x384xf32>
    %284 = arith.truncf %280 : vector<16x128xf32> to vector<16x128xbf16>
    %c0_82 = arith.constant 0 : index
    %c0_83 = arith.constant 0 : index
    %285 = vector.load %arg3[%c0_82, %c0_83] : memref<128x384xbf16, #tpu.memory_space<vmem>>, vector<128x384xbf16>
    %cst_84 = arith.constant dense<0.000000e+00> : vector<16x384xf32>
    %286 = tpu.matmul %284, %285, %cst_84 {dimension_numbers = #tpu.dot_dimension_numbers<[1], [0], [0], [1], [0, 0, 1, 1], [], []>} : vector<16x128xbf16>, vector<128x384xbf16>, vector<16x384xf32> -> vector<16x384xf32>
    %287 = vector.extract_strided_slice %283 {offsets = [0, 0], sizes = [16, 128], strides = [1, 1]} : vector<16x384xf32> to vector<16x128xf32>
    %288 = vector.extract_strided_slice %286 {offsets = [0, 0], sizes = [16, 128], strides = [1, 1]} : vector<16x384xf32> to vector<16x128xf32>
    %289 = arith.addf %287, %288 : vector<16x128xf32>
    %290 = arith.negf %289 : vector<16x128xf32>
    %291 = math.exp %290 : vector<16x128xf32>
    %cst_85 = arith.constant 1.000000e+00 : f32
    %292 = vector.broadcast %cst_85 : f32 to vector<16x128xf32>
    %293 = arith.addf %292, %291 : vector<16x128xf32>
    %294 = arith.divf %292, %293 : vector<16x128xf32>
    %295 = vector.extract_strided_slice %283 {offsets = [0, 128], sizes = [16, 128], strides = [1, 1]} : vector<16x384xf32> to vector<16x128xf32>
    %296 = vector.extract_strided_slice %286 {offsets = [0, 128], sizes = [16, 128], strides = [1, 1]} : vector<16x384xf32> to vector<16x128xf32>
    %297 = arith.addf %295, %296 : vector<16x128xf32>
    %298 = arith.negf %297 : vector<16x128xf32>
    %299 = math.exp %298 : vector<16x128xf32>
    %cst_86 = arith.constant 1.000000e+00 : f32
    %300 = vector.broadcast %cst_86 : f32 to vector<16x128xf32>
    %301 = arith.addf %300, %299 : vector<16x128xf32>
    %302 = arith.divf %300, %301 : vector<16x128xf32>
    %303 = vector.extract_strided_slice %283 {offsets = [0, 256], sizes = [16, 128], strides = [1, 1]} : vector<16x384xf32> to vector<16x128xf32>
    %304 = vector.extract_strided_slice %286 {offsets = [0, 256], sizes = [16, 128], strides = [1, 1]} : vector<16x384xf32> to vector<16x128xf32>
    %c0_87 = arith.constant 0 : index
    %c0_88 = arith.constant 0 : index
    %305 = vector.load %arg5[%c0_87, %c0_88] : memref<1x128xf32, #tpu.memory_space<vmem>>, vector<1x128xf32>
    %306 = vector.broadcast %305 : vector<1x128xf32> to vector<16x128xf32>
    %307 = arith.addf %304, %306 : vector<16x128xf32>
    %308 = arith.mulf %294, %307 : vector<16x128xf32>
    %309 = arith.addf %303, %308 : vector<16x128xf32>
    %310 = math.tanh %309 : vector<16x128xf32>
    %cst_89 = arith.constant 1.000000e+00 : f32
    %311 = vector.broadcast %cst_89 : f32 to vector<16x128xf32>
    %312 = arith.subf %311, %302 : vector<16x128xf32>
    %313 = arith.mulf %312, %310 : vector<16x128xf32>
    %314 = arith.mulf %302, %280 : vector<16x128xf32>
    %315 = arith.addf %313, %314 : vector<16x128xf32>
    %316 = arith.index_cast %c0_i32_79 : i32 to index
    %c0_90 = arith.constant 0 : index
    %c0_91 = arith.constant 0 : index
    %317 = vector.load %arg6[%316, %c0_90, %c0_91] : memref<7x16x128xf32, #tpu.memory_space<vmem>>, vector<1x16x128xf32>
    %318 = vector.shape_cast %317 : vector<1x16x128xf32> to vector<16x128xf32>
    %319 = vector.shape_cast %315 : vector<16x128xf32> to vector<1x16x128xf32>
    tpu.vector_store %arg6[%316, %c0_90, %c0_91], %319 {strides = array<i32>} : memref<7x16x128xf32, #tpu.memory_space<vmem>>, vector<1x16x128xf32>,
    %c1_i32_92 = arith.constant 1 : i32
    %320 = arith.index_cast %c1_i32_92 : i32 to index
    %c0_93 = arith.constant 0 : index
    %c0_94 = arith.constant 0 : index
    %321 = vector.load %arg1[%320, %c0_93, %c0_94] : memref<7x16x384xf32, #tpu.memory_space<vmem>>, vector<1x16x384xf32>
    %322 = vector.shape_cast %321 : vector<1x16x384xf32> to vector<16x384xf32>
    %323 = arith.truncf %315 : vector<16x128xf32> to vector<16x128xbf16>
    %c0_95 = arith.constant 0 : index
    %c0_96 = arith.constant 0 : index
    %324 = vector.load %arg3[%c0_95, %c0_96] : memref<128x384xbf16, #tpu.memory_space<vmem>>, vector<128x384xbf16>
    %cst_97 = arith.constant dense<0.000000e+00> : vector<16x384xf32>
    %325 = tpu.matmul %323, %324, %cst_97 {dimension_numbers = #tpu.dot_dimension_numbers<[1], [0], [0], [1], [0, 0, 1, 1], [], []>} : vector<16x128xbf16>, vector<128x384xbf16>, vector<16x384xf32> -> vector<16x384xf32>
    %326 = vector.extract_strided_slice %322 {offsets = [0, 0], sizes = [16, 128], strides = [1, 1]} : vector<16x384xf32> to vector<16x128xf32>
    %327 = vector.extract_strided_slice %325 {offsets = [0, 0], sizes = [16, 128], strides = [1, 1]} : vector<16x384xf32> to vector<16x128xf32>
    %328 = arith.addf %326, %327 : vector<16x128xf32>
    %329 = arith.negf %328 : vector<16x128xf32>
    %330 = math.exp %329 : vector<16x128xf32>
    %cst_98 = arith.constant 1.000000e+00 : f32
    %331 = vector.broadcast %cst_98 : f32 to vector<16x128xf32>
    %332 = arith.addf %331, %330 : vector<16x128xf32>
    %333 = arith.divf %331, %332 : vector<16x128xf32>
    %334 = vector.extract_strided_slice %322 {offsets = [0, 128], sizes = [16, 128], strides = [1, 1]} : vector<16x384xf32> to vector<16x128xf32>
    %335 = vector.extract_strided_slice %325 {offsets = [0, 128], sizes = [16, 128], strides = [1, 1]} : vector<16x384xf32> to vector<16x128xf32>
    %336 = arith.addf %334, %335 : vector<16x128xf32>
    %337 = arith.negf %336 : vector<16x128xf32>
    %338 = math.exp %337 : vector<16x128xf32>
    %cst_99 = arith.constant 1.000000e+00 : f32
    %339 = vector.broadcast %cst_99 : f32 to vector<16x128xf32>
    %340 = arith.addf %339, %338 : vector<16x128xf32>
    %341 = arith.divf %339, %340 : vector<16x128xf32>
    %342 = vector.extract_strided_slice %322 {offsets = [0, 256], sizes = [16, 128], strides = [1, 1]} : vector<16x384xf32> to vector<16x128xf32>
    %343 = vector.extract_strided_slice %325 {offsets = [0, 256], sizes = [16, 128], strides = [1, 1]} : vector<16x384xf32> to vector<16x128xf32>
    %c0_100 = arith.constant 0 : index
    %c0_101 = arith.constant 0 : index
    %344 = vector.load %arg5[%c0_100, %c0_101] : memref<1x128xf32, #tpu.memory_space<vmem>>, vector<1x128xf32>
    %345 = vector.broadcast %344 : vector<1x128xf32> to vector<16x128xf32>
    %346 = arith.addf %343, %345 : vector<16x128xf32>
    %347 = arith.mulf %333, %346 : vector<16x128xf32>
    %348 = arith.addf %342, %347 : vector<16x128xf32>
    %349 = math.tanh %348 : vector<16x128xf32>
    %cst_102 = arith.constant 1.000000e+00 : f32
    %350 = vector.broadcast %cst_102 : f32 to vector<16x128xf32>
    %351 = arith.subf %350, %341 : vector<16x128xf32>
    %352 = arith.mulf %351, %349 : vector<16x128xf32>
    %353 = arith.mulf %341, %315 : vector<16x128xf32>
    %354 = arith.addf %352, %353 : vector<16x128xf32>
    %355 = arith.index_cast %c1_i32_92 : i32 to index
    %c0_103 = arith.constant 0 : index
    %c0_104 = arith.constant 0 : index
    %356 = vector.load %arg6[%355, %c0_103, %c0_104] : memref<7x16x128xf32, #tpu.memory_space<vmem>>, vector<1x16x128xf32>
    %357 = vector.shape_cast %356 : vector<1x16x128xf32> to vector<16x128xf32>
    %358 = vector.shape_cast %354 : vector<16x128xf32> to vector<1x16x128xf32>
    tpu.vector_store %arg6[%355, %c0_103, %c0_104], %358 {strides = array<i32>} : memref<7x16x128xf32, #tpu.memory_space<vmem>>, vector<1x16x128xf32>,
    %c2_i32_105 = arith.constant 2 : i32
    %359 = arith.index_cast %c2_i32_105 : i32 to index
    %c0_106 = arith.constant 0 : index
    %c0_107 = arith.constant 0 : index
    %360 = vector.load %arg1[%359, %c0_106, %c0_107] : memref<7x16x384xf32, #tpu.memory_space<vmem>>, vector<1x16x384xf32>
    %361 = vector.shape_cast %360 : vector<1x16x384xf32> to vector<16x384xf32>
    %362 = arith.truncf %354 : vector<16x128xf32> to vector<16x128xbf16>
    %c0_108 = arith.constant 0 : index
    %c0_109 = arith.constant 0 : index
    %363 = vector.load %arg3[%c0_108, %c0_109] : memref<128x384xbf16, #tpu.memory_space<vmem>>, vector<128x384xbf16>
    %cst_110 = arith.constant dense<0.000000e+00> : vector<16x384xf32>
    %364 = tpu.matmul %362, %363, %cst_110 {dimension_numbers = #tpu.dot_dimension_numbers<[1], [0], [0], [1], [0, 0, 1, 1], [], []>} : vector<16x128xbf16>, vector<128x384xbf16>, vector<16x384xf32> -> vector<16x384xf32>
    %365 = vector.extract_strided_slice %361 {offsets = [0, 0], sizes = [16, 128], strides = [1, 1]} : vector<16x384xf32> to vector<16x128xf32>
    %366 = vector.extract_strided_slice %364 {offsets = [0, 0], sizes = [16, 128], strides = [1, 1]} : vector<16x384xf32> to vector<16x128xf32>
    %367 = arith.addf %365, %366 : vector<16x128xf32>
    %368 = arith.negf %367 : vector<16x128xf32>
    %369 = math.exp %368 : vector<16x128xf32>
    %cst_111 = arith.constant 1.000000e+00 : f32
    %370 = vector.broadcast %cst_111 : f32 to vector<16x128xf32>
    %371 = arith.addf %370, %369 : vector<16x128xf32>
    %372 = arith.divf %370, %371 : vector<16x128xf32>
    %373 = vector.extract_strided_slice %361 {offsets = [0, 128], sizes = [16, 128], strides = [1, 1]} : vector<16x384xf32> to vector<16x128xf32>
    %374 = vector.extract_strided_slice %364 {offsets = [0, 128], sizes = [16, 128], strides = [1, 1]} : vector<16x384xf32> to vector<16x128xf32>
    %375 = arith.addf %373, %374 : vector<16x128xf32>
    %376 = arith.negf %375 : vector<16x128xf32>
    %377 = math.exp %376 : vector<16x128xf32>
    %cst_112 = arith.constant 1.000000e+00 : f32
    %378 = vector.broadcast %cst_112 : f32 to vector<16x128xf32>
    %379 = arith.addf %378, %377 : vector<16x128xf32>
    %380 = arith.divf %378, %379 : vector<16x128xf32>
    %381 = vector.extract_strided_slice %361 {offsets = [0, 256], sizes = [16, 128], strides = [1, 1]} : vector<16x384xf32> to vector<16x128xf32>
    %382 = vector.extract_strided_slice %364 {offsets = [0, 256], sizes = [16, 128], strides = [1, 1]} : vector<16x384xf32> to vector<16x128xf32>
    %c0_113 = arith.constant 0 : index
    %c0_114 = arith.constant 0 : index
    %383 = vector.load %arg5[%c0_113, %c0_114] : memref<1x128xf32, #tpu.memory_space<vmem>>, vector<1x128xf32>
    %384 = vector.broadcast %383 : vector<1x128xf32> to vector<16x128xf32>
    %385 = arith.addf %382, %384 : vector<16x128xf32>
    %386 = arith.mulf %372, %385 : vector<16x128xf32>
    %387 = arith.addf %381, %386 : vector<16x128xf32>
    %388 = math.tanh %387 : vector<16x128xf32>
    %cst_115 = arith.constant 1.000000e+00 : f32
    %389 = vector.broadcast %cst_115 : f32 to vector<16x128xf32>
    %390 = arith.subf %389, %380 : vector<16x128xf32>
    %391 = arith.mulf %390, %388 : vector<16x128xf32>
    %392 = arith.mulf %380, %354 : vector<16x128xf32>
    %393 = arith.addf %391, %392 : vector<16x128xf32>
    %394 = arith.index_cast %c2_i32_105 : i32 to index
    %c0_116 = arith.constant 0 : index
    %c0_117 = arith.constant 0 : index
    %395 = vector.load %arg6[%394, %c0_116, %c0_117] : memref<7x16x128xf32, #tpu.memory_space<vmem>>, vector<1x16x128xf32>
    %396 = vector.shape_cast %395 : vector<1x16x128xf32> to vector<16x128xf32>
    %397 = vector.shape_cast %393 : vector<16x128xf32> to vector<1x16x128xf32>
    tpu.vector_store %arg6[%394, %c0_116, %c0_117], %397 {strides = array<i32>} : memref<7x16x128xf32, #tpu.memory_space<vmem>>, vector<1x16x128xf32>,
    %c3_i32_118 = arith.constant 3 : i32
    %398 = arith.index_cast %c3_i32_118 : i32 to index
    %c0_119 = arith.constant 0 : index
    %c0_120 = arith.constant 0 : index
    %399 = vector.load %arg1[%398, %c0_119, %c0_120] : memref<7x16x384xf32, #tpu.memory_space<vmem>>, vector<1x16x384xf32>
    %400 = vector.shape_cast %399 : vector<1x16x384xf32> to vector<16x384xf32>
    %401 = arith.truncf %393 : vector<16x128xf32> to vector<16x128xbf16>
    %c0_121 = arith.constant 0 : index
    %c0_122 = arith.constant 0 : index
    %402 = vector.load %arg3[%c0_121, %c0_122] : memref<128x384xbf16, #tpu.memory_space<vmem>>, vector<128x384xbf16>
    %cst_123 = arith.constant dense<0.000000e+00> : vector<16x384xf32>
    %403 = tpu.matmul %401, %402, %cst_123 {dimension_numbers = #tpu.dot_dimension_numbers<[1], [0], [0], [1], [0, 0, 1, 1], [], []>} : vector<16x128xbf16>, vector<128x384xbf16>, vector<16x384xf32> -> vector<16x384xf32>
    %404 = vector.extract_strided_slice %400 {offsets = [0, 0], sizes = [16, 128], strides = [1, 1]} : vector<16x384xf32> to vector<16x128xf32>
    %405 = vector.extract_strided_slice %403 {offsets = [0, 0], sizes = [16, 128], strides = [1, 1]} : vector<16x384xf32> to vector<16x128xf32>
    %406 = arith.addf %404, %405 : vector<16x128xf32>
    %407 = arith.negf %406 : vector<16x128xf32>
    %408 = math.exp %407 : vector<16x128xf32>
    %cst_124 = arith.constant 1.000000e+00 : f32
    %409 = vector.broadcast %cst_124 : f32 to vector<16x128xf32>
    %410 = arith.addf %409, %408 : vector<16x128xf32>
    %411 = arith.divf %409, %410 : vector<16x128xf32>
    %412 = vector.extract_strided_slice %400 {offsets = [0, 128], sizes = [16, 128], strides = [1, 1]} : vector<16x384xf32> to vector<16x128xf32>
    %413 = vector.extract_strided_slice %403 {offsets = [0, 128], sizes = [16, 128], strides = [1, 1]} : vector<16x384xf32> to vector<16x128xf32>
    %414 = arith.addf %412, %413 : vector<16x128xf32>
    %415 = arith.negf %414 : vector<16x128xf32>
    %416 = math.exp %415 : vector<16x128xf32>
    %cst_125 = arith.constant 1.000000e+00 : f32
    %417 = vector.broadcast %cst_125 : f32 to vector<16x128xf32>
    %418 = arith.addf %417, %416 : vector<16x128xf32>
    %419 = arith.divf %417, %418 : vector<16x128xf32>
    %420 = vector.extract_strided_slice %400 {offsets = [0, 256], sizes = [16, 128], strides = [1, 1]} : vector<16x384xf32> to vector<16x128xf32>
    %421 = vector.extract_strided_slice %403 {offsets = [0, 256], sizes = [16, 128], strides = [1, 1]} : vector<16x384xf32> to vector<16x128xf32>
    %c0_126 = arith.constant 0 : index
    %c0_127 = arith.constant 0 : index
    %422 = vector.load %arg5[%c0_126, %c0_127] : memref<1x128xf32, #tpu.memory_space<vmem>>, vector<1x128xf32>
    %423 = vector.broadcast %422 : vector<1x128xf32> to vector<16x128xf32>
    %424 = arith.addf %421, %423 : vector<16x128xf32>
    %425 = arith.mulf %411, %424 : vector<16x128xf32>
    %426 = arith.addf %420, %425 : vector<16x128xf32>
    %427 = math.tanh %426 : vector<16x128xf32>
    %cst_128 = arith.constant 1.000000e+00 : f32
    %428 = vector.broadcast %cst_128 : f32 to vector<16x128xf32>
    %429 = arith.subf %428, %419 : vector<16x128xf32>
    %430 = arith.mulf %429, %427 : vector<16x128xf32>
    %431 = arith.mulf %419, %393 : vector<16x128xf32>
    %432 = arith.addf %430, %431 : vector<16x128xf32>
    %433 = arith.index_cast %c3_i32_118 : i32 to index
    %c0_129 = arith.constant 0 : index
    %c0_130 = arith.constant 0 : index
    %434 = vector.load %arg6[%433, %c0_129, %c0_130] : memref<7x16x128xf32, #tpu.memory_space<vmem>>, vector<1x16x128xf32>
    %435 = vector.shape_cast %434 : vector<1x16x128xf32> to vector<16x128xf32>
    %436 = vector.shape_cast %432 : vector<16x128xf32> to vector<1x16x128xf32>
    tpu.vector_store %arg6[%433, %c0_129, %c0_130], %436 {strides = array<i32>} : memref<7x16x128xf32, #tpu.memory_space<vmem>>, vector<1x16x128xf32>,
    %c4_i32_131 = arith.constant 4 : i32
    %437 = arith.index_cast %c4_i32_131 : i32 to index
    %c0_132 = arith.constant 0 : index
    %c0_133 = arith.constant 0 : index
    %438 = vector.load %arg1[%437, %c0_132, %c0_133] : memref<7x16x384xf32, #tpu.memory_space<vmem>>, vector<1x16x384xf32>
    %439 = vector.shape_cast %438 : vector<1x16x384xf32> to vector<16x384xf32>
    %440 = arith.truncf %432 : vector<16x128xf32> to vector<16x128xbf16>
    %c0_134 = arith.constant 0 : index
    %c0_135 = arith.constant 0 : index
    %441 = vector.load %arg3[%c0_134, %c0_135] : memref<128x384xbf16, #tpu.memory_space<vmem>>, vector<128x384xbf16>
    %cst_136 = arith.constant dense<0.000000e+00> : vector<16x384xf32>
    %442 = tpu.matmul %440, %441, %cst_136 {dimension_numbers = #tpu.dot_dimension_numbers<[1], [0], [0], [1], [0, 0, 1, 1], [], []>} : vector<16x128xbf16>, vector<128x384xbf16>, vector<16x384xf32> -> vector<16x384xf32>
    %443 = vector.extract_strided_slice %439 {offsets = [0, 0], sizes = [16, 128], strides = [1, 1]} : vector<16x384xf32> to vector<16x128xf32>
    %444 = vector.extract_strided_slice %442 {offsets = [0, 0], sizes = [16, 128], strides = [1, 1]} : vector<16x384xf32> to vector<16x128xf32>
    %445 = arith.addf %443, %444 : vector<16x128xf32>
    %446 = arith.negf %445 : vector<16x128xf32>
    %447 = math.exp %446 : vector<16x128xf32>
    %cst_137 = arith.constant 1.000000e+00 : f32
    %448 = vector.broadcast %cst_137 : f32 to vector<16x128xf32>
    %449 = arith.addf %448, %447 : vector<16x128xf32>
    %450 = arith.divf %448, %449 : vector<16x128xf32>
    %451 = vector.extract_strided_slice %439 {offsets = [0, 128], sizes = [16, 128], strides = [1, 1]} : vector<16x384xf32> to vector<16x128xf32>
    %452 = vector.extract_strided_slice %442 {offsets = [0, 128], sizes = [16, 128], strides = [1, 1]} : vector<16x384xf32> to vector<16x128xf32>
    %453 = arith.addf %451, %452 : vector<16x128xf32>
    %454 = arith.negf %453 : vector<16x128xf32>
    %455 = math.exp %454 : vector<16x128xf32>
    %cst_138 = arith.constant 1.000000e+00 : f32
    %456 = vector.broadcast %cst_138 : f32 to vector<16x128xf32>
    %457 = arith.addf %456, %455 : vector<16x128xf32>
    %458 = arith.divf %456, %457 : vector<16x128xf32>
    %459 = vector.extract_strided_slice %439 {offsets = [0, 256], sizes = [16, 128], strides = [1, 1]} : vector<16x384xf32> to vector<16x128xf32>
    %460 = vector.extract_strided_slice %442 {offsets = [0, 256], sizes = [16, 128], strides = [1, 1]} : vector<16x384xf32> to vector<16x128xf32>
    %c0_139 = arith.constant 0 : index
    %c0_140 = arith.constant 0 : index
    %461 = vector.load %arg5[%c0_139, %c0_140] : memref<1x128xf32, #tpu.memory_space<vmem>>, vector<1x128xf32>
    %462 = vector.broadcast %461 : vector<1x128xf32> to vector<16x128xf32>
    %463 = arith.addf %460, %462 : vector<16x128xf32>
    %464 = arith.mulf %450, %463 : vector<16x128xf32>
    %465 = arith.addf %459, %464 : vector<16x128xf32>
    %466 = math.tanh %465 : vector<16x128xf32>
    %cst_141 = arith.constant 1.000000e+00 : f32
    %467 = vector.broadcast %cst_141 : f32 to vector<16x128xf32>
    %468 = arith.subf %467, %458 : vector<16x128xf32>
    %469 = arith.mulf %468, %466 : vector<16x128xf32>
    %470 = arith.mulf %458, %432 : vector<16x128xf32>
    %471 = arith.addf %469, %470 : vector<16x128xf32>
    %472 = arith.index_cast %c4_i32_131 : i32 to index
    %c0_142 = arith.constant 0 : index
    %c0_143 = arith.constant 0 : index
    %473 = vector.load %arg6[%472, %c0_142, %c0_143] : memref<7x16x128xf32, #tpu.memory_space<vmem>>, vector<1x16x128xf32>
    %474 = vector.shape_cast %473 : vector<1x16x128xf32> to vector<16x128xf32>
    %475 = vector.shape_cast %471 : vector<16x128xf32> to vector<1x16x128xf32>
    tpu.vector_store %arg6[%472, %c0_142, %c0_143], %475 {strides = array<i32>} : memref<7x16x128xf32, #tpu.memory_space<vmem>>, vector<1x16x128xf32>,
    %c5_i32_144 = arith.constant 5 : i32
    %476 = arith.index_cast %c5_i32_144 : i32 to index
    %c0_145 = arith.constant 0 : index
    %c0_146 = arith.constant 0 : index
    %477 = vector.load %arg1[%476, %c0_145, %c0_146] : memref<7x16x384xf32, #tpu.memory_space<vmem>>, vector<1x16x384xf32>
    %478 = vector.shape_cast %477 : vector<1x16x384xf32> to vector<16x384xf32>
    %479 = arith.truncf %471 : vector<16x128xf32> to vector<16x128xbf16>
    %c0_147 = arith.constant 0 : index
    %c0_148 = arith.constant 0 : index
    %480 = vector.load %arg3[%c0_147, %c0_148] : memref<128x384xbf16, #tpu.memory_space<vmem>>, vector<128x384xbf16>
    %cst_149 = arith.constant dense<0.000000e+00> : vector<16x384xf32>
    %481 = tpu.matmul %479, %480, %cst_149 {dimension_numbers = #tpu.dot_dimension_numbers<[1], [0], [0], [1], [0, 0, 1, 1], [], []>} : vector<16x128xbf16>, vector<128x384xbf16>, vector<16x384xf32> -> vector<16x384xf32>
    %482 = vector.extract_strided_slice %478 {offsets = [0, 0], sizes = [16, 128], strides = [1, 1]} : vector<16x384xf32> to vector<16x128xf32>
    %483 = vector.extract_strided_slice %481 {offsets = [0, 0], sizes = [16, 128], strides = [1, 1]} : vector<16x384xf32> to vector<16x128xf32>
    %484 = arith.addf %482, %483 : vector<16x128xf32>
    %485 = arith.negf %484 : vector<16x128xf32>
    %486 = math.exp %485 : vector<16x128xf32>
    %cst_150 = arith.constant 1.000000e+00 : f32
    %487 = vector.broadcast %cst_150 : f32 to vector<16x128xf32>
    %488 = arith.addf %487, %486 : vector<16x128xf32>
    %489 = arith.divf %487, %488 : vector<16x128xf32>
    %490 = vector.extract_strided_slice %478 {offsets = [0, 128], sizes = [16, 128], strides = [1, 1]} : vector<16x384xf32> to vector<16x128xf32>
    %491 = vector.extract_strided_slice %481 {offsets = [0, 128], sizes = [16, 128], strides = [1, 1]} : vector<16x384xf32> to vector<16x128xf32>
    %492 = arith.addf %490, %491 : vector<16x128xf32>
    %493 = arith.negf %492 : vector<16x128xf32>
    %494 = math.exp %493 : vector<16x128xf32>
    %cst_151 = arith.constant 1.000000e+00 : f32
    %495 = vector.broadcast %cst_151 : f32 to vector<16x128xf32>
    %496 = arith.addf %495, %494 : vector<16x128xf32>
    %497 = arith.divf %495, %496 : vector<16x128xf32>
    %498 = vector.extract_strided_slice %478 {offsets = [0, 256], sizes = [16, 128], strides = [1, 1]} : vector<16x384xf32> to vector<16x128xf32>
    %499 = vector.extract_strided_slice %481 {offsets = [0, 256], sizes = [16, 128], strides = [1, 1]} : vector<16x384xf32> to vector<16x128xf32>
    %c0_152 = arith.constant 0 : index
    %c0_153 = arith.constant 0 : index
    %500 = vector.load %arg5[%c0_152, %c0_153] : memref<1x128xf32, #tpu.memory_space<vmem>>, vector<1x128xf32>
    %501 = vector.broadcast %500 : vector<1x128xf32> to vector<16x128xf32>
    %502 = arith.addf %499, %501 : vector<16x128xf32>
    %503 = arith.mulf %489, %502 : vector<16x128xf32>
    %504 = arith.addf %498, %503 : vector<16x128xf32>
    %505 = math.tanh %504 : vector<16x128xf32>
    %cst_154 = arith.constant 1.000000e+00 : f32
    %506 = vector.broadcast %cst_154 : f32 to vector<16x128xf32>
    %507 = arith.subf %506, %497 : vector<16x128xf32>
    %508 = arith.mulf %507, %505 : vector<16x128xf32>
    %509 = arith.mulf %497, %471 : vector<16x128xf32>
    %510 = arith.addf %508, %509 : vector<16x128xf32>
    %511 = arith.index_cast %c5_i32_144 : i32 to index
    %c0_155 = arith.constant 0 : index
    %c0_156 = arith.constant 0 : index
    %512 = vector.load %arg6[%511, %c0_155, %c0_156] : memref<7x16x128xf32, #tpu.memory_space<vmem>>, vector<1x16x128xf32>
    %513 = vector.shape_cast %512 : vector<1x16x128xf32> to vector<16x128xf32>
    %514 = vector.shape_cast %510 : vector<16x128xf32> to vector<1x16x128xf32>
    tpu.vector_store %arg6[%511, %c0_155, %c0_156], %514 {strides = array<i32>} : memref<7x16x128xf32, #tpu.memory_space<vmem>>, vector<1x16x128xf32>,
    %c6_i32_157 = arith.constant 6 : i32
    %515 = arith.index_cast %c6_i32_157 : i32 to index
    %c0_158 = arith.constant 0 : index
    %c0_159 = arith.constant 0 : index
    %516 = vector.load %arg1[%515, %c0_158, %c0_159] : memref<7x16x384xf32, #tpu.memory_space<vmem>>, vector<1x16x384xf32>
    %517 = vector.shape_cast %516 : vector<1x16x384xf32> to vector<16x384xf32>
    %518 = arith.truncf %510 : vector<16x128xf32> to vector<16x128xbf16>
    %c0_160 = arith.constant 0 : index
    %c0_161 = arith.constant 0 : index
    %519 = vector.load %arg3[%c0_160, %c0_161] : memref<128x384xbf16, #tpu.memory_space<vmem>>, vector<128x384xbf16>
    %cst_162 = arith.constant dense<0.000000e+00> : vector<16x384xf32>
    %520 = tpu.matmul %518, %519, %cst_162 {dimension_numbers = #tpu.dot_dimension_numbers<[1], [0], [0], [1], [0, 0, 1, 1], [], []>} : vector<16x128xbf16>, vector<128x384xbf16>, vector<16x384xf32> -> vector<16x384xf32>
    %521 = vector.extract_strided_slice %517 {offsets = [0, 0], sizes = [16, 128], strides = [1, 1]} : vector<16x384xf32> to vector<16x128xf32>
    %522 = vector.extract_strided_slice %520 {offsets = [0, 0], sizes = [16, 128], strides = [1, 1]} : vector<16x384xf32> to vector<16x128xf32>
    %523 = arith.addf %521, %522 : vector<16x128xf32>
    %524 = arith.negf %523 : vector<16x128xf32>
    %525 = math.exp %524 : vector<16x128xf32>
    %cst_163 = arith.constant 1.000000e+00 : f32
    %526 = vector.broadcast %cst_163 : f32 to vector<16x128xf32>
    %527 = arith.addf %526, %525 : vector<16x128xf32>
    %528 = arith.divf %526, %527 : vector<16x128xf32>
    %529 = vector.extract_strided_slice %517 {offsets = [0, 128], sizes = [16, 128], strides = [1, 1]} : vector<16x384xf32> to vector<16x128xf32>
    %530 = vector.extract_strided_slice %520 {offsets = [0, 128], sizes = [16, 128], strides = [1, 1]} : vector<16x384xf32> to vector<16x128xf32>
    %531 = arith.addf %529, %530 : vector<16x128xf32>
    %532 = arith.negf %531 : vector<16x128xf32>
    %533 = math.exp %532 : vector<16x128xf32>
    %cst_164 = arith.constant 1.000000e+00 : f32
    %534 = vector.broadcast %cst_164 : f32 to vector<16x128xf32>
    %535 = arith.addf %534, %533 : vector<16x128xf32>
    %536 = arith.divf %534, %535 : vector<16x128xf32>
    %537 = vector.extract_strided_slice %517 {offsets = [0, 256], sizes = [16, 128], strides = [1, 1]} : vector<16x384xf32> to vector<16x128xf32>
    %538 = vector.extract_strided_slice %520 {offsets = [0, 256], sizes = [16, 128], strides = [1, 1]} : vector<16x384xf32> to vector<16x128xf32>
    %c0_165 = arith.constant 0 : index
    %c0_166 = arith.constant 0 : index
    %539 = vector.load %arg5[%c0_165, %c0_166] : memref<1x128xf32, #tpu.memory_space<vmem>>, vector<1x128xf32>
    %540 = vector.broadcast %539 : vector<1x128xf32> to vector<16x128xf32>
    %541 = arith.addf %538, %540 : vector<16x128xf32>
    %542 = arith.mulf %528, %541 : vector<16x128xf32>
    %543 = arith.addf %537, %542 : vector<16x128xf32>
    %544 = math.tanh %543 : vector<16x128xf32>
    %cst_167 = arith.constant 1.000000e+00 : f32
    %545 = vector.broadcast %cst_167 : f32 to vector<16x128xf32>
    %546 = arith.subf %545, %536 : vector<16x128xf32>
    %547 = arith.mulf %546, %544 : vector<16x128xf32>
    %548 = arith.mulf %536, %510 : vector<16x128xf32>
    %549 = arith.addf %547, %548 : vector<16x128xf32>
    %550 = arith.index_cast %c6_i32_157 : i32 to index
    %c0_168 = arith.constant 0 : index
    %c0_169 = arith.constant 0 : index
    %551 = vector.load %arg6[%550, %c0_168, %c0_169] : memref<7x16x128xf32, #tpu.memory_space<vmem>>, vector<1x16x128xf32>
    %552 = vector.shape_cast %551 : vector<1x16x128xf32> to vector<16x128xf32>
    %553 = vector.shape_cast %549 : vector<16x128xf32> to vector<1x16x128xf32>
    tpu.vector_store %arg6[%550, %c0_168, %c0_169], %553 {strides = array<i32>} : memref<7x16x128xf32, #tpu.memory_space<vmem>>, vector<1x16x128xf32>,
    %c7_i32_170 = arith.constant 7 : i32
    return
  }
}

</mosaic_0001>

<bundles_post_ra>
// kernel: seq2seq_forward.7
= control target key start
LH: loop header
LB: loop body
LE: loop exit
PB: predicated region body
PF: predicated region fallthrough
CT: control target
= control target key end

     0   :  { %v308_v0 = vmov 0.0   ;;  %vm309_vm0 = vmmov 0   ;;  %s471_s1 = inlined_call_operand.vmem [shape: bf16[128,128], index: 1, kind: input, shape index: {}]   ;;  %s472_s0 = inlined_call_operand.vmem [shape: f32[112,128], index: 0, kind: input, shape index: {}]   ;;  %s473_s2 = inlined_call_operand.vmem [shape: f32[1,128], index: 2, kind: input, shape index: {}]   ;;  %s474_s3 = inlined_call_operand.vmem [shape: f32[112,128], index: 3, kind: output, shape index: {}]  }
   0x1   :  { %238 = vmatprep.subr.bf16.mxu0 %v308_v0  ;;  %v300_v1 = vld [vmem:[%s471_s1 + $0x38] sm:$0xff]   ;;  %282 = vmatprep.subr.bf16.mxu1 %v308_v0  ;;  %v301_v2 = vld [vmem:[%s471_s1 + $0x30] sm:$0xff]   ;;  %v302_v3 = vld [vmem:[%s471_s1 + $0x28] sm:$0xff]  }
   0x2   :  { %254 = vmatprep.mubr.msk.bf16.mxu0 %vm309_vm0, %v308_v0  ;;  %270 = vmatprep.mubr.msk.bf16.mxu1 %vm309_vm0, %v308_v0  ;;  %v303_v4 = vld [vmem:[%s471_s1 + $0x20] sm:$0xff]   ;;  %v304_v5 = vld [vmem:[%s471_s1 + $0x18] sm:$0xff]   ;;  %v305_v6 = vld [vmem:[%s471_s1 + $0x10] sm:$0xff]  }
   0x3   :  { %239 = vmatpush3.bf16.msra.mxu0 %v300_v1  ;;  %290 = vmatpush3.bf16.msra.mxu1 %v300_v1  ;;  %v306_v7 = vld [vmem:[%s471_s1 + $0x8] sm:$0xff]   ;;  %v307_v8 = vld [vmem:[%s471_s1] sm:$0xff]   ;;  %v17_v15 = vld [vmem:[%s472_s0 + $0x10] sm:$0xff] }
   0x4   :  { %240 = vmatprep.subr.bf16.mxu0 %v308_v0  ;;  %283 = vmatprep.subr.bf16.mxu1 %v308_v0  ;;  %v15_v9 = vld [vmem:[%s472_s0] sm:$0xff]  ;;  %v16_v10 = vld [vmem:[%s472_s0 + $0x8] sm:$0xff]  ;;  %v18_v16 = vld [vmem:[%s472_s0 + $0x18] sm:$0xff] }
   0x5   :  { %v23_v11 = vld [vmem:[%s472_s0 + $0x40] sm:$0xff]  ;;  %v24_v12 = vld [vmem:[%s472_s0 + $0x48] sm:$0xff]  ;;  %v29_v13 = vpack.c.bf16 %v16_v10, %v15_v9  ;;  %v25_v17 = vld [vmem:[%s472_s0 + $0x50] sm:$0xff]  ;;  %v30_v19 = vpack.c.bf16 %v18_v16, %v17_v15 }
   0x6   :  { %v33_v14 = vpack.c.bf16 %v24_v12, %v23_v11  ;;  %v26_v18 = vld [vmem:[%s472_s0 + $0x58] sm:$0xff]  ;;  %v19_v21 = vld [vmem:[%s472_s0 + $0x20] sm:$0xff]  ;;  %v20_v22 = vld [vmem:[%s472_s0 + $0x28] sm:$0xff] }
   0x7   :  { %241 = vmatpush3.bf16.msra.mxu0 %v301_v2  ;;  %291 = vmatpush3.bf16.msra.mxu1 %v301_v2  ;;  %v34_v20 = vpack.c.bf16 %v26_v18, %v25_v17  ;;  %v27_v23 = vld [vmem:[%s472_s0 + $0x60] sm:$0xff]  ;;  %v28_v24 = vld [vmem:[%s472_s0 + $0x68] sm:$0xff]  ;;  %v31_v25 = vpack.c.bf16 %v20_v22, %v19_v21  ;;  %v21_v27 = vld [vmem:[%s472_s0 + $0x30] sm:$0xff] }
   0x8   :  { %242 = vmatprep.subr.bf16.mxu0 %v308_v0  ;;  %284 = vmatprep.subr.bf16.mxu1 %v308_v0  ;;  %v35_v26 = vpack.c.bf16 %v28_v24, %v27_v23  ;;  %v22_v28 = vld [vmem:[%s472_s0 + $0x38] sm:$0xff]  ;;  %v214_v30 = vld [vmem:[%s473_s2] ss:$0 sm:$0xff] }
   0x9   :  { %v32_v29 = vpack.c.bf16 %v22_v28, %v21_v27 }
   0xb   :  { %243 = vmatpush3.bf16.msra.mxu0 %v302_v3  ;;  %292 = vmatpush3.bf16.msra.mxu1 %v302_v3 }
   0xc   :  { %244 = vmatprep.subr.bf16.mxu0 %v308_v0  ;;  %285 = vmatprep.subr.bf16.mxu1 %v308_v0 }
   0xf   :  { %245 = vmatpush3.bf16.msra.mxu0 %v303_v4  ;;  %293 = vmatpush3.bf16.msra.mxu1 %v303_v4 }
  0x10   :  { %246 = vmatprep.subr.bf16.mxu0 %v308_v0  ;;  %286 = vmatprep.subr.bf16.mxu1 %v308_v0 }
  0x13   :  { %247 = vmatpush3.bf16.msra.mxu0 %v304_v5  ;;  %294 = vmatpush3.bf16.msra.mxu1 %v304_v5 }
  0x14   :  { %248 = vmatprep.subr.bf16.mxu0 %v308_v0  ;;  %287 = vmatprep.subr.bf16.mxu1 %v308_v0 }
  0x17   :  { %249 = vmatpush3.bf16.msra.mxu0 %v305_v6  ;;  %295 = vmatpush3.bf16.msra.mxu1 %v305_v6 }
  0x18   :  { %250 = vmatprep.subr.bf16.mxu0 %v308_v0  ;;  %288 = vmatprep.subr.bf16.mxu1 %v308_v0 }
  0x1b   :  { %251 = vmatpush3.bf16.msra.mxu0 %v306_v7  ;;  %296 = vmatpush3.bf16.msra.mxu1 %v306_v7 }
  0x1c   :  { %252 = vmatprep.subr.bf16.mxu0 %v308_v0  ;;  %289 = vmatprep.subr.bf16.mxu1 %v308_v0 }
  0x1f   :  { %253 = vmatpush3.bf16.msra.mxu0 %v307_v8  ;;  %297 = vmatpush3.bf16.msra.mxu1 %v307_v8 }
  0x22   :  { %255 = vmatmul.mubr.bf16.vlgmr.msra.gmra.mxu0 %v29_v13  ;;  %271 = vmatmul.mubr.bf16.vlgmr.msra.gmra.mxu1 %v33_v14 }
  0x23   :  { %258 = vmatprep.mubr.msk.bf16.mxu0 %vm309_vm0, %v308_v0  ;;  %274 = vmatprep.mubr.msk.bf16.mxu1 %vm309_vm0, %v308_v0 }
  0x2a   :  { %259 = vmatmul.mubr.bf16.gmra.mxu0 %v30_v19  ;;  %275 = vmatmul.mubr.bf16.gmra.mxu1 %v34_v20 }
  0x2b   :  { %262 = vmatprep.mubr.msk.bf16.mxu0 %vm309_vm0, %v308_v0  ;;  %278 = vmatprep.mubr.msk.bf16.mxu1 %vm309_vm0, %v308_v0 }
  0x32   :  { %263 = vmatmul.mubr.bf16.gmra.mxu0 %v31_v25  ;;  %279 = vmatmul.mubr.bf16.gmra.mxu1 %v35_v26 }
  0x33   :  { %266 = vmatprep.mubr.msk.bf16.mxu0 %vm309_vm0, %v308_v0 }
  0x3a   :  { %267 = vmatmul.mubr.bf16.gmra.mxu0 %v32_v29 }
  0xe2   :  { %v141_v31 = vpop.f32.mrf.mxu0  ;;  %v173_v32 = vpop.f32.mrf.mxu1 }
  0xe3   :  { %v142_v33 = vadd.f32 %v214_v30, %v141_v31  ;;  %v174_v34 = vadd.f32 %v214_v30, %v173_v32 }
  0xe4   :  { %v256_v35 = vpop.f32.mrf.mxu0  ;;  %v272_v36 = vpop.f32.mrf.mxu1 }
  0xe5   :  { %196 = vst [vmem:[%s474_s3] sm:$0xff] %v142_v33  ;;  %204 = vst [vmem:[%s474_s3 + $0x40] sm:$0xff] %v174_v34 }
  0xe6   :  { %v144_v37 = vpop.f32.mrf.mxu0  ;;  %v176_v38 = vpop.f32.mrf.mxu1 }
  0xe7   :  { %v145_v39 = vadd.f32 %v214_v30, %v144_v37  ;;  %v177_v40 = vadd.f32 %v214_v30, %v176_v38 }
  0xe8   :  { %v257_v41 = vpop.f32.mrf.mxu0  ;;  %v273_v42 = vpop.f32.mrf.mxu1 }
  0xe9   :  { %197 = vst [vmem:[%s474_s3 + $0x8] sm:$0xff] %v145_v39  ;;  %205 = vst [vmem:[%s474_s3 + $0x48] sm:$0xff] %v177_v40 }
  0xea   :  { %v149_v43 = vpop.f32.mrf.mxu0  ;;  %v181_v44 = vpop.f32.mrf.mxu1 }
  0xeb   :  { %v150_v45 = vadd.f32 %v214_v30, %v149_v43  ;;  %v182_v46 = vadd.f32 %v214_v30, %v181_v44 }
  0xec   :  { %v260_v47 = vpop.f32.mrf.mxu0  ;;  %v276_v48 = vpop.f32.mrf.mxu1 }
  0xed   :  { %198 = vst [vmem:[%s474_s3 + $0x10] sm:$0xff] %v150_v45  ;;  %206 = vst [vmem:[%s474_s3 + $0x50] sm:$0xff] %v182_v46 }
  0xee   :  { %v152_v49 = vpop.f32.mrf.mxu0  ;;  %v184_v50 = vpop.f32.mrf.mxu1 }
  0xef   :  { %v153_v51 = vadd.f32 %v214_v30, %v152_v49  ;;  %v185_v52 = vadd.f32 %v214_v30, %v184_v50 }
  0xf0   :  { %v261_v53 = vpop.f32.mrf.mxu0  ;;  %v277_v54 = vpop.f32.mrf.mxu1 }
  0xf1   :  { %199 = vst [vmem:[%s474_s3 + $0x18] sm:$0xff] %v153_v51  ;;  %207 = vst [vmem:[%s474_s3 + $0x58] sm:$0xff] %v185_v52 }
  0xf2   :  { %v157_v55 = vpop.f32.mrf.mxu0  ;;  %v189_v56 = vpop.f32.mrf.mxu1 }
  0xf3   :  { %v158_v57 = vadd.f32 %v214_v30, %v157_v55  ;;  %v190_v58 = vadd.f32 %v214_v30, %v189_v56 }
  0xf4   :  { %v264_v59 = vpop.f32.mrf.mxu0  ;;  %v280_v60 = vpop.f32.mrf.mxu1 }
  0xf5   :  { %200 = vst [vmem:[%s474_s3 + $0x20] sm:$0xff] %v158_v57  ;;  %208 = vst [vmem:[%s474_s3 + $0x60] sm:$0xff] %v190_v58 }
  0xf6   :  { %v160_v61 = vpop.f32.mrf.mxu0  ;;  %v192_v62 = vpop.f32.mrf.mxu1 }
  0xf7   :  { %v161_v63 = vadd.f32 %v214_v30, %v160_v61  ;;  %v193_v0 = vadd.f32 %v214_v30, %v192_v62 }
  0xf8   :  { %v265_v1 = vpop.f32.mrf.mxu0  ;;  %v281_v2 = vpop.f32.mrf.mxu1 }
  0xf9   :  { %201 = vst [vmem:[%s474_s3 + $0x28] sm:$0xff] %v161_v63  ;;  %209 = vst [vmem:[%s474_s3 + $0x68] sm:$0xff] %v193_v0 }
  0xfa   :  { %v165_v3 = vpop.f32.mrf.mxu0 }
  0xfb   :  { %v166_v4 = vadd.f32 %v214_v30, %v165_v3 }
  0xfc   :  { %v268_v5 = vpop.f32.mrf.mxu0 }
  0xfd   :  { %202 = vst [vmem:[%s474_s3 + $0x30] sm:$0xff] %v166_v4 }
  0xfe   :  { %v168_v6 = vpop.f32.mrf.mxu0 }
  0xff   :  { %v169_v7 = vadd.f32 %v214_v30, %v168_v6 }
 0x100   :  { %v269_v8 = vpop.f32.mrf.mxu0 }
 0x101   :  { %203 = vst [vmem:[%s474_s3 + $0x38] sm:$0xff] %v169_v7 }

// kernel: seq2seq_forward.5
= control target key start
LH: loop header
LB: loop body
LE: loop exit
PB: predicated region body
PF: predicated region fallthrough
CT: control target
= control target key end

     0   :  { %s862_s12 = smov 0   ;;  %s864_s13 = smov 0   ;;  %s1017_s0 = inlined_call_operand.vmem [shape: bf16[112,128], index: 0, kind: input, shape index: {}]   ;;  %s1018_s1 = inlined_call_operand.vmem [shape: bf16[128,384], index: 1, kind: input, shape index: {}]   ;;  %s1019_s2 = inlined_call_operand.vmem [shape: f32[1,384], index: 2, kind: input, shape index: {}]   ;;  %s1020_s3 = inlined_call_operand.vmem [shape: f32[112,384], index: 3, kind: output, shape index: {}]  }
   0x1   :  { %s866_s14 = smov 0  }
   0x2 LB: > { %s878_s15 = sadd.s32 4294967295, %s838_s14   ;;  %s881_s16 = sadd.s32 1, %s838_s14   ;;  %s838_s14 = sphi %s866_s14, %s1024_s14   ;;  %s834_s13 = sphi %s864_s13, %s1023_s13   ;;  %s830_s12 = sphi %s862_s12, %s1022_s12  }
   0x3   : > { %s38_s17 = ssub.s32 %s838_s14, %s881_s16  ;;  %s41_s18 = sadd.s32 1, %s834_s13 }
   0x4   : > { %p39_p0 = scmp.eq.s32.totalorder %s38_s17, 0  ;;  %p48_p1 = scmp.ne.s32.totalorder %s834_s13, %s830_s12 }
   0x5   : > { %p49_p2 = scmp.eq.s32.totalorder %s838_s14, 0  ;;  %p104_p3 = scmp.eq.s32.totalorder %s878_s15, 2 }
   0x6   : > { %s891_s19 = scalar_select %p39_p0, %s834_s13, %s41_s18  }
   0x7   : > { %p50_p4 = por %p49_p2, %p48_p1  ;;  %p893_p5 = por %p104_p3, %p48_p1 }
   0x8   : > { %p675_p6 = scmp.ge.s32.totalorder %s838_s14, 3 }
   0xa   : > { %129 = sbr.rel (%p675_p6) target bundleno = 29 (0x1d), region = 20 }
   0xf   : > { %132 = sbr.rel (!%p50_p4) target bundleno = 29 (0x1d), region = 24  ;;  %s134_s21 = sand.u32 (%p50_p4), 1, %s834_s13  }
  0x10   : > { %s677_s22 = sshll.u32 (%p50_p4), %s838_s14, 2  ;;  %s676_s23 = sshll.u32 (%p50_p4), %s134_s21, 6 }
  0x11   : > { %s903_s26 = scalar_lea.vmem (%p50_p4), %s1018_s1, %s677_s22  ;;  %s136_s27 = scalar_lea.vmem (%p50_p4), [#allocation2], %s676_s23 }
  0x12   : > { %v155_v0 = vld [vmem:[%s903_s26] sm:$0xf] (%p50_p4)  ;;  %v157_v1 = vld [vmem:[%s903_s26 + $0xc] sm:$0xf] (%p50_p4)  ;;  %v159_v2 = vld [vmem:[%s903_s26 + $0x18] sm:$0xf] (%p50_p4) }
  0x13   : > { %156 = vst [vmem:[%s136_s27] sm:$0xf] (%p50_p4), %v155_v0  ;;  %158 = vst [vmem:[%s136_s27 + $0x4] sm:$0xf] (%p50_p4), %v157_v1  ;;  %v161_v3 = vld [vmem:[%s903_s26 + $0x24] sm:$0xf] (%p50_p4) }
  0x14   : > { %v163_v4 = vld [vmem:[%s903_s26 + $0x30] sm:$0xf]  ;;  %160 = vst [vmem:[%s136_s27 + $0x8] sm:$0xf] %v159_v2  ;;  %162 = vst [vmem:[%s136_s27 + $0xc] sm:$0xf] %v161_v3 }
  0x15   : > { %164 = vst [vmem:[%s136_s27 + $0x10] sm:$0xf] %v163_v4  ;;  %v165_v5 = vld [vmem:[%s903_s26 + $0x3c] sm:$0xf]  ;;  %v167_v6 = vld [vmem:[%s903_s26 + $0x48] sm:$0xf] }
  0x16   : > { %v169_v7 = vld [vmem:[%s903_s26 + $0x54] sm:$0xf]  ;;  %166 = vst [vmem:[%s136_s27 + $0x14] sm:$0xf] %v165_v5  ;;  %168 = vst [vmem:[%s136_s27 + $0x18] sm:$0xf] %v167_v6 }
  0x17   : > { %170 = vst [vmem:[%s136_s27 + $0x1c] sm:$0xf] %v169_v7  ;;  %v171_v8 = vld [vmem:[%s903_s26 + $0x60] sm:$0xf]  ;;  %v173_v9 = vld [vmem:[%s903_s26 + $0x6c] sm:$0xf] }
  0x18   : > { %v175_v10 = vld [vmem:[%s903_s26 + $0x78] sm:$0xf]  ;;  %172 = vst [vmem:[%s136_s27 + $0x20] sm:$0xf] %v171_v8  ;;  %174 = vst [vmem:[%s136_s27 + $0x24] sm:$0xf] %v173_v9 }
  0x19   : > { %176 = vst [vmem:[%s136_s27 + $0x28] sm:$0xf] %v175_v10  ;;  %v177_v11 = vld [vmem:[%s903_s26 + $0x84] sm:$0xf]  ;;  %v179_v12 = vld [vmem:[%s903_s26 + $0x90] sm:$0xf] }
  0x1a   : > { %v181_v13 = vld [vmem:[%s903_s26 + $0x9c] sm:$0xf]  ;;  %178 = vst [vmem:[%s136_s27 + $0x2c] sm:$0xf] %v177_v11  ;;  %180 = vst [vmem:[%s136_s27 + $0x30] sm:$0xf] %v179_v12 }
  0x1b   : > { %182 = vst [vmem:[%s136_s27 + $0x34] sm:$0xf] %v181_v13  ;;  %v183_v14 = vld [vmem:[%s903_s26 + $0xa8] sm:$0xf]  ;;  %v185_v15 = vld [vmem:[%s903_s26 + $0xb4] sm:$0xf] }
  0x1c   : > { %184 = vst [vmem:[%s136_s27 + $0x38] sm:$0xf] %v183_v14  ;;  %186 = vst [vmem:[%s136_s27 + $0x3c] sm:$0xf] %v185_v15 }
  0x1d PF: > { %p678_p7 = scmp.ge.s32.totalorder %s838_s14, 1  ;;  %p247_p8 = scmp.lt.s32.totalorder %s838_s14, 4 }
  0x1f   : > { %p248_p9 = pnand %p678_p7, %p247_p8 }
  0x20   : > { %s254_s28 = sand.u32 (!%p248_p9), 1, %s830_s12   ;;  %p279_p10 = scmp.lt.s32.totalorder (!%p248_p9), %s878_s15, 2 }
  0x21   : > { %251 = sbr.rel (%p248_p9) target bundleno = 304 (0x130), region = 69  ;;  %s679_s29 = sshll.u32 (!%p248_p9), %s254_s28, 6 }
  0x22   : > { %s928_s30 = scalar_lea.vmem (!%p248_p9), [#allocation2], %s679_s29  ;;  %s774_s29 = smul.u32 (!%p248_p9), 112, %s254_s28 }
  0x26   : > { %v840_v16 = vmov 0.0   ;;  %vm841_vm0 = vmmov 0   ;;  %v801_v17 = vld [vmem:[%s928_s30 + $0x38] sm:$0xff]   ;;  %v802_v18 = vld [vmem:[%s928_s30 + $0x30] sm:$0xff]   ;;  %v803_v19 = vld [vmem:[%s928_s30 + $0x28] sm:$0xff]   ;;  %s280_s24 = scalar_select %p279_p10, %s878_s15, 2 }
  0x27   : > { %714 = vmatprep.subr.bf16.mxu0 %v840_v16  ;;  %758 = vmatprep.subr.bf16.mxu1 %v840_v16  ;;  %v804_v20 = vld [vmem:[%s928_s30 + $0x20] sm:$0xff]   ;;  %v805_v21 = vld [vmem:[%s928_s30 + $0x18] sm:$0xff]   ;;  %v806_v22 = vld [vmem:[%s928_s30 + $0x10] sm:$0xff]   ;;  %s696_s12 = sshll.u32 (%p893_p5), %s878_s15, 3 }
  0x28   : > { %730 = vmatprep.mubr.msk.bf16.mxu0 %vm841_vm0, %v840_v16  ;;  %746 = vmatprep.mubr.msk.bf16.mxu1 %vm841_vm0, %v840_v16  ;;  %v807_v23 = vld [vmem:[%s928_s30 + $0x8] sm:$0xff]   ;;  %v808_v24 = vld [vmem:[%s928_s30] sm:$0xff]   ;;  %v813_v29 = vld [vmem:[%s1017_s0 + $0x10] sm:$0xff]   ;;  %s281_s27 = scalar_lea.vmem %s1019_s2, %s280_s24  ;;  %s971_s30 = scalar_lea.vmem [#allocation3], %s774_s29 }
  0x29   : > { %715 = vmatpush3.bf16.msra.mxu0 %v801_v17  ;;  %766 = vmatpush3.bf16.msra.mxu1 %v801_v17  ;;  %v809_v25 = vld [vmem:[%s1017_s0] sm:$0xff]   ;;  %v811_v27 = vld [vmem:[%s1017_s0 + $0x8] sm:$0xff]   ;;  %v814_v30 = vld [vmem:[%s1017_s0 + $0x30] sm:$0xff]   ;;  %s521_s5 = scalar_lea.vmem (%p893_p5), %s1020_s3, %s696_s12 }
  0x2a   : > { %716 = vmatprep.subr.bf16.mxu0 %v840_v16  ;;  %759 = vmatprep.subr.bf16.mxu1 %v840_v16  ;;  %v810_v26 = vld [vmem:[%s1017_s0 + $0x20] sm:$0xff]   ;;  %v812_v28 = vld [vmem:[%s1017_s0 + $0x28] sm:$0xff]   ;;  %v815_v31 = vld [vmem:[%s1017_s0 + $0x18] sm:$0xff]  }
  0x2b   : > { %v680_v32 = vld [vmem:[%s281_s27] ss:$0 sm:$0xff] }
  0x2d   : > { %717 = vmatpush3.bf16.msra.mxu0 %v802_v18  ;;  %767 = vmatpush3.bf16.msra.mxu1 %v802_v18 }
  0x2e   : > { %718 = vmatprep.subr.bf16.mxu0 %v840_v16  ;;  %760 = vmatprep.subr.bf16.mxu1 %v840_v16 }
  0x31   : > { %719 = vmatpush3.bf16.msra.mxu0 %v803_v19  ;;  %768 = vmatpush3.bf16.msra.mxu1 %v803_v19 }
  0x32   : > { %720 = vmatprep.subr.bf16.mxu0 %v840_v16  ;;  %761 = vmatprep.subr.bf16.mxu1 %v840_v16 }
  0x35   : > { %721 = vmatpush3.bf16.msra.mxu0 %v804_v20  ;;  %769 = vmatpush3.bf16.msra.mxu1 %v804_v20 }
  0x36   : > { %722 = vmatprep.subr.bf16.mxu0 %v840_v16  ;;  %762 = vmatprep.subr.bf16.mxu1 %v840_v16 }
  0x39   : > { %723 = vmatpush3.bf16.msra.mxu0 %v805_v21  ;;  %770 = vmatpush3.bf16.msra.mxu1 %v805_v21 }
  0x3a   : > { %724 = vmatprep.subr.bf16.mxu0 %v840_v16  ;;  %763 = vmatprep.subr.bf16.mxu1 %v840_v16 }
  0x3d   : > { %725 = vmatpush3.bf16.msra.mxu0 %v806_v22  ;;  %771 = vmatpush3.bf16.msra.mxu1 %v806_v22 }
  0x3e   : > { %726 = vmatprep.subr.bf16.mxu0 %v840_v16  ;;  %764 = vmatprep.subr.bf16.mxu1 %v840_v16 }
  0x41   : > { %727 = vmatpush3.bf16.msra.mxu0 %v807_v23  ;;  %772 = vmatpush3.bf16.msra.mxu1 %v807_v23 }
  0x42   : > { %728 = vmatprep.subr.bf16.mxu0 %v840_v16  ;;  %765 = vmatprep.subr.bf16.mxu1 %v840_v16 }
  0x45   : > { %729 = vmatpush3.bf16.msra.mxu0 %v808_v24  ;;  %773 = vmatpush3.bf16.msra.mxu1 %v808_v24 }
  0x48   : > { %731 = vmatmul.mubr.bf16.vlgmr.msra.gmra.mxu0 %v809_v25  ;;  %747 = vmatmul.mubr.bf16.vlgmr.msra.gmra.mxu1 %v810_v26 }
  0x49   : > { %734 = vmatprep.mubr.msk.bf16.mxu0 %vm841_vm0, %v840_v16  ;;  %750 = vmatprep.mubr.msk.bf16.mxu1 %vm841_vm0, %v840_v16 }
  0x50   : > { %735 = vmatmul.mubr.bf16.gmra.mxu0 %v811_v27  ;;  %751 = vmatmul.mubr.bf16.gmra.mxu1 %v812_v28 }
  0x51   : > { %738 = vmatprep.mubr.msk.bf16.mxu0 %vm841_vm0, %v840_v16  ;;  %754 = vmatprep.mubr.msk.bf16.mxu1 %vm841_vm0, %v840_v16 }
  0x58   : > { %739 = vmatmul.mubr.bf16.gmra.mxu0 %v813_v29  ;;  %755 = vmatmul.mubr.bf16.gmra.mxu1 %v814_v30 }
  0x59   : > { %742 = vmatprep.mubr.msk.bf16.mxu0 %vm841_vm0, %v840_v16 }
  0x60   : > { %743 = vmatmul.mubr.bf16.gmra.mxu0 %v815_v31 }
 0x108   : > { %v444_v33 = vpop.f32.mrf.mxu0  ;;  %v476_v34 = vpop.f32.mrf.mxu1 }
 0x109   : > { %v445_v35 = vadd.f32 %v680_v32, %v444_v33  ;;  %v477_v36 = vadd.f32 %v680_v32, %v476_v34 }
 0x10a   : > { %v732_v37 = vpop.f32.mrf.mxu0  ;;  %v748_v38 = vpop.f32.mrf.mxu1 }
 0x10b   : > { %499 = vst [vmem:[%s971_s30] sm:$0xff] %v445_v35  ;;  %507 = vst [vmem:[%s971_s30 + $0x40] sm:$0xff] %v477_v36 }
 0x10c   : > { %v447_v39 = vpop.f32.mrf.mxu0  ;;  %v479_v40 = vpop.f32.mrf.mxu1 }
 0x10d   : > { %v448_v41 = vadd.f32 %v680_v32, %v447_v39  ;;  %v480_v42 = vadd.f32 %v680_v32, %v479_v40 }
 0x10e   : > { %v733_v43 = vpop.f32.mrf.mxu0  ;;  %v749_v44 = vpop.f32.mrf.mxu1 }
 0x10f   : > { %500 = vst [vmem:[%s971_s30 + $0x8] sm:$0xff] %v448_v41  ;;  %508 = vst [vmem:[%s971_s30 + $0x48] sm:$0xff] %v480_v42 }
 0x110   : > { %v452_v45 = vpop.f32.mrf.mxu0  ;;  %v484_v46 = vpop.f32.mrf.mxu1 }
 0x111   : > { %v453_v47 = vadd.f32 %v680_v32, %v452_v45  ;;  %v485_v48 = vadd.f32 %v680_v32, %v484_v46 }
 0x112   : > { %v736_v49 = vpop.f32.mrf.mxu0  ;;  %v752_v50 = vpop.f32.mrf.mxu1  ;;  %v576_v11 = vld [vmem:[%s971_s30] sm:$0xff] (%p893_p5) }
 0x113   : > { %501 = vst [vmem:[%s971_s30 + $0x10] sm:$0xff] %v453_v47  ;;  %509 = vst [vmem:[%s971_s30 + $0x50] sm:$0xff] %v485_v48  ;;  %v592_v19 = vld [vmem:[%s971_s30 + $0x40] sm:$0xff] (%p893_p5) }
 0x114   : > { %v455_v51 = vpop.f32.mrf.mxu0  ;;  %v487_v52 = vpop.f32.mrf.mxu1  ;;  %577 = vst [vmem:[%s521_s5] sm:$0xff] (%p893_p5), %v576_v11  ;;  %593 = vst [vmem:[%s521_s5 + $0xc0] sm:$0xff] (%p893_p5), %v592_v19 }
 0x115   : > { %v456_v53 = vadd.f32 %v680_v32, %v455_v51  ;;  %v488_v54 = vadd.f32 %v680_v32, %v487_v52 }
 0x116   : > { %v737_v55 = vpop.f32.mrf.mxu0  ;;  %v753_v56 = vpop.f32.mrf.mxu1  ;;  %v578_v12 = vld [vmem:[%s971_s30 + $0x8] sm:$0xff] (%p893_p5) }
 0x117   : > { %502 = vst [vmem:[%s971_s30 + $0x18] sm:$0xff] %v456_v53  ;;  %510 = vst [vmem:[%s971_s30 + $0x58] sm:$0xff] %v488_v54  ;;  %v594_v20 = vld [vmem:[%s971_s30 + $0x48] sm:$0xff] (%p893_p5) }
 0x118   : > { %v460_v57 = vpop.f32.mrf.mxu0  ;;  %v492_v58 = vpop.f32.mrf.mxu1  ;;  %579 = vst [vmem:[%s521_s5 + $0x18] sm:$0xff] (%p893_p5), %v578_v12  ;;  %595 = vst [vmem:[%s521_s5 + $0xd8] sm:$0xff] (%p893_p5), %v594_v20 }
 0x119   : > { %v461_v59 = vadd.f32 %v680_v32, %v460_v57  ;;  %v493_v60 = vadd.f32 %v680_v32, %v492_v58 }
 0x11a   : > { %v740_v61 = vpop.f32.mrf.mxu0  ;;  %v756_v62 = vpop.f32.mrf.mxu1  ;;  %v580_v13 = vld [vmem:[%s971_s30 + $0x10] sm:$0xff] (%p893_p5) }
 0x11b   : > { %503 = vst [vmem:[%s971_s30 + $0x20] sm:$0xff] %v461_v59  ;;  %511 = vst [vmem:[%s971_s30 + $0x60] sm:$0xff] %v493_v60  ;;  %v596_v21 = vld [vmem:[%s971_s30 + $0x50] sm:$0xff] (%p893_p5) }
 0x11c   : > { %v463_v63 = vpop.f32.mrf.mxu0  ;;  %v495_v0 = vpop.f32.mrf.mxu1  ;;  %581 = vst [vmem:[%s521_s5 + $0x30] sm:$0xff] (%p893_p5), %v580_v13  ;;  %597 = vst [vmem:[%s521_s5 + $0xf0] sm:$0xff] (%p893_p5), %v596_v21 }
 0x11d   : > { %v464_v1 = vadd.f32 %v680_v32, %v463_v63  ;;  %v496_v2 = vadd.f32 %v680_v32, %v495_v0 }
 0x11e   : > { %v741_v3 = vpop.f32.mrf.mxu0  ;;  %v757_v4 = vpop.f32.mrf.mxu1  ;;  %v582_v14 = vld [vmem:[%s971_s30 + $0x18] sm:$0xff] (%p893_p5) }
 0x11f   : > { %504 = vst [vmem:[%s971_s30 + $0x28] sm:$0xff] %v464_v1  ;;  %512 = vst [vmem:[%s971_s30 + $0x68] sm:$0xff] %v496_v2  ;;  %v598_v22 = vld [vmem:[%s971_s30 + $0x58] sm:$0xff] (%p893_p5) }
 0x120   : > { %v468_v5 = vpop.f32.mrf.mxu0  ;;  %583 = vst [vmem:[%s521_s5 + $0x48] sm:$0xff] (%p893_p5), %v582_v14  ;;  %599 = vst [vmem:[%s521_s5 + $0x108] sm:$0xff] (%p893_p5), %v598_v22 }
 0x121   : > { %v469_v6 = vadd.f32 %v680_v32, %v468_v5 }
 0x122   : > { %v744_v7 = vpop.f32.mrf.mxu0  ;;  %v584_v15 = vld [vmem:[%s971_s30 + $0x20] sm:$0xff] (%p893_p5) }
 0x123   : > { %505 = vst [vmem:[%s971_s30 + $0x30] sm:$0xff] %v469_v6  ;;  %519 = sbr.rel (!%p893_p5) target bundleno = 304 (0x130), region = 77  ;;  %585 = vst [vmem:[%s521_s5 + $0x60] sm:$0xff] (%p893_p5), %v584_v15  ;;  %v600_v23 = vld [vmem:[%s971_s30 + $0x60] sm:$0xff] (%p893_p5) }
 0x124   : > { %v471_v8 = vpop.f32.mrf.mxu0  ;;  %601 = vst [vmem:[%s521_s5 + $0x120] sm:$0xff] (%p893_p5), %v600_v23 }
 0x125   : > { %v472_v9 = vadd.f32 %v680_v32, %v471_v8 }
 0x126   : > { %v745_v10 = vpop.f32.mrf.mxu0  ;;  %v586_v16 = vld [vmem:[%s971_s30 + $0x28] sm:$0xff] (%p893_p5) }
 0x127   : > { %506 = vst [vmem:[%s971_s30 + $0x38] sm:$0xff] %v472_v9  ;;  %587 = vst [vmem:[%s521_s5 + $0x78] sm:$0xff] (%p893_p5), %v586_v16  ;;  %v602_v24 = vld [vmem:[%s971_s30 + $0x68] sm:$0xff] (%p893_p5) }
 0x128   : > { %603 = vst [vmem:[%s521_s5 + $0x138] sm:$0xff] %v602_v24 }
 0x12a   : > { %v588_v17 = vld [vmem:[%s971_s30 + $0x30] sm:$0xff] }
 0x12b   : > { %589 = vst [vmem:[%s521_s5 + $0x90] sm:$0xff] %v588_v17 }
 0x12e   : > { %v590_v18 = vld [vmem:[%s971_s30 + $0x38] sm:$0xff] }
 0x12f   : > { %591 = vst [vmem:[%s521_s5 + $0xa8] sm:$0xff] %v590_v18 }
 0x130 PF: > { %p10_p11 = scmp.ge.s32.totalorder %s881_s16, 5   ;;  %s1022_s12 = smov %s834_s13 }
 0x131   : > { %s1023_s13 = smov %s891_s19  ;;  %s1024_s14 = smov %s881_s16 }
 0x132   :  { %12 = sbr.rel (!%p10_p11) target bundleno = 2 (0x2), region = 149 }

// kernel: seq2seq_forward.4
= control target key start
LH: loop header
LB: loop body
LE: loop exit
PB: predicated region body
PF: predicated region fallthrough
CT: control target
= control target key end

     0   :  { %s876_s12 = smov 0   ;;  %s878_s13 = smov 0   ;;  %s1031_s0 = inlined_call_operand.vmem [shape: bf16[128,128], index: 0, kind: input, shape index: {}]   ;;  %s1032_s1 = inlined_call_operand.vmem [shape: bf16[128,384], index: 1, kind: input, shape index: {}]   ;;  %s1033_s2 = inlined_call_operand.vmem [shape: f32[1,384], index: 2, kind: input, shape index: {}]   ;;  %s1034_s3 = inlined_call_operand.vmem [shape: f32[128,384], index: 3, kind: output, shape index: {}]  }
   0x1   :  { %s880_s14 = smov 0  }
   0x2 LB: > { %s892_s15 = sadd.s32 4294967295, %s854_s14   ;;  %s895_s16 = sadd.s32 1, %s854_s14   ;;  %s854_s14 = sphi %s880_s14, %s1038_s14   ;;  %s850_s13 = sphi %s878_s13, %s1037_s13   ;;  %s846_s12 = sphi %s876_s12, %s1036_s12  }
   0x3   : > { %s38_s17 = ssub.s32 %s854_s14, %s895_s16  ;;  %s41_s18 = sadd.s32 1, %s850_s13 }
   0x4   : > { %p39_p0 = scmp.eq.s32.totalorder %s38_s17, 0  ;;  %p48_p1 = scmp.ne.s32.totalorder %s850_s13, %s846_s12 }
   0x5   : > { %p49_p2 = scmp.eq.s32.totalorder %s854_s14, 0  ;;  %p104_p3 = scmp.eq.s32.totalorder %s892_s15, 2 }
   0x6   : > { %s905_s19 = scalar_select %p39_p0, %s850_s13, %s41_s18  }
   0x7   : > { %p50_p4 = por %p49_p2, %p48_p1  ;;  %p907_p5 = por %p104_p3, %p48_p1 }
   0x8   : > { %p701_p6 = scmp.ge.s32.totalorder %s854_s14, 3 }
   0xa   : > { %129 = sbr.rel (%p701_p6) target bundleno = 29 (0x1d), region = 20 }
   0xf   : > { %132 = sbr.rel (!%p50_p4) target bundleno = 29 (0x1d), region = 24  ;;  %s134_s21 = sand.u32 (%p50_p4), 1, %s850_s13  }
  0x10   : > { %s703_s22 = sshll.u32 (%p50_p4), %s854_s14, 2  ;;  %s702_s23 = sshll.u32 (%p50_p4), %s134_s21, 6 }
  0x11   : > { %s917_s26 = scalar_lea.vmem (%p50_p4), %s1032_s1, %s703_s22  ;;  %s136_s27 = scalar_lea.vmem (%p50_p4), [#allocation2], %s702_s23 }
  0x12   : > { %v155_v0 = vld [vmem:[%s917_s26] sm:$0xf] (%p50_p4)  ;;  %v157_v1 = vld [vmem:[%s917_s26 + $0xc] sm:$0xf] (%p50_p4)  ;;  %v159_v2 = vld [vmem:[%s917_s26 + $0x18] sm:$0xf] (%p50_p4) }
  0x13   : > { %156 = vst [vmem:[%s136_s27] sm:$0xf] (%p50_p4), %v155_v0  ;;  %158 = vst [vmem:[%s136_s27 + $0x4] sm:$0xf] (%p50_p4), %v157_v1  ;;  %v161_v3 = vld [vmem:[%s917_s26 + $0x24] sm:$0xf] (%p50_p4) }
  0x14   : > { %v163_v4 = vld [vmem:[%s917_s26 + $0x30] sm:$0xf]  ;;  %160 = vst [vmem:[%s136_s27 + $0x8] sm:$0xf] %v159_v2  ;;  %162 = vst [vmem:[%s136_s27 + $0xc] sm:$0xf] %v161_v3 }
  0x15   : > { %164 = vst [vmem:[%s136_s27 + $0x10] sm:$0xf] %v163_v4  ;;  %v165_v5 = vld [vmem:[%s917_s26 + $0x3c] sm:$0xf]  ;;  %v167_v6 = vld [vmem:[%s917_s26 + $0x48] sm:$0xf] }
  0x16   : > { %v169_v7 = vld [vmem:[%s917_s26 + $0x54] sm:$0xf]  ;;  %166 = vst [vmem:[%s136_s27 + $0x14] sm:$0xf] %v165_v5  ;;  %168 = vst [vmem:[%s136_s27 + $0x18] sm:$0xf] %v167_v6 }
  0x17   : > { %170 = vst [vmem:[%s136_s27 + $0x1c] sm:$0xf] %v169_v7  ;;  %v171_v8 = vld [vmem:[%s917_s26 + $0x60] sm:$0xf]  ;;  %v173_v9 = vld [vmem:[%s917_s26 + $0x6c] sm:$0xf] }
  0x18   : > { %v175_v10 = vld [vmem:[%s917_s26 + $0x78] sm:$0xf]  ;;  %172 = vst [vmem:[%s136_s27 + $0x20] sm:$0xf] %v171_v8  ;;  %174 = vst [vmem:[%s136_s27 + $0x24] sm:$0xf] %v173_v9 }
  0x19   : > { %176 = vst [vmem:[%s136_s27 + $0x28] sm:$0xf] %v175_v10  ;;  %v177_v11 = vld [vmem:[%s917_s26 + $0x84] sm:$0xf]  ;;  %v179_v12 = vld [vmem:[%s917_s26 + $0x90] sm:$0xf] }
  0x1a   : > { %v181_v13 = vld [vmem:[%s917_s26 + $0x9c] sm:$0xf]  ;;  %178 = vst [vmem:[%s136_s27 + $0x2c] sm:$0xf] %v177_v11  ;;  %180 = vst [vmem:[%s136_s27 + $0x30] sm:$0xf] %v179_v12 }
  0x1b   : > { %182 = vst [vmem:[%s136_s27 + $0x34] sm:$0xf] %v181_v13  ;;  %v183_v14 = vld [vmem:[%s917_s26 + $0xa8] sm:$0xf]  ;;  %v185_v15 = vld [vmem:[%s917_s26 + $0xb4] sm:$0xf] }
  0x1c   : > { %184 = vst [vmem:[%s136_s27 + $0x38] sm:$0xf] %v183_v14  ;;  %186 = vst [vmem:[%s136_s27 + $0x3c] sm:$0xf] %v185_v15 }
  0x1d PF: > { %p704_p7 = scmp.ge.s32.totalorder %s854_s14, 1  ;;  %p247_p8 = scmp.lt.s32.totalorder %s854_s14, 4 }
  0x1f   : > { %p248_p9 = pnand %p704_p7, %p247_p8 }
  0x20   : > { %s254_s28 = sand.u32 (!%p248_p9), 1, %s846_s12   ;;  %p279_p10 = scmp.lt.s32.totalorder (!%p248_p9), %s892_s15, 2 }
  0x21   : > { %251 = sbr.rel (%p248_p9) target bundleno = 291 (0x123), region = 69  ;;  %s705_s4 = sshll.u32 (!%p248_p9), %s254_s28, 6 }
  0x22   : > { %s946_s7 = scalar_lea.vmem (!%p248_p9), [#allocation2], %s705_s4  ;;  %s706_s4 = sshll.u32 (!%p248_p9), %s254_s28, 7 }
  0x23   : > { %s981_s5 = scalar_lea.vmem (!%p248_p9), [#allocation3], %s706_s4 }
  0x26   : > { %v824_v16 = vld [vmem:[%s1031_s0] sm:$0xff]   ;;  %v816_v18 = vld [vmem:[%s946_s7 + $0x38] sm:$0xff]   ;;  %v817_v19 = vld [vmem:[%s946_s7 + $0x30] sm:$0xff]   ;;  %s280_s26 = scalar_select %p279_p10, %s892_s15, 2 }
  0x27   : > { %v825_v17 = vld [vmem:[%s1031_s0 + $0x20] sm:$0xff]   ;;  %760 = vmatprep.mubr.bf16.mxu0 %v824_v16  ;;  %744 = vmatprep.subr.bf16.mxu0 %v816_v18  ;;  %v818_v20 = vld [vmem:[%s946_s7 + $0x28] sm:$0xff]   ;;  %v820_v22 = vld [vmem:[%s946_s7 + $0x18] sm:$0xff]   ;;  %s725_s12 = sshll.u32 (%p907_p5), %s892_s15, 3 }
  0x28   : > { %768 = vmatprep.mubr.bf16.mxu1 %v825_v17  ;;  %776 = vmatprep.subr.bf16.mxu1 %v816_v18  ;;  %v819_v21 = vld [vmem:[%s946_s7 + $0x20] sm:$0xff]   ;;  %v821_v23 = vld [vmem:[%s946_s7 + $0x10] sm:$0xff]   ;;  %v822_v24 = vld [vmem:[%s946_s7 + $0x8] sm:$0xff]   ;;  %s281_s30 = scalar_lea.vmem %s1033_s2, %s280_s26 }
  0x29   : > { %745 = vmatpush3.bf16.msra.mxu0 %v816_v18  ;;  %784 = vmatpush3.bf16.msra.mxu1 %v816_v18  ;;  %v823_v25 = vld [vmem:[%s946_s7] sm:$0xff]   ;;  %v826_v26 = vld [vmem:[%s1031_s0 + $0x8] sm:$0xff]   ;;  %v828_v28 = vld [vmem:[%s1031_s0 + $0x10] sm:$0xff]   ;;  %s539_s7 = scalar_lea.vmem (%p907_p5), %s1034_s3, %s725_s12 }
  0x2a   : > { %746 = vmatprep.subr.bf16.mxu0 %v817_v19  ;;  %777 = vmatprep.subr.bf16.mxu1 %v817_v19  ;;  %v827_v27 = vld [vmem:[%s1031_s0 + $0x28] sm:$0xff]   ;;  %v829_v29 = vld [vmem:[%s1031_s0 + $0x30] sm:$0xff]   ;;  %v830_v30 = vld [vmem:[%s1031_s0 + $0x18] sm:$0xff]  }
  0x2b   : > { %v831_v31 = vld [vmem:[%s1031_s0 + $0x38] sm:$0xff]   ;;  %v707_v32 = vld [vmem:[%s281_s30] ss:$0 sm:$0xff] }
  0x2d   : > { %747 = vmatpush3.bf16.msra.mxu0 %v817_v19  ;;  %785 = vmatpush3.bf16.msra.mxu1 %v817_v19 }
  0x2e   : > { %748 = vmatprep.subr.bf16.mxu0 %v818_v20  ;;  %778 = vmatprep.subr.bf16.mxu1 %v818_v20 }
  0x31   : > { %749 = vmatpush3.bf16.msra.mxu0 %v818_v20  ;;  %786 = vmatpush3.bf16.msra.mxu1 %v818_v20 }
  0x32   : > { %750 = vmatprep.subr.bf16.mxu0 %v819_v21  ;;  %779 = vmatprep.subr.bf16.mxu1 %v819_v21 }
  0x35   : > { %751 = vmatpush3.bf16.msra.mxu0 %v819_v21  ;;  %787 = vmatpush3.bf16.msra.mxu1 %v819_v21 }
  0x36   : > { %752 = vmatprep.subr.bf16.mxu0 %v820_v22  ;;  %780 = vmatprep.subr.bf16.mxu1 %v820_v22 }
  0x39   : > { %753 = vmatpush3.bf16.msra.mxu0 %v820_v22  ;;  %788 = vmatpush3.bf16.msra.mxu1 %v820_v22 }
  0x3a   : > { %754 = vmatprep.subr.bf16.mxu0 %v821_v23  ;;  %781 = vmatprep.subr.bf16.mxu1 %v821_v23 }
  0x3d   : > { %755 = vmatpush3.bf16.msra.mxu0 %v821_v23  ;;  %789 = vmatpush3.bf16.msra.mxu1 %v821_v23 }
  0x3e   : > { %756 = vmatprep.subr.bf16.mxu0 %v822_v24  ;;  %782 = vmatprep.subr.bf16.mxu1 %v822_v24 }
  0x41   : > { %757 = vmatpush3.bf16.msra.mxu0 %v822_v24  ;;  %790 = vmatpush3.bf16.msra.mxu1 %v822_v24 }
  0x42   : > { %758 = vmatprep.subr.bf16.mxu0 %v823_v25  ;;  %783 = vmatprep.subr.bf16.mxu1 %v823_v25 }
  0x45   : > { %759 = vmatpush3.bf16.msra.mxu0 %v823_v25  ;;  %791 = vmatpush3.bf16.msra.mxu1 %v823_v25 }
  0x48   : > { %761 = vmatmul.mubr.bf16.vlgmr.msra.gmra.mxu0 %v826_v26  ;;  %769 = vmatmul.mubr.bf16.vlgmr.msra.gmra.mxu1 %v827_v27 }
  0x49   : > { %764 = vmatprep.mubr.bf16.mxu0 %v828_v28  ;;  %772 = vmatprep.mubr.bf16.mxu1 %v829_v29 }
  0x50   : > { %765 = vmatmul.mubr.bf16.gmra.mxu0 %v830_v30  ;;  %773 = vmatmul.mubr.bf16.gmra.mxu1 %v831_v31 }
 0x108   : > { %v762_v33 = vpop.f32.mrf.mxu0  ;;  %v770_v34 = vpop.f32.mrf.mxu1 }
 0x109   : > { %v461_v35 = vadd.f32 %v762_v33, %v707_v32  ;;  %v493_v36 = vadd.f32 %v770_v34, %v707_v32 }
 0x10a   : > { %v452_v37 = vpop.f32.mrf.mxu0  ;;  %v484_v38 = vpop.f32.mrf.mxu1 }
 0x10b   : > { %517 = vst [vmem:[%s981_s5 + $0x10] sm:$0xff] %v461_v35  ;;  %525 = vst [vmem:[%s981_s5 + $0x50] sm:$0xff] %v493_v36  ;;  %v453_v39 = vadd.f32 %v707_v32, %v452_v37  ;;  %v485_v40 = vadd.f32 %v707_v32, %v484_v38 }
 0x10c   : > { %v763_v41 = vpop.f32.mrf.mxu0  ;;  %v771_v42 = vpop.f32.mrf.mxu1 }
 0x10d   : > { %515 = vst [vmem:[%s981_s5] sm:$0xff] %v453_v39  ;;  %523 = vst [vmem:[%s981_s5 + $0x40] sm:$0xff] %v485_v40  ;;  %v464_v43 = vadd.f32 %v763_v41, %v707_v32  ;;  %v496_v44 = vadd.f32 %v771_v42, %v707_v32 }
 0x10e   : > { %v455_v45 = vpop.f32.mrf.mxu0  ;;  %v487_v46 = vpop.f32.mrf.mxu1 }
 0x10f   : > { %518 = vst [vmem:[%s981_s5 + $0x18] sm:$0xff] %v464_v43  ;;  %526 = vst [vmem:[%s981_s5 + $0x58] sm:$0xff] %v496_v44  ;;  %v456_v47 = vadd.f32 %v707_v32, %v455_v45  ;;  %v488_v48 = vadd.f32 %v707_v32, %v487_v46 }
 0x110   : > { %v766_v49 = vpop.f32.mrf.mxu0  ;;  %v774_v50 = vpop.f32.mrf.mxu1 }
 0x111   : > { %516 = vst [vmem:[%s981_s5 + $0x8] sm:$0xff] %v456_v47  ;;  %524 = vst [vmem:[%s981_s5 + $0x48] sm:$0xff] %v488_v48  ;;  %v477_v51 = vadd.f32 %v766_v49, %v707_v32  ;;  %v509_v52 = vadd.f32 %v774_v50, %v707_v32 }
 0x112   : > { %v468_v53 = vpop.f32.mrf.mxu0  ;;  %v500_v54 = vpop.f32.mrf.mxu1  ;;  %v602_v3 = vld [vmem:[%s981_s5 + $0x10] sm:$0xff] (%p907_p5) }
 0x113   : > { %521 = vst [vmem:[%s981_s5 + $0x30] sm:$0xff] %v477_v51  ;;  %529 = vst [vmem:[%s981_s5 + $0x70] sm:$0xff] %v509_v52  ;;  %v469_v55 = vadd.f32 %v707_v32, %v468_v53  ;;  %v501_v56 = vadd.f32 %v707_v32, %v500_v54  ;;  %v618_v11 = vld [vmem:[%s981_s5 + $0x50] sm:$0xff] (%p907_p5) }
 0x114   : > { %v767_v57 = vpop.f32.mrf.mxu0  ;;  %v775_v58 = vpop.f32.mrf.mxu1  ;;  %v598_v1 = vld [vmem:[%s981_s5] sm:$0xff] (%p907_p5)  ;;  %603 = vst [vmem:[%s539_s7 + $0x30] sm:$0xff] (%p907_p5), %v602_v3  ;;  %619 = vst [vmem:[%s539_s7 + $0xf0] sm:$0xff] (%p907_p5), %v618_v11 }
 0x115   : > { %519 = vst [vmem:[%s981_s5 + $0x20] sm:$0xff] %v469_v55  ;;  %527 = vst [vmem:[%s981_s5 + $0x60] sm:$0xff] %v501_v56  ;;  %v480_v59 = vadd.f32 %v767_v57, %v707_v32  ;;  %v512_v60 = vadd.f32 %v775_v58, %v707_v32  ;;  %537 = sbr.rel (!%p907_p5) target bundleno = 291 (0x123), region = 77  ;;  %v614_v9 = vld [vmem:[%s981_s5 + $0x40] sm:$0xff] (%p907_p5) }
 0x116   : > { %v471_v61 = vpop.f32.mrf.mxu0  ;;  %v503_v62 = vpop.f32.mrf.mxu1  ;;  %v604_v4 = vld [vmem:[%s981_s5 + $0x18] sm:$0xff] (%p907_p5)  ;;  %599 = vst [vmem:[%s539_s7] sm:$0xff] (%p907_p5), %v598_v1  ;;  %615 = vst [vmem:[%s539_s7 + $0xc0] sm:$0xff] (%p907_p5), %v614_v9 }
 0x117   : > { %522 = vst [vmem:[%s981_s5 + $0x38] sm:$0xff] %v480_v59  ;;  %530 = vst [vmem:[%s981_s5 + $0x78] sm:$0xff] %v512_v60  ;;  %v472_v63 = vadd.f32 %v707_v32, %v471_v61  ;;  %v504_v0 = vadd.f32 %v707_v32, %v503_v62  ;;  %v620_v12 = vld [vmem:[%s981_s5 + $0x58] sm:$0xff] (%p907_p5) }
 0x118   : > { %v600_v2 = vld [vmem:[%s981_s5 + $0x8] sm:$0xff] (%p907_p5)  ;;  %605 = vst [vmem:[%s539_s7 + $0x48] sm:$0xff] (%p907_p5), %v604_v4  ;;  %621 = vst [vmem:[%s539_s7 + $0x108] sm:$0xff] (%p907_p5), %v620_v12 }
 0x119   : > { %520 = vst [vmem:[%s981_s5 + $0x28] sm:$0xff] %v472_v63  ;;  %528 = vst [vmem:[%s981_s5 + $0x68] sm:$0xff] %v504_v0  ;;  %v616_v10 = vld [vmem:[%s981_s5 + $0x48] sm:$0xff] (%p907_p5) }
 0x11a   : > { %601 = vst [vmem:[%s539_s7 + $0x18] sm:$0xff] %v600_v2  ;;  %v610_v7 = vld [vmem:[%s981_s5 + $0x30] sm:$0xff]  ;;  %617 = vst [vmem:[%s539_s7 + $0xd8] sm:$0xff] %v616_v10 }
 0x11b   : > { %611 = vst [vmem:[%s539_s7 + $0x90] sm:$0xff] %v610_v7  ;;  %v626_v15 = vld [vmem:[%s981_s5 + $0x70] sm:$0xff] }
 0x11c   : > { %v606_v5 = vld [vmem:[%s981_s5 + $0x20] sm:$0xff]  ;;  %627 = vst [vmem:[%s539_s7 + $0x150] sm:$0xff] %v626_v15 }
 0x11d   : > { %607 = vst [vmem:[%s539_s7 + $0x60] sm:$0xff] %v606_v5  ;;  %v622_v13 = vld [vmem:[%s981_s5 + $0x60] sm:$0xff] }
 0x11e   : > { %v612_v8 = vld [vmem:[%s981_s5 + $0x38] sm:$0xff]  ;;  %623 = vst [vmem:[%s539_s7 + $0x120] sm:$0xff] %v622_v13 }
 0x11f   : > { %613 = vst [vmem:[%s539_s7 + $0xa8] sm:$0xff] %v612_v8  ;;  %v628_v16 = vld [vmem:[%s981_s5 + $0x78] sm:$0xff] }
 0x120   : > { %v608_v6 = vld [vmem:[%s981_s5 + $0x28] sm:$0xff]  ;;  %629 = vst [vmem:[%s539_s7 + $0x168] sm:$0xff] %v628_v16 }
 0x121   : > { %609 = vst [vmem:[%s539_s7 + $0x78] sm:$0xff] %v608_v6  ;;  %v624_v14 = vld [vmem:[%s981_s5 + $0x68] sm:$0xff] }
 0x122   : > { %625 = vst [vmem:[%s539_s7 + $0x138] sm:$0xff] %v624_v14 }
 0x123 PF: > { %p10_p11 = scmp.ge.s32.totalorder %s895_s16, 5   ;;  %s1036_s12 = smov %s850_s13 }
 0x124   : > { %s1037_s13 = smov %s905_s19  ;;  %s1038_s14 = smov %s895_s16 }
 0x125   :  { %12 = sbr.rel (!%p10_p11) target bundleno = 2 (0x2), region = 149 }

// kernel: seq2seq_forward.6
= control target key start
LH: loop header
LB: loop body
LE: loop exit
PB: predicated region body
PF: predicated region fallthrough
CT: control target
= control target key end

     0   :  { %v4670_v1 = vmov 0.0   ;;  %v4671_v2 = vmov 0   ;;  %vm4672_vm0 = vmmov 0   ;;  %s6233_s2 = inlined_call_operand.vmem [shape: bf16[128,384], index: 2, kind: input, shape index: {}]   ;;  %s6234_s0 = inlined_call_operand.vmem [shape: f32[8,16,384], index: 0, kind: input, shape index: {}]   ;;  %s6235_s4 = inlined_call_operand.vmem [shape: f32[1,128], index: 4, kind: input, shape index: {}]   ;;  %s6236_s3 = inlined_call_operand.vmem [shape: bf16[128,384], index: 3, kind: input, shape index: {}]   ;;  %s6237_s1 = inlined_call_operand.vmem [shape: f32[7,16,384], index: 1, kind: input, shape index: {}]   ;;  %s6238_s5 = inlined_call_operand.vmem [shape: f32[1,128], index: 5, kind: input, shape index: {}]   ;;  %s6239_s6 = inlined_call_operand.vmem [shape: f32[7,16,128], index: 6, kind: output, shape index: {}]  }
   0x1   :  { %v4711_v0 = vld [vmem:[%s6233_s2 + $0xac] ss:$12 sps:$4 sm:$0xff]   ;;  %3906 = vmatprep.subr.bf16.mxu1 %v4670_v1  ;;  %222 = vmatprep.mubr.bf16.mxu0 %v4671_v2  ;;  %v4718_v3 = vld [vmem:[%s6233_s2 + $0xa8] ss:$12 sps:$4 sm:$0xff]   ;;  %v4732_v5 = vld [vmem:[%s6233_s2 + $0x90] ss:$12 sps:$4 sm:$0xff]  }
   0x2   :  { %3922 = vmatprep.mubr.msk.bf16.mxu1 %vm4672_vm0, %v4670_v1  ;;  %190 = vmatprep.subr.bf16.mxu0 %v4711_v0  ;;  %v4726_v4 = vld [vmem:[%s6233_s2 + $0x94] ss:$12 sps:$4 sm:$0xff]   ;;  %v4738_v6 = vld [vmem:[%s6233_s2 + $0x7c] ss:$12 sps:$4 sm:$0xff]   ;;  %v4744_v7 = vld [vmem:[%s6233_s2 + $0x78] ss:$12 sps:$4 sm:$0xff]  }
   0x3   :  { %191 = vmatpush1.bf16.msra.mxu0 %v4718_v3  ;;  %v4750_v8 = vld [vmem:[%s6233_s2 + $0x64] ss:$12 sps:$4 sm:$0xff]   ;;  %v4761_v10 = vld [vmem:[%s6233_s2 + $0x60] ss:$12 sps:$4 sm:$0xff]   ;;  %v4779_v13 = vld [vmem:[%s6233_s2 + $0x48] ss:$12 sps:$4 sm:$0xff]  }
   0x4   :  { %192 = vmatprep.subr.bf16.mxu0 %v4726_v4  ;;  %v4755_v9 = vld [vmem:[%s6233_s2 + $0xb0] ss:$12 sps:$4 sm:$0xff]   ;;  %v4766_v11 = vld [vmem:[%s6233_s2 + $0x4c] ss:$12 sps:$4 sm:$0xff]   ;;  %v4785_v14 = vld [vmem:[%s6233_s2 + $0x34] ss:$12 sps:$4 sm:$0xff]  }
   0x5   :  { %3907 = vmatpush3.bf16.msra.mxu1 %v4755_v9  ;;  %v4773_v12 = vld [vmem:[%s6233_s2 + $0x98] ss:$12 sps:$4 sm:$0xff]   ;;  %v4792_v15 = vld [vmem:[%s6233_s2 + $0x80] ss:$12 sps:$4 sm:$0xff]   ;;  %v4799_v16 = vld [vmem:[%s6233_s2 + $0x30] ss:$12 sps:$4 sm:$0xff]  }
   0x6   :  { %3908 = vmatprep.subr.bf16.mxu1 %v4670_v1  ;;  %v4805_v17 = vld [vmem:[%s6233_s2 + $0x1c] ss:$12 sps:$4 sm:$0xff]   ;;  %v4818_v19 = vld [vmem:[%s6233_s2 + $0x18] ss:$12 sps:$4 sm:$0xff]   ;;  %v4837_v22 = vld [vmem:[%s6233_s2] ss:$12 sps:$4 sm:$0xff]  }
   0x7   :  { %193 = vmatpush1.bf16.msra.mxu0 %v4732_v5  ;;  %v4811_v18 = vld [vmem:[%s6233_s2 + $0x68] ss:$12 sps:$4 sm:$0xff]   ;;  %v4824_v20 = vld [vmem:[%s6233_s2 + $0x4] ss:$12 sps:$4 sm:$0xff]   ;;  %v4852_v24 = vld [vmem:[%s6233_s2 + $0x20] ss:$12 sps:$4 sm:$0xff]  }
   0x8   :  { %194 = vmatprep.subr.bf16.mxu0 %v4738_v6  ;;  %v4830_v21 = vld [vmem:[%s6233_s2 + $0x50] ss:$12 sps:$4 sm:$0xff]   ;;  %v4844_v23 = vld [vmem:[%s6233_s2 + $0x38] ss:$12 sps:$4 sm:$0xff]   ;;  %v4863_v25 = vld [vmem:[%s6233_s2 + $0x8] ss:$12 sps:$4 sm:$0xff]  }
   0x9   :  { %3909 = vmatpush3.bf16.msra.mxu1 %v4773_v12  ;;  %v24_v26 = vld [vmem:[%s6234_s0] sm:$0xff]  ;;  %v27_v30 = vld [vmem:[%s6234_s0 + $0x18] sm:$0xff]  ;;  %v25_v34 = vld [vmem:[%s6234_s0 + $0x8] sm:$0xff] }
   0xa   :  { %3910 = vmatprep.subr.bf16.mxu1 %v4670_v1  ;;  %v28_v36 = vld [vmem:[%s6234_s0 + $0x20] sm:$0xff]  ;;  %v26_v57 = vld [vmem:[%s6234_s0 + $0x10] sm:$0xff]  ;;  %v29_v62 = vld [vmem:[%s6234_s0 + $0x28] sm:$0xff] }
   0xb   :  { %195 = vmatpush1.bf16.msra.mxu0 %v4744_v7  ;;  %v4917_v50 = vld [vmem:[%s6235_s4] ss:$0 sm:$0xff] }
   0xc   :  { %196 = vmatprep.subr.bf16.mxu0 %v4750_v8 }
   0xd   :  { %3911 = vmatpush3.bf16.msra.mxu1 %v4792_v15 }
   0xe   :  { %3912 = vmatprep.subr.bf16.mxu1 %v4670_v1 }
   0xf   :  { %197 = vmatpush1.bf16.msra.mxu0 %v4761_v10 }
  0x10   :  { %198 = vmatprep.subr.bf16.mxu0 %v4766_v11 }
  0x11   :  { %3913 = vmatpush3.bf16.msra.mxu1 %v4811_v18 }
  0x12   :  { %3914 = vmatprep.subr.bf16.mxu1 %v4670_v1 }
  0x13   :  { %199 = vmatpush1.bf16.msra.mxu0 %v4779_v13 }
  0x14   :  { %200 = vmatprep.subr.bf16.mxu0 %v4785_v14 }
  0x15   :  { %3915 = vmatpush3.bf16.msra.mxu1 %v4830_v21 }
  0x16   :  { %3916 = vmatprep.subr.bf16.mxu1 %v4670_v1 }
  0x17   :  { %201 = vmatpush1.bf16.msra.mxu0 %v4799_v16 }
  0x18   :  { %202 = vmatprep.subr.bf16.mxu0 %v4805_v17 }
  0x19   :  { %3917 = vmatpush3.bf16.msra.mxu1 %v4844_v23 }
  0x1a   :  { %3918 = vmatprep.subr.bf16.mxu1 %v4670_v1 }
  0x1b   :  { %203 = vmatpush1.bf16.msra.mxu0 %v4818_v19 }
  0x1c   :  { %204 = vmatprep.subr.bf16.mxu0 %v4824_v20 }
  0x1d   :  { %3919 = vmatpush3.bf16.msra.mxu1 %v4852_v24 }
  0x1e   :  { %3920 = vmatprep.subr.bf16.mxu1 %v4670_v1 }
  0x1f   :  { %205 = vmatpush1.bf16.msra.mxu0 %v4837_v22 }
  0x20   :  { %333 = vmatprep.subr.bf16.mxu0 %v4711_v0 }
  0x21   :  { %3921 = vmatpush3.bf16.msra.mxu1 %v4863_v25 }
  0x22   :  { %223 = vmatmul.mubr.bf16.vlgmr.msra.gmra.mxu0 %v4671_v2  ;;  %3926 = vmatprep.subr.bf16.mxu1 %v4670_v1 }
  0x23   :  { %334 = vmatpush1.bf16.msra.mxu0 %v4718_v3  ;;  %365 = vmatprep.mubr.bf16.mxu0 %v4671_v2 }
  0x24   :  { %335 = vmatprep.subr.bf16.mxu0 %v4726_v4  ;;  %3923 = vmatmul.mubr.bf16.vlgmr.msra.gmra.mxu1 %v4671_v2 }
  0x25   :  { %3927 = vmatpush3.bf16.msra.mxu1 %v4755_v9  ;;  %3942 = vmatprep.mubr.msk.bf16.mxu1 %vm4672_vm0, %v4670_v1 }
  0x26   :  { %3928 = vmatprep.subr.bf16.mxu1 %v4670_v1 }
  0x27   :  { %336 = vmatpush1.bf16.msra.mxu0 %v4732_v5 }
  0x28   :  { %337 = vmatprep.subr.bf16.mxu0 %v4738_v6 }
  0x29   :  { %3929 = vmatpush3.bf16.msra.mxu1 %v4773_v12 }
  0x2a   :  { %3930 = vmatprep.subr.bf16.mxu1 %v4670_v1 }
  0x2b   :  { %338 = vmatpush1.bf16.msra.mxu0 %v4744_v7 }
  0x2c   :  { %339 = vmatprep.subr.bf16.mxu0 %v4750_v8 }
  0x2d   :  { %3931 = vmatpush3.bf16.msra.mxu1 %v4792_v15 }
  0x2e   :  { %3932 = vmatprep.subr.bf16.mxu1 %v4670_v1 }
  0x2f   :  { %340 = vmatpush1.bf16.msra.mxu0 %v4761_v10 }
  0x30   :  { %341 = vmatprep.subr.bf16.mxu0 %v4766_v11 }
  0x31   :  { %3933 = vmatpush3.bf16.msra.mxu1 %v4811_v18 }
  0x32   :  { %3934 = vmatprep.subr.bf16.mxu1 %v4670_v1 }
  0x33   :  { %342 = vmatpush1.bf16.msra.mxu0 %v4779_v13 }
  0x34   :  { %343 = vmatprep.subr.bf16.mxu0 %v4785_v14 }
  0x35   :  { %3935 = vmatpush3.bf16.msra.mxu1 %v4830_v21 }
  0x36   :  { %3936 = vmatprep.subr.bf16.mxu1 %v4670_v1 }
  0x37   :  { %344 = vmatpush1.bf16.msra.mxu0 %v4799_v16 }
  0x38   :  { %345 = vmatprep.subr.bf16.mxu0 %v4805_v17 }
  0x39   :  { %3937 = vmatpush3.bf16.msra.mxu1 %v4844_v23 }
  0x3a   :  { %3938 = vmatprep.subr.bf16.mxu1 %v4670_v1 }
  0x3b   :  { %346 = vmatpush1.bf16.msra.mxu0 %v4818_v19 }
  0x3c   :  { %347 = vmatprep.subr.bf16.mxu0 %v4824_v20 }
  0x3d   :  { %3939 = vmatpush3.bf16.msra.mxu1 %v4852_v24 }
  0x3e   :  { %3940 = vmatprep.subr.bf16.mxu1 %v4670_v1 }
  0x3f   :  { %348 = vmatpush1.bf16.msra.mxu0 %v4837_v22 }
  0x40   :  { %469 = vmatprep.subr.bf16.mxu0 %v4711_v0 }
  0x41   :  { %3941 = vmatpush3.bf16.msra.mxu1 %v4863_v25 }
  0x42   :  { %3946 = vmatprep.subr.bf16.mxu1 %v4670_v1 }
  0xe2   :  { %v224_v27 = vpop.f32.mrf.mxu0 }
  0xe3   :  { %v274_v28 = vadd.f32 %v224_v27, %v24_v26 }
  0xe4   :  { %v226_v29 = vpop.f32.mrf.mxu0  ;;  %v267_v39 = vpop.f32.mrf.mxu1 }
  0xe5   :  { %v3445_v31 = vmul.f32 -1.442695, %v274_v28  ;;  %v288_v38 = vadd.f32 %v226_v29, %v25_v34  ;;  %v309_v53 = vadd.f32 %v4917_v50, %v267_v39 }
  0xe6   :  { %v228_v32 = vpop.f32.mrf.mxu0  ;;  %v3924_v41 = vpop.f32.mrf.mxu1 }
  0xe7   :  { %4345 = vpow2.f32 %v3445_v31  ;;  %v275_v33 = vadd.f32 %v228_v32, %v27_v30  ;;  %v3447_v42 = vmul.f32 -1.442695, %v288_v38 }
  0xe8   :  { %v230_v37 = vpop.f32.mrf.mxu0  ;;  %v270_v43 = vpop.f32.mrf.mxu1 }
  0xe9   :  { %v3446_v35 = vmul.f32 -1.442695, %v275_v33  ;;  %v289_v40 = vadd.f32 %v230_v37, %v28_v36  ;;  %v310_v60 = vadd.f32 %v4917_v50, %v270_v43 }
  0xea   :  { %v3925_v45 = vpop.f32.mrf.mxu1 }
  0xeb   :  { %4347 = vpow2.f32 %v3446_v35  ;;  %v3448_v44 = vmul.f32 -1.442695, %v289_v40  ;;  %v3450_v40 = vld [vmem:[%s6234_s0 + $0x30] sm:$0xff] }
  0xec   :  { %4349 = vpow2.f32 %v3447_v42 }
  0xed   :  { %4351 = vpow2.f32 %v3448_v44 }
  0xf4   :  { %v4346_v46 = vpop.eup %4345 }
  0xf5   :  { %v282_v47 = vadd.f32 1.0, %v4346_v46  ;;  %v3453_v46 = vld [vmem:[%s6234_s0 + $0x48] sm:$0xff] }
  0xf7   :  { %4353 = vrcp.f32 %v282_v47 }
  0xf8   :  { %v4348_v48 = vpop.eup %4347 }
  0xf9   :  { %v283_v49 = vadd.f32 1.0, %v4348_v48  ;;  %v4350_v51 = vpop.eup %4349 }
  0xfa   :  { %v4352_v52 = vpop.eup %4351  ;;  %v296_v54 = vadd.f32 1.0, %v4350_v51 }
  0xfb   :  { %4355 = vrcp.f32 %v283_v49  ;;  %v297_v56 = vadd.f32 1.0, %v4352_v52  ;;  %v3451_v52 = vld [vmem:[%s6234_s0 + $0x38] sm:$0xff] }
  0xfc   :  { %4357 = vrcp.f32 %v296_v54 }
  0xfd   :  { %4359 = vrcp.f32 %v297_v56 }
 0x104   :  { %v4354_v55 = vpop.eup %4353 }
 0x105   :  { %v311_v58 = vmul.f32 %v4354_v55, %v309_v53  ;;  %v3454_v55 = vld [vmem:[%s6234_s0 + $0x50] sm:$0xff] }
 0x107   :  { %v313_v59 = vadd.f32 %v311_v58, %v26_v57 }
 0x108   :  { %v4356_v61 = vpop.eup %4355 }
 0x109   :  { %4361 = vtanh.f32 %v313_v59  ;;  %v312_v63 = vmul.f32 %v4356_v61, %v310_v60  ;;  %v4358_v27 = vpop.eup %4357 }
 0x10a   :  { %v4360_v28 = vpop.eup %4359  ;;  %v317_v30 = vsub.f32 1.0, %v4358_v27  ;;  %v321_v35 = vmul.f32 0.0, %v4358_v27 }
 0x10b   :  { %v314_v26 = vadd.f32 %v312_v63, %v29_v62  ;;  %v318_v31 = vsub.f32 1.0, %v4360_v28  ;;  %v322_v36 = vmul.f32 0.0, %v4360_v28 }
 0x10d   :  { %4363 = vtanh.f32 %v314_v26 }
 0x116   :  { %v4362_v29 = vpop.eup %4361 }
 0x117   :  { %v319_v32 = vmul.f32 %v4362_v29, %v317_v30 }
 0x119   :  { %v4927_v37 = vadd.f32 %v321_v35, %v319_v32  ;;  %v3452_v32 = vld [vmem:[%s6234_s0 + $0x40] sm:$0xff] }
 0x11a   :  { %v4364_v33 = vpop.eup %4363 }
 0x11b   :  { %v320_v34 = vmul.f32 %v4364_v33, %v318_v31 }
 0x11d   :  { %v4929_v38 = vadd.f32 %v322_v36, %v320_v34 }
 0x11f   :  { %v332_v39 = vpack.c.bf16 %v4929_v38, %v4927_v37 }
 0x121   :  { %366 = vmatmul.mubr.bf16.vlgmr.msra.gmra.mxu0 %v332_v39  ;;  %3943 = vmatmul.mubr.bf16.vlgmr.msra.gmra.mxu1 %v332_v39 }
 0x122   :  { %470 = vmatpush1.bf16.msra.mxu0 %v4718_v3  ;;  %3947 = vmatpush3.bf16.msra.mxu1 %v4755_v9 }
 0x123   :  { %471 = vmatprep.subr.bf16.mxu0 %v4726_v4  ;;  %3948 = vmatprep.subr.bf16.mxu1 %v4670_v1 }
 0x124   :  { %501 = vmatprep.mubr.bf16.mxu0 %v4671_v2  ;;  %3962 = vmatprep.mubr.msk.bf16.mxu1 %vm4672_vm0, %v4670_v1 }
 0x126   :  { %472 = vmatpush1.bf16.msra.mxu0 %v4732_v5  ;;  %3949 = vmatpush3.bf16.msra.mxu1 %v4773_v12 }
 0x127   :  { %473 = vmatprep.subr.bf16.mxu0 %v4738_v6  ;;  %3950 = vmatprep.subr.bf16.mxu1 %v4670_v1 }
 0x12a   :  { %474 = vmatpush1.bf16.msra.mxu0 %v4744_v7  ;;  %3951 = vmatpush3.bf16.msra.mxu1 %v4792_v15 }
 0x12b   :  { %475 = vmatprep.subr.bf16.mxu0 %v4750_v8  ;;  %3952 = vmatprep.subr.bf16.mxu1 %v4670_v1 }
 0x12e   :  { %476 = vmatpush1.bf16.msra.mxu0 %v4761_v10  ;;  %3953 = vmatpush3.bf16.msra.mxu1 %v4811_v18 }
 0x12f   :  { %477 = vmatprep.subr.bf16.mxu0 %v4766_v11  ;;  %3954 = vmatprep.subr.bf16.mxu1 %v4670_v1 }
 0x132   :  { %478 = vmatpush1.bf16.msra.mxu0 %v4779_v13  ;;  %3955 = vmatpush3.bf16.msra.mxu1 %v4830_v21 }
 0x133   :  { %479 = vmatprep.subr.bf16.mxu0 %v4785_v14  ;;  %3956 = vmatprep.subr.bf16.mxu1 %v4670_v1 }
 0x136   :  { %480 = vmatpush1.bf16.msra.mxu0 %v4799_v16  ;;  %3957 = vmatpush3.bf16.msra.mxu1 %v4844_v23 }
 0x137   :  { %481 = vmatprep.subr.bf16.mxu0 %v4805_v17  ;;  %3958 = vmatprep.subr.bf16.mxu1 %v4670_v1 }
 0x13a   :  { %482 = vmatpush1.bf16.msra.mxu0 %v4818_v19  ;;  %3959 = vmatpush3.bf16.msra.mxu1 %v4852_v24 }
 0x13b   :  { %483 = vmatprep.subr.bf16.mxu0 %v4824_v20  ;;  %3960 = vmatprep.subr.bf16.mxu1 %v4670_v1 }
 0x13e   :  { %484 = vmatpush1.bf16.msra.mxu0 %v4837_v22  ;;  %3961 = vmatpush3.bf16.msra.mxu1 %v4863_v25 }
 0x13f   :  { %605 = vmatprep.subr.bf16.mxu0 %v4711_v0  ;;  %3966 = vmatprep.subr.bf16.mxu1 %v4670_v1 }
 0x1e1   :  { %v367_v41 = vpop.f32.mrf.mxu0  ;;  %v410_v42 = vpop.f32.mrf.mxu1 }
 0x1e2   :  { %v417_v43 = vadd.f32 %v3450_v40, %v367_v41  ;;  %v445_v29 = vadd.f32 %v4917_v50, %v410_v42  ;;  %v3455_v40 = vld [vmem:[%s6234_s0 + $0x58] sm:$0xff] }
 0x1e3   :  { %v369_v44 = vpop.f32.mrf.mxu0  ;;  %v3944_v45 = vpop.f32.mrf.mxu1 }
 0x1e4   :  { %v3456_v47 = vmul.f32 -1.442695, %v417_v43  ;;  %v431_v57 = vadd.f32 %v3451_v52, %v369_v44 }
 0x1e5   :  { %v371_v48 = vpop.f32.mrf.mxu0  ;;  %v413_v49 = vpop.f32.mrf.mxu1 }
 0x1e6   :  { %4365 = vpow2.f32 %v3456_v47  ;;  %v418_v51 = vadd.f32 %v3453_v46, %v371_v48  ;;  %v3458_v59 = vmul.f32 -1.442695, %v431_v57  ;;  %v446_v36 = vadd.f32 %v4917_v50, %v413_v49 }
 0x1e7   :  { %v3945_v53 = vpop.f32.mrf.mxu1  ;;  %v373_v56 = vpop.f32.mrf.mxu0 }
 0x1e8   :  { %v3457_v54 = vmul.f32 -1.442695, %v418_v51  ;;  %v432_v58 = vadd.f32 %v3454_v55, %v373_v56 }
 0x1ea   :  { %4367 = vpow2.f32 %v3457_v54  ;;  %v3459_v60 = vmul.f32 -1.442695, %v432_v58 }
 0x1eb   :  { %4369 = vpow2.f32 %v3458_v59 }
 0x1ec   :  { %4371 = vpow2.f32 %v3459_v60 }
 0x1f3   :  { %v4366_v61 = vpop.eup %4365 }
 0x1f4   :  { %v425_v62 = vadd.f32 1.0, %v4366_v61  ;;  %v3463_v61 = vld [vmem:[%s6234_s0 + $0x78] sm:$0xff] }
 0x1f6   :  { %4373 = vrcp.f32 %v425_v62 }
 0x1f7   :  { %v4368_v63 = vpop.eup %4367 }
 0x1f8   :  { %v426_v26 = vadd.f32 1.0, %v4368_v63  ;;  %v4370_v27 = vpop.eup %4369 }
 0x1f9   :  { %v4372_v28 = vpop.eup %4371  ;;  %v439_v30 = vadd.f32 1.0, %v4370_v27 }
 0x1fa   :  { %4375 = vrcp.f32 %v426_v26  ;;  %v440_v33 = vadd.f32 1.0, %v4372_v28  ;;  %v3461_v28 = vld [vmem:[%s6234_s0 + $0x68] sm:$0xff] }
 0x1fb   :  { %4377 = vrcp.f32 %v439_v30 }
 0x1fc   :  { %4379 = vrcp.f32 %v440_v33 }
 0x203   :  { %v4374_v31 = vpop.eup %4373 }
 0x204   :  { %v447_v34 = vmul.f32 %v4374_v31, %v445_v29  ;;  %v3464_v31 = vld [vmem:[%s6234_s0 + $0x80] sm:$0xff] }
 0x206   :  { %v449_v35 = vadd.f32 %v3452_v32, %v447_v34 }
 0x207   :  { %v4376_v39 = vpop.eup %4375 }
 0x208   :  { %4381 = vtanh.f32 %v449_v35  ;;  %v448_v41 = vmul.f32 %v4376_v39, %v446_v36  ;;  %v4378_v43 = vpop.eup %4377 }
 0x209   :  { %v4380_v44 = vpop.eup %4379  ;;  %v453_v46 = vsub.f32 1.0, %v4378_v43  ;;  %v457_v49 = vmul.f32 %v4378_v43, %v4927_v37  ;;  %v3460_v37 = vld [vmem:[%s6234_s0 + $0x60] sm:$0xff] }
 0x20a   :  { %v450_v42 = vadd.f32 %v3455_v40, %v448_v41  ;;  %v454_v47 = vsub.f32 1.0, %v4380_v44  ;;  %v458_v53 = vmul.f32 %v4380_v44, %v4929_v38 }
 0x20c   :  { %4383 = vtanh.f32 %v450_v42 }
 0x215   :  { %v4382_v45 = vpop.eup %4381 }
 0x216   :  { %v455_v48 = vmul.f32 %v4382_v45, %v453_v46 }
 0x218   :  { %v4990_v54 = vadd.f32 %v457_v49, %v455_v48  ;;  %v3462_v48 = vld [vmem:[%s6234_s0 + $0x70] sm:$0xff] }
 0x219   :  { %v4384_v51 = vpop.eup %4383 }
 0x21a   :  { %v456_v52 = vmul.f32 %v4384_v51, %v454_v47 }
 0x21c   :  { %v4992_v55 = vadd.f32 %v458_v53, %v456_v52 }
 0x21e   :  { %v468_v56 = vpack.c.bf16 %v4992_v55, %v4990_v54 }
 0x220   :  { %502 = vmatmul.mubr.bf16.vlgmr.msra.gmra.mxu0 %v468_v56  ;;  %3963 = vmatmul.mubr.bf16.vlgmr.msra.gmra.mxu1 %v468_v56 }
 0x221   :  { %606 = vmatpush1.bf16.msra.mxu0 %v4718_v3  ;;  %3967 = vmatpush3.bf16.msra.mxu1 %v4755_v9 }
 0x222   :  { %607 = vmatprep.subr.bf16.mxu0 %v4726_v4  ;;  %3968 = vmatprep.subr.bf16.mxu1 %v4670_v1 }
 0x223   :  { %637 = vmatprep.mubr.bf16.mxu0 %v4671_v2  ;;  %3982 = vmatprep.mubr.msk.bf16.mxu1 %vm4672_vm0, %v4670_v1 }
 0x225   :  { %608 = vmatpush1.bf16.msra.mxu0 %v4732_v5  ;;  %3969 = vmatpush3.bf16.msra.mxu1 %v4773_v12 }
 0x226   :  { %609 = vmatprep.subr.bf16.mxu0 %v4738_v6  ;;  %3970 = vmatprep.subr.bf16.mxu1 %v4670_v1 }
 0x229   :  { %610 = vmatpush1.bf16.msra.mxu0 %v4744_v7  ;;  %3971 = vmatpush3.bf16.msra.mxu1 %v4792_v15 }
 0x22a   :  { %611 = vmatprep.subr.bf16.mxu0 %v4750_v8  ;;  %3972 = vmatprep.subr.bf16.mxu1 %v4670_v1 }
 0x22d   :  { %612 = vmatpush1.bf16.msra.mxu0 %v4761_v10  ;;  %3973 = vmatpush3.bf16.msra.mxu1 %v4811_v18 }
 0x22e   :  { %613 = vmatprep.subr.bf16.mxu0 %v4766_v11  ;;  %3974 = vmatprep.subr.bf16.mxu1 %v4670_v1 }
 0x231   :  { %614 = vmatpush1.bf16.msra.mxu0 %v4779_v13  ;;  %3975 = vmatpush3.bf16.msra.mxu1 %v4830_v21 }
 0x232   :  { %615 = vmatprep.subr.bf16.mxu0 %v4785_v14  ;;  %3976 = vmatprep.subr.bf16.mxu1 %v4670_v1 }
 0x235   :  { %616 = vmatpush1.bf16.msra.mxu0 %v4799_v16  ;;  %3977 = vmatpush3.bf16.msra.mxu1 %v4844_v23 }
 0x236   :  { %617 = vmatprep.subr.bf16.mxu0 %v4805_v17  ;;  %3978 = vmatprep.subr.bf16.mxu1 %v4670_v1 }
 0x239   :  { %618 = vmatpush1.bf16.msra.mxu0 %v4818_v19  ;;  %3979 = vmatpush3.bf16.msra.mxu1 %v4852_v24 }
 0x23a   :  { %619 = vmatprep.subr.bf16.mxu0 %v4824_v20  ;;  %3980 = vmatprep.subr.bf16.mxu1 %v4670_v1 }
 0x23d   :  { %620 = vmatpush1.bf16.msra.mxu0 %v4837_v22  ;;  %3981 = vmatpush3.bf16.msra.mxu1 %v4863_v25 }
 0x23e   :  { %741 = vmatprep.subr.bf16.mxu0 %v4711_v0  ;;  %3986 = vmatprep.subr.bf16.mxu1 %v4670_v1 }
 0x2e0   :  { %v503_v38 = vpop.f32.mrf.mxu0  ;;  %v546_v57 = vpop.f32.mrf.mxu1 }
 0x2e1   :  { %v553_v58 = vadd.f32 %v3460_v37, %v503_v38  ;;  %v581_v45 = vadd.f32 %v4917_v50, %v546_v57  ;;  %v3465_v37 = vld [vmem:[%s6234_s0 + $0x88] sm:$0xff] }
 0x2e2   :  { %v505_v59 = vpop.f32.mrf.mxu0  ;;  %v3964_v60 = vpop.f32.mrf.mxu1 }
 0x2e3   :  { %v3466_v62 = vmul.f32 -1.442695, %v553_v58  ;;  %v567_v33 = vadd.f32 %v3461_v28, %v505_v59 }
 0x2e4   :  { %v507_v63 = vpop.f32.mrf.mxu0  ;;  %v549_v26 = vpop.f32.mrf.mxu1 }
 0x2e5   :  { %4385 = vpow2.f32 %v3466_v62  ;;  %v554_v27 = vadd.f32 %v3463_v61, %v507_v63  ;;  %v3468_v35 = vmul.f32 -1.442695, %v567_v33  ;;  %v582_v53 = vadd.f32 %v4917_v50, %v549_v26 }
 0x2e6   :  { %v3965_v29 = vpop.f32.mrf.mxu1  ;;  %v509_v32 = vpop.f32.mrf.mxu0 }
 0x2e7   :  { %v3467_v30 = vmul.f32 -1.442695, %v554_v27  ;;  %v568_v34 = vadd.f32 %v3464_v31, %v509_v32 }
 0x2e9   :  { %4387 = vpow2.f32 %v3467_v30  ;;  %v3469_v36 = vmul.f32 -1.442695, %v568_v34 }
 0x2ea   :  { %4389 = vpow2.f32 %v3468_v35 }
 0x2eb   :  { %4391 = vpow2.f32 %v3469_v36 }
 0x2f2   :  { %v4386_v39 = vpop.eup %4385 }
 0x2f3   :  { %v561_v40 = vadd.f32 1.0, %v4386_v39  ;;  %v3473_v39 = vld [vmem:[%s6234_s0 + $0xa8] sm:$0xff] }
 0x2f5   :  { %4393 = vrcp.f32 %v561_v40 }
 0x2f6   :  { %v4388_v41 = vpop.eup %4387 }
 0x2f7   :  { %v562_v42 = vadd.f32 1.0, %v4388_v41  ;;  %v4390_v43 = vpop.eup %4389 }
 0x2f8   :  { %v4392_v44 = vpop.eup %4391  ;;  %v575_v46 = vadd.f32 1.0, %v4390_v43  ;;  %v3471_v43 = vld [vmem:[%s6234_s0 + $0x98] sm:$0xff] }
 0x2f9   :  { %4395 = vrcp.f32 %v562_v42  ;;  %v576_v51 = vadd.f32 1.0, %v4392_v44 }
 0x2fa   :  { %4397 = vrcp.f32 %v575_v46  ;;  %v3474_v46 = vld [vmem:[%s6234_s0 + $0xb0] sm:$0xff] }
 0x2fb   :  { %4399 = vrcp.f32 %v576_v51 }
 0x302   :  { %v4394_v47 = vpop.eup %4393 }
 0x303   :  { %v583_v52 = vmul.f32 %v4394_v47, %v581_v45 }
 0x305   :  { %v585_v49 = vadd.f32 %v3462_v48, %v583_v52 }
 0x306   :  { %v4396_v56 = vpop.eup %4395 }
 0x307   :  { %4401 = vtanh.f32 %v585_v49  ;;  %v584_v38 = vmul.f32 %v4396_v56, %v582_v53  ;;  %v4398_v58 = vpop.eup %4397 }
 0x308   :  { %v4400_v59 = vpop.eup %4399  ;;  %v589_v61 = vsub.f32 1.0, %v4398_v58  ;;  %v593_v26 = vmul.f32 %v4398_v58, %v4990_v54  ;;  %v3470_v54 = vld [vmem:[%s6234_s0 + $0x90] sm:$0xff] }
 0x309   :  { %v586_v57 = vadd.f32 %v3465_v37, %v584_v38  ;;  %v590_v62 = vsub.f32 1.0, %v4400_v59  ;;  %v594_v29 = vmul.f32 %v4400_v59, %v4992_v55 }
 0x30b   :  { %4403 = vtanh.f32 %v586_v57 }
 0x314   :  { %v4402_v60 = vpop.eup %4401 }
 0x315   :  { %v591_v63 = vmul.f32 %v4402_v60, %v589_v61 }
 0x317   :  { %v5053_v30 = vadd.f32 %v593_v26, %v591_v63 }
 0x318   :  { %v4404_v27 = vpop.eup %4403 }
 0x319   :  { %v592_v28 = vmul.f32 %v4404_v27, %v590_v62  ;;  %v3472_v62 = vld [vmem:[%s6234_s0 + $0xa0] sm:$0xff] }
 0x31b   :  { %v5055_v31 = vadd.f32 %v594_v29, %v592_v28 }
 0x31d   :  { %v604_v32 = vpack.c.bf16 %v5055_v31, %v5053_v30 }
 0x31f   :  { %638 = vmatmul.mubr.bf16.vlgmr.msra.gmra.mxu0 %v604_v32  ;;  %3983 = vmatmul.mubr.bf16.vlgmr.msra.gmra.mxu1 %v604_v32  ;;  %v3475_v32 = vld [vmem:[%s6234_s0 + $0xb8] sm:$0xff] }
 0x320   :  { %742 = vmatpush1.bf16.msra.mxu0 %v4718_v3  ;;  %3987 = vmatpush3.bf16.msra.mxu1 %v4755_v9 }
 0x321   :  { %743 = vmatprep.subr.bf16.mxu0 %v4726_v4  ;;  %3988 = vmatprep.subr.bf16.mxu1 %v4670_v1 }
 0x322   :  { %773 = vmatprep.mubr.bf16.mxu0 %v4671_v2  ;;  %4002 = vmatprep.mubr.msk.bf16.mxu1 %vm4672_vm0, %v4670_v1 }
 0x324   :  { %744 = vmatpush1.bf16.msra.mxu0 %v4732_v5  ;;  %3989 = vmatpush3.bf16.msra.mxu1 %v4773_v12 }
 0x325   :  { %745 = vmatprep.subr.bf16.mxu0 %v4738_v6  ;;  %3990 = vmatprep.subr.bf16.mxu1 %v4670_v1 }
 0x328   :  { %746 = vmatpush1.bf16.msra.mxu0 %v4744_v7  ;;  %3991 = vmatpush3.bf16.msra.mxu1 %v4792_v15 }
 0x329   :  { %747 = vmatprep.subr.bf16.mxu0 %v4750_v8  ;;  %3992 = vmatprep.subr.bf16.mxu1 %v4670_v1 }
 0x32c   :  { %748 = vmatpush1.bf16.msra.mxu0 %v4761_v10  ;;  %3993 = vmatpush3.bf16.msra.mxu1 %v4811_v18 }
 0x32d   :  { %749 = vmatprep.subr.bf16.mxu0 %v4766_v11  ;;  %3994 = vmatprep.subr.bf16.mxu1 %v4670_v1 }
 0x330   :  { %750 = vmatpush1.bf16.msra.mxu0 %v4779_v13  ;;  %3995 = vmatpush3.bf16.msra.mxu1 %v4830_v21 }
 0x331   :  { %751 = vmatprep.subr.bf16.mxu0 %v4785_v14  ;;  %3996 = vmatprep.subr.bf16.mxu1 %v4670_v1 }
 0x334   :  { %752 = vmatpush1.bf16.msra.mxu0 %v4799_v16  ;;  %3997 = vmatpush3.bf16.msra.mxu1 %v4844_v23 }
 0x335   :  { %753 = vmatprep.subr.bf16.mxu0 %v4805_v17  ;;  %3998 = vmatprep.subr.bf16.mxu1 %v4670_v1 }
 0x338   :  { %754 = vmatpush1.bf16.msra.mxu0 %v4818_v19  ;;  %3999 = vmatpush3.bf16.msra.mxu1 %v4852_v24 }
 0x339   :  { %755 = vmatprep.subr.bf16.mxu0 %v4824_v20  ;;  %4000 = vmatprep.subr.bf16.mxu1 %v4670_v1 }
 0x33c   :  { %756 = vmatpush1.bf16.msra.mxu0 %v4837_v22  ;;  %4001 = vmatpush3.bf16.msra.mxu1 %v4863_v25 }
 0x33d   :  { %877 = vmatprep.subr.bf16.mxu0 %v4711_v0  ;;  %4006 = vmatprep.subr.bf16.mxu1 %v4670_v1 }
 0x3df   :  { %v639_v55 = vpop.f32.mrf.mxu0  ;;  %v682_v33 = vpop.f32.mrf.mxu1 }
 0x3e0   :  { %v689_v34 = vadd.f32 %v3470_v54, %v639_v55  ;;  %v717_v59 = vadd.f32 %v4917_v50, %v682_v33 }
 0x3e1   :  { %v641_v35 = vpop.f32.mrf.mxu0  ;;  %v3984_v36 = vpop.f32.mrf.mxu1 }
 0x3e2   :  { %v3476_v40 = vmul.f32 -1.442695, %v689_v34  ;;  %v703_v48 = vadd.f32 %v3471_v43, %v641_v35 }
 0x3e3   :  { %v643_v41 = vpop.f32.mrf.mxu0  ;;  %v685_v42 = vpop.f32.mrf.mxu1 }
 0x3e4   :  { %4405 = vpow2.f32 %v3476_v40  ;;  %v690_v0 = vadd.f32 %v3473_v39, %v643_v41  ;;  %v3478_v52 = vmul.f32 -1.442695, %v703_v48  ;;  %v718_v26 = vadd.f32 %v4917_v50, %v685_v42 }
 0x3e5   :  { %v3985_v44 = vpop.f32.mrf.mxu1  ;;  %v645_v47 = vpop.f32.mrf.mxu0 }
 0x3e6   :  { %v3477_v45 = vmul.f32 -1.442695, %v690_v0  ;;  %v704_v51 = vadd.f32 %v3474_v46, %v645_v47 }
 0x3e8   :  { %4407 = vpow2.f32 %v3477_v45  ;;  %v3479_v49 = vmul.f32 -1.442695, %v704_v51 }
 0x3e9   :  { %4409 = vpow2.f32 %v3478_v52 }
 0x3ea   :  { %4411 = vpow2.f32 %v3479_v49 }
 0x3f1   :  { %v4406_v53 = vpop.eup %4405 }
 0x3f2   :  { %v697_v56 = vadd.f32 1.0, %v4406_v53  ;;  %v3482_v53 = vld [vmem:[%s6234_s0 + $0xd0] sm:$0xff] }
 0x3f4   :  { %4413 = vrcp.f32 %v697_v56 }
 0x3f5   :  { %v4408_v37 = vpop.eup %4407 }
 0x3f6   :  { %v698_v38 = vadd.f32 1.0, %v4408_v37  ;;  %v4410_v57 = vpop.eup %4409 }
 0x3f7   :  { %v4412_v58 = vpop.eup %4411  ;;  %v711_v60 = vadd.f32 1.0, %v4410_v57 }
 0x3f8   :  { %4415 = vrcp.f32 %v698_v38  ;;  %v712_v63 = vadd.f32 1.0, %v4412_v58 }
 0x3f9   :  { %4417 = vrcp.f32 %v711_v60 }
 0x3fa   :  { %4419 = vrcp.f32 %v712_v63 }
 0x401   :  { %v4414_v61 = vpop.eup %4413 }
 0x402   :  { %v719_v27 = vmul.f32 %v4414_v61, %v717_v59  ;;  %v3485_v59 = vld [vmem:[%s6234_s0 + $0xe8] sm:$0xff] }
 0x404   :  { %v721_v28 = vadd.f32 %v3472_v62, %v719_v27 }
 0x405   :  { %v4416_v29 = vpop.eup %4415 }
 0x406   :  { %4421 = vtanh.f32 %v721_v28  ;;  %v720_v54 = vmul.f32 %v4416_v29, %v718_v26  ;;  %v4418_v33 = vpop.eup %4417 }
 0x407   :  { %v4420_v34 = vpop.eup %4419  ;;  %v725_v36 = vsub.f32 1.0, %v4418_v33  ;;  %v729_v42 = vmul.f32 %v4418_v33, %v5053_v30 }
 0x408   :  { %v722_v55 = vadd.f32 %v3475_v32, %v720_v54  ;;  %v726_v39 = vsub.f32 1.0, %v4420_v34  ;;  %v730_v43 = vmul.f32 %v4420_v34, %v5055_v31 }
 0x40a   :  { %4423 = vtanh.f32 %v722_v55 }
 0x413   :  { %v4422_v35 = vpop.eup %4421 }
 0x414   :  { %v727_v40 = vmul.f32 %v4422_v35, %v725_v36 }
 0x416   :  { %v5116_v44 = vadd.f32 %v729_v42, %v727_v40  ;;  %v5199_v40 = vld [vmem:[%s6233_s2 + $0xb0] ss:$12 sps:$4 sm:$0xff]   ;;  %v5221_v42 = vld [vmem:[%s6233_s2 + $0x98] ss:$12 sps:$4 sm:$0xff]  }
 0x417   :  { %v4424_v41 = vpop.eup %4423 }
 0x418   :  { %v728_v0 = vmul.f32 %v4424_v41, %v726_v39  ;;  %v5193_v39 = vld [vmem:[%s6233_s2 + $0xa8] ss:$12 sps:$4 sm:$0xff]  }
 0x419   :  { %v5205_v41 = vld [vmem:[%s6233_s2 + $0x94] ss:$12 sps:$4 sm:$0xff]  }
 0x41a   :  { %v5118_v45 = vadd.f32 %v730_v43, %v728_v0  ;;  %v5215_v0 = vld [vmem:[%s6233_s2 + $0x90] ss:$12 sps:$4 sm:$0xff]  }
 0x41b   :  { %v5227_v43 = vld [vmem:[%s6233_s2 + $0x7c] ss:$12 sps:$4 sm:$0xff]  }
 0x41c   :  { %v740_v46 = vpack.c.bf16 %v5118_v45, %v5116_v44 }
 0x41e   :  { %774 = vmatmul.mubr.bf16.vlgmr.msra.gmra.mxu0 %v740_v46  ;;  %4003 = vmatmul.mubr.bf16.vlgmr.msra.gmra.mxu1 %v740_v46  ;;  %v5246_v46 = vld [vmem:[%s6233_s2 + $0x64] ss:$12 sps:$4 sm:$0xff]  }
 0x41f   :  { %878 = vmatpush1.bf16.msra.mxu0 %v4718_v3  ;;  %4007 = vmatpush3.bf16.msra.mxu1 %v4755_v9  ;;  %v5158_v3 = vld [vmem:[%s6233_s2 + $0xac] ss:$12 sps:$4 sm:$0xff]  }
 0x420   :  { %879 = vmatprep.subr.bf16.mxu0 %v4726_v4  ;;  %4008 = vmatprep.subr.bf16.mxu1 %v4670_v1  ;;  %v3480_v4 = vld [vmem:[%s6234_s0 + $0xc0] sm:$0xff] }
 0x421   :  { %909 = vmatprep.mubr.bf16.mxu0 %v4671_v2  ;;  %4022 = vmatprep.mubr.msk.bf16.mxu1 %vm4672_vm0, %v4670_v1 }
 0x423   :  { %880 = vmatpush1.bf16.msra.mxu0 %v4732_v5  ;;  %4009 = vmatpush3.bf16.msra.mxu1 %v4773_v12 }
 0x424   :  { %881 = vmatprep.subr.bf16.mxu0 %v4738_v6  ;;  %4010 = vmatprep.subr.bf16.mxu1 %v4670_v1 }
 0x427   :  { %882 = vmatpush1.bf16.msra.mxu0 %v4744_v7  ;;  %4011 = vmatpush3.bf16.msra.mxu1 %v4792_v15  ;;  %v3481_v15 = vld [vmem:[%s6234_s0 + $0xc8] sm:$0xff] }
 0x428   :  { %883 = vmatprep.subr.bf16.mxu0 %v4750_v8  ;;  %4012 = vmatprep.subr.bf16.mxu1 %v4670_v1 }
 0x42b   :  { %884 = vmatpush1.bf16.msra.mxu0 %v4761_v10  ;;  %4013 = vmatpush3.bf16.msra.mxu1 %v4811_v18  ;;  %v3483_v10 = vld [vmem:[%s6234_s0 + $0xd8] sm:$0xff]  ;;  %v3484_v18 = vld [vmem:[%s6234_s0 + $0xe0] sm:$0xff] }
 0x42c   :  { %885 = vmatprep.subr.bf16.mxu0 %v4766_v11  ;;  %4014 = vmatprep.subr.bf16.mxu1 %v4670_v1 }
 0x42f   :  { %886 = vmatpush1.bf16.msra.mxu0 %v4779_v13  ;;  %4015 = vmatpush3.bf16.msra.mxu1 %v4830_v21 }
 0x430   :  { %887 = vmatprep.subr.bf16.mxu0 %v4785_v14  ;;  %4016 = vmatprep.subr.bf16.mxu1 %v4670_v1 }
 0x433   :  { %888 = vmatpush1.bf16.msra.mxu0 %v4799_v16  ;;  %4017 = vmatpush3.bf16.msra.mxu1 %v4844_v23 }
 0x434   :  { %889 = vmatprep.subr.bf16.mxu0 %v4805_v17  ;;  %4018 = vmatprep.subr.bf16.mxu1 %v4670_v1 }
 0x437   :  { %890 = vmatpush1.bf16.msra.mxu0 %v4818_v19  ;;  %4019 = vmatpush3.bf16.msra.mxu1 %v4852_v24 }
 0x438   :  { %891 = vmatprep.subr.bf16.mxu0 %v4824_v20  ;;  %4020 = vmatprep.subr.bf16.mxu1 %v4670_v1 }
 0x43b   :  { %892 = vmatpush1.bf16.msra.mxu0 %v4837_v22  ;;  %4021 = vmatpush3.bf16.msra.mxu1 %v4863_v25 }
 0x43c   :  { %1013 = vmatprep.subr.bf16.mxu0 %v5158_v3  ;;  %4026 = vmatprep.subr.bf16.mxu1 %v4670_v1 }
 0x4de   :  { %v775_v5 = vpop.f32.mrf.mxu0  ;;  %v818_v6 = vpop.f32.mrf.mxu1 }
 0x4df   :  { %v825_v7 = vadd.f32 %v3480_v4, %v775_v5  ;;  %v853_v51 = vadd.f32 %v4917_v50, %v818_v6  ;;  %v5253_v4 = vld [vmem:[%s6233_s2 + $0x60] ss:$12 sps:$4 sm:$0xff]   ;;  %v5259_v5 = vld [vmem:[%s6233_s2 + $0x68] ss:$12 sps:$4 sm:$0xff]  }
 0x4e0   :  { %v777_v8 = vpop.f32.mrf.mxu0  ;;  %v4004_v9 = vpop.f32.mrf.mxu1  ;;  %v5265_v6 = vld [vmem:[%s6233_s2 + $0x4c] ss:$12 sps:$4 sm:$0xff]  }
 0x4e1   :  { %v3486_v11 = vmul.f32 -1.442695, %v825_v7  ;;  %v839_v20 = vadd.f32 %v3481_v15, %v777_v8  ;;  %v5272_v7 = vld [vmem:[%s6233_s2 + $0x48] ss:$12 sps:$4 sm:$0xff]   ;;  %v5278_v8 = vld [vmem:[%s6233_s2 + $0x50] ss:$12 sps:$4 sm:$0xff]  }
 0x4e2   :  { %v779_v12 = vpop.f32.mrf.mxu0  ;;  %v821_v13 = vpop.f32.mrf.mxu1  ;;  %v5284_v9 = vld [vmem:[%s6233_s2 + $0x34] ss:$12 sps:$4 sm:$0xff]   ;;  %v5322_v15 = vld [vmem:[%s6233_s2 + $0x4] ss:$12 sps:$4 sm:$0xff]  }
 0x4e3   :  { %4425 = vpow2.f32 %v3486_v11  ;;  %v826_v14 = vadd.f32 %v3483_v10, %v779_v12  ;;  %v3488_v22 = vmul.f32 -1.442695, %v839_v20  ;;  %v854_v57 = vadd.f32 %v4917_v50, %v821_v13  ;;  %v5291_v10 = vld [vmem:[%s6233_s2 + $0x30] ss:$12 sps:$4 sm:$0xff]   ;;  %v5297_v11 = vld [vmem:[%s6233_s2 + $0x38] ss:$12 sps:$4 sm:$0xff]  }
 0x4e4   :  { %v4005_v16 = vpop.f32.mrf.mxu1  ;;  %v781_v19 = vpop.f32.mrf.mxu0  ;;  %v5303_v12 = vld [vmem:[%s6233_s2 + $0x1c] ss:$12 sps:$4 sm:$0xff]   ;;  %v5310_v13 = vld [vmem:[%s6233_s2 + $0x18] ss:$12 sps:$4 sm:$0xff]  }
 0x4e5   :  { %v3487_v17 = vmul.f32 -1.442695, %v826_v14  ;;  %v840_v21 = vadd.f32 %v3484_v18, %v781_v19  ;;  %v5316_v14 = vld [vmem:[%s6233_s2 + $0x20] ss:$12 sps:$4 sm:$0xff]   ;;  %v3490_v18 = vld [vmem:[%s6234_s0 + $0xf0] sm:$0xff] }
 0x4e6   :  { %v5329_v16 = vld [vmem:[%s6233_s2] ss:$12 sps:$4 sm:$0xff]  }
 0x4e7   :  { %4427 = vpow2.f32 %v3487_v17  ;;  %v3489_v23 = vmul.f32 -1.442695, %v840_v21  ;;  %v5335_v17 = vld [vmem:[%s6233_s2 + $0x8] ss:$12 sps:$4 sm:$0xff]  }
 0x4e8   :  { %4429 = vpow2.f32 %v3488_v22 }
 0x4e9   :  { %4431 = vpow2.f32 %v3489_v23 }
 0x4f0   :  { %v4426_v24 = vpop.eup %4425 }
 0x4f1   :  { %v833_v25 = vadd.f32 1.0, %v4426_v24  ;;  %v3493_v24 = vld [vmem:[%s6234_s0 + $0x108] sm:$0xff] }
 0x4f3   :  { %4433 = vrcp.f32 %v833_v25 }
 0x4f4   :  { %v4428_v30 = vpop.eup %4427 }
 0x4f5   :  { %v834_v31 = vadd.f32 1.0, %v4428_v30  ;;  %v4430_v47 = vpop.eup %4429 }
 0x4f6   :  { %v4432_v48 = vpop.eup %4431  ;;  %v847_v52 = vadd.f32 1.0, %v4430_v47  ;;  %v3491_v47 = vld [vmem:[%s6234_s0 + $0xf8] sm:$0xff] }
 0x4f7   :  { %4435 = vrcp.f32 %v834_v31  ;;  %v848_v56 = vadd.f32 1.0, %v4432_v48 }
 0x4f8   :  { %4437 = vrcp.f32 %v847_v52  ;;  %v3494_v52 = vld [vmem:[%s6234_s0 + $0x110] sm:$0xff] }
 0x4f9   :  { %4439 = vrcp.f32 %v848_v56 }
 0x500   :  { %v4434_v49 = vpop.eup %4433 }
 0x501   :  { %v855_v37 = vmul.f32 %v4434_v49, %v853_v51 }
 0x503   :  { %v857_v38 = vadd.f32 %v3482_v53, %v855_v37 }
 0x504   :  { %v4436_v58 = vpop.eup %4435 }
 0x505   :  { %4441 = vtanh.f32 %v857_v38  ;;  %v856_v60 = vmul.f32 %v4436_v58, %v854_v57  ;;  %v4438_v62 = vpop.eup %4437 }
 0x506   :  { %v4440_v63 = vpop.eup %4439  ;;  %v861_v28 = vsub.f32 1.0, %v4438_v62  ;;  %v865_v55 = vmul.f32 %v4438_v62, %v5116_v44  ;;  %v5234_v44 = vld [vmem:[%s6233_s2 + $0x78] ss:$12 sps:$4 sm:$0xff]  }
 0x507   :  { %v858_v61 = vadd.f32 %v3485_v59, %v856_v60  ;;  %v862_v26 = vsub.f32 1.0, %v4440_v63  ;;  %v866_v33 = vmul.f32 %v4440_v63, %v5118_v45  ;;  %v5240_v45 = vld [vmem:[%s6233_s2 + $0x80] ss:$12 sps:$4 sm:$0xff]  }
 0x509   :  { %4443 = vtanh.f32 %v858_v61 }
 0x512   :  { %v4442_v27 = vpop.eup %4441 }
 0x513   :  { %v863_v29 = vmul.f32 %v4442_v27, %v861_v28 }
 0x515   :  { %v5184_v34 = vadd.f32 %v865_v55, %v863_v29 }
 0x516   :  { %v4444_v32 = vpop.eup %4443 }
 0x517   :  { %v864_v54 = vmul.f32 %v4444_v32, %v862_v26  ;;  %v3492_v26 = vld [vmem:[%s6234_s0 + $0x100] sm:$0xff] }
 0x519   :  { %v5186_v35 = vadd.f32 %v866_v33, %v864_v54 }
 0x51b   :  { %v876_v36 = vpack.c.bf16 %v5186_v35, %v5184_v34 }
 0x51d   :  { %910 = vmatmul.mubr.bf16.vlgmr.msra.gmra.mxu0 %v876_v36  ;;  %4023 = vmatmul.mubr.bf16.vlgmr.msra.gmra.mxu1 %v876_v36  ;;  %v3495_v36 = vld [vmem:[%s6234_s0 + $0x118] sm:$0xff] }
 0x51e   :  { %1014 = vmatpush1.bf16.msra.mxu0 %v5193_v39  ;;  %4027 = vmatpush3.bf16.msra.mxu1 %v5199_v40 }
 0x51f   :  { %1015 = vmatprep.subr.bf16.mxu0 %v5205_v41  ;;  %4028 = vmatprep.subr.bf16.mxu1 %v4670_v1 }
 0x520   :  { %1045 = vmatprep.mubr.bf16.mxu0 %v4671_v2  ;;  %4042 = vmatprep.mubr.msk.bf16.mxu1 %vm4672_vm0, %v4670_v1 }
 0x522   :  { %1016 = vmatpush1.bf16.msra.mxu0 %v5215_v0  ;;  %4029 = vmatpush3.bf16.msra.mxu1 %v5221_v42 }
 0x523   :  { %1017 = vmatprep.subr.bf16.mxu0 %v5227_v43  ;;  %4030 = vmatprep.subr.bf16.mxu1 %v4670_v1 }
 0x526   :  { %1018 = vmatpush1.bf16.msra.mxu0 %v5234_v44  ;;  %4031 = vmatpush3.bf16.msra.mxu1 %v5240_v45 }
 0x527   :  { %1019 = vmatprep.subr.bf16.mxu0 %v5246_v46  ;;  %4032 = vmatprep.subr.bf16.mxu1 %v4670_v1 }
 0x52a   :  { %1020 = vmatpush1.bf16.msra.mxu0 %v5253_v4  ;;  %4033 = vmatpush3.bf16.msra.mxu1 %v5259_v5 }
 0x52b   :  { %1021 = vmatprep.subr.bf16.mxu0 %v5265_v6  ;;  %4034 = vmatprep.subr.bf16.mxu1 %v4670_v1 }
 0x52e   :  { %1022 = vmatpush1.bf16.msra.mxu0 %v5272_v7  ;;  %4035 = vmatpush3.bf16.msra.mxu1 %v5278_v8 }
 0x52f   :  { %1023 = vmatprep.subr.bf16.mxu0 %v5284_v9  ;;  %4036 = vmatprep.subr.bf16.mxu1 %v4670_v1 }
 0x532   :  { %1024 = vmatpush1.bf16.msra.mxu0 %v5291_v10  ;;  %4037 = vmatpush3.bf16.msra.mxu1 %v5297_v11 }
 0x533   :  { %1025 = vmatprep.subr.bf16.mxu0 %v5303_v12  ;;  %4038 = vmatprep.subr.bf16.mxu1 %v4670_v1 }
 0x536   :  { %1026 = vmatpush1.bf16.msra.mxu0 %v5310_v13  ;;  %4039 = vmatpush3.bf16.msra.mxu1 %v5316_v14 }
 0x537   :  { %1027 = vmatprep.subr.bf16.mxu0 %v5322_v15  ;;  %4040 = vmatprep.subr.bf16.mxu1 %v4670_v1 }
 0x53a   :  { %1028 = vmatpush1.bf16.msra.mxu0 %v5329_v16  ;;  %4041 = vmatpush3.bf16.msra.mxu1 %v5335_v17 }
 0x53b   :  { %1149 = vmatprep.subr.bf16.mxu0 %v5158_v3  ;;  %4046 = vmatprep.subr.bf16.mxu1 %v4670_v1 }
 0x5dd   :  { %v911_v19 = vpop.f32.mrf.mxu0  ;;  %v954_v20 = vpop.f32.mrf.mxu1 }
 0x5de   :  { %v961_v21 = vadd.f32 %v3490_v18, %v911_v19  ;;  %v989_v63 = vadd.f32 %v4917_v50, %v954_v20 }
 0x5df   :  { %v913_v22 = vpop.f32.mrf.mxu0  ;;  %v4024_v23 = vpop.f32.mrf.mxu1 }
 0x5e0   :  { %v3496_v25 = vmul.f32 -1.442695, %v961_v21  ;;  %v975_v53 = vadd.f32 %v3491_v47, %v913_v22 }
 0x5e1   :  { %v915_v30 = vpop.f32.mrf.mxu0  ;;  %v957_v31 = vpop.f32.mrf.mxu1 }
 0x5e2   :  { %4445 = vpow2.f32 %v3496_v25  ;;  %v962_v3 = vadd.f32 %v3493_v24, %v915_v30  ;;  %v3498_v37 = vmul.f32 -1.442695, %v975_v53  ;;  %v990_v55 = vadd.f32 %v4917_v50, %v957_v31 }
 0x5e3   :  { %v4025_v48 = vpop.f32.mrf.mxu1  ;;  %v917_v49 = vpop.f32.mrf.mxu0 }
 0x5e4   :  { %v3497_v51 = vmul.f32 -1.442695, %v962_v3  ;;  %v976_v56 = vadd.f32 %v3494_v52, %v917_v49  ;;  %v5417_v49 = vld [vmem:[%s6235_s4] ss:$0 sm:$0xff] }
 0x5e6   :  { %4447 = vpow2.f32 %v3497_v51  ;;  %v3499_v38 = vmul.f32 -1.442695, %v976_v56 }
 0x5e7   :  { %4449 = vpow2.f32 %v3498_v37 }
 0x5e8   :  { %4451 = vpow2.f32 %v3499_v38  ;;  %v3502_v38 = vld [vmem:[%s6234_s0 + $0x130] sm:$0xff] }
 0x5ef   :  { %v4446_v57 = vpop.eup %4445 }
 0x5f0   :  { %v969_v58 = vadd.f32 1.0, %v4446_v57 }
 0x5f2   :  { %4453 = vrcp.f32 %v969_v58 }
 0x5f3   :  { %v4448_v59 = vpop.eup %4447 }
 0x5f4   :  { %v970_v60 = vadd.f32 1.0, %v4448_v59  ;;  %v4450_v61 = vpop.eup %4449 }
 0x5f5   :  { %v4452_v62 = vpop.eup %4451  ;;  %v983_v27 = vadd.f32 1.0, %v4450_v61 }
 0x5f6   :  { %4455 = vrcp.f32 %v970_v60  ;;  %v984_v29 = vadd.f32 1.0, %v4452_v62  ;;  %v3505_v62 = vld [vmem:[%s6234_s0 + $0x148] sm:$0xff] }
 0x5f7   :  { %4457 = vrcp.f32 %v983_v27 }
 0x5f8   :  { %4459 = vrcp.f32 %v984_v29 }
 0x5ff   :  { %v4454_v28 = vpop.eup %4453 }
 0x600   :  { %v991_v32 = vmul.f32 %v4454_v28, %v989_v63 }
 0x602   :  { %v993_v54 = vadd.f32 %v3492_v26, %v991_v32 }
 0x603   :  { %v4456_v33 = vpop.eup %4455 }
 0x604   :  { %4461 = vtanh.f32 %v993_v54  ;;  %v992_v18 = vmul.f32 %v4456_v33, %v990_v55  ;;  %v4458_v20 = vpop.eup %4457 }
 0x605   :  { %v4460_v21 = vpop.eup %4459  ;;  %v997_v23 = vsub.f32 1.0, %v4458_v20  ;;  %v1001_v50 = vmul.f32 %v4458_v20, %v5184_v34  ;;  %v3500_v34 = vld [vmem:[%s6234_s0 + $0x120] sm:$0xff] }
 0x606   :  { %v994_v19 = vadd.f32 %v3495_v36, %v992_v18  ;;  %v998_v24 = vsub.f32 1.0, %v4460_v21  ;;  %v1002_v31 = vmul.f32 %v4460_v21, %v5186_v35 }
 0x608   :  { %4463 = vtanh.f32 %v994_v19 }
 0x611   :  { %v4462_v22 = vpop.eup %4461 }
 0x612   :  { %v999_v25 = vmul.f32 %v4462_v22, %v997_v23  ;;  %v5441_v23 = vld [vmem:[%s6236_s3 + $0xac] ss:$12 sps:$4 sm:$0xff]  }
 0x614   :  { %v5362_v47 = vadd.f32 %v1001_v50, %v999_v25  ;;  %v4244_v25 = vld [vmem:[%s6236_s3 + $0xb0] ss:$12 sps:$4 sm:$0xff]   ;;  %v4248_v50 = vld [vmem:[%s6236_s3 + $0x98] ss:$12 sps:$4 sm:$0xff]  }
 0x615   :  { %v4464_v30 = vpop.eup %4463 }
 0x616   :  { %v1000_v3 = vmul.f32 %v4464_v30, %v998_v24  ;;  %v5446_v24 = vld [vmem:[%s6236_s3 + $0xa8] ss:$12 sps:$4 sm:$0xff]  }
 0x617   :  { %v5456_v30 = vld [vmem:[%s6236_s3 + $0x94] ss:$12 sps:$4 sm:$0xff]  }
 0x618   :  { %v5364_v48 = vadd.f32 %v1002_v31, %v1000_v3  ;;  %v5461_v3 = vld [vmem:[%s6236_s3 + $0x90] ss:$12 sps:$4 sm:$0xff]  }
 0x619   :  { %v5472_v31 = vld [vmem:[%s6236_s3 + $0x7c] ss:$12 sps:$4 sm:$0xff]  }
 0x61a   :  { %v1012_v51 = vpack.c.bf16 %v5364_v48, %v5362_v47 }
 0x61c   :  { %1046 = vmatmul.mubr.bf16.vlgmr.msra.gmra.mxu0 %v1012_v51  ;;  %4043 = vmatmul.mubr.bf16.vlgmr.msra.gmra.mxu1 %v1012_v51  ;;  %v5488_v51 = vld [vmem:[%s6236_s3 + $0x64] ss:$12 sps:$4 sm:$0xff]  }
 0x61d   :  { %1150 = vmatpush1.bf16.msra.mxu0 %v5193_v39  ;;  %4047 = vmatpush3.bf16.msra.mxu1 %v5199_v40 }
 0x61e   :  { %1151 = vmatprep.subr.bf16.mxu0 %v5205_v41  ;;  %4048 = vmatprep.subr.bf16.mxu1 %v4670_v1 }
 0x61f   :  { %1181 = vmatprep.mubr.bf16.mxu0 %v4671_v2  ;;  %4062 = vmatprep.mubr.msk.bf16.mxu1 %vm4672_vm0, %v4670_v1 }
 0x621   :  { %1152 = vmatpush1.bf16.msra.mxu0 %v5215_v0  ;;  %4049 = vmatpush3.bf16.msra.mxu1 %v5221_v42  ;;  %v3503_v42 = vld [vmem:[%s6234_s0 + $0x138] sm:$0xff] }
 0x622   :  { %1153 = vmatprep.subr.bf16.mxu0 %v5227_v43  ;;  %4050 = vmatprep.subr.bf16.mxu1 %v4670_v1 }
 0x625   :  { %1154 = vmatpush1.bf16.msra.mxu0 %v5234_v44  ;;  %4051 = vmatpush3.bf16.msra.mxu1 %v5240_v45 }
 0x626   :  { %1155 = vmatprep.subr.bf16.mxu0 %v5246_v46  ;;  %4052 = vmatprep.subr.bf16.mxu1 %v4670_v1 }
 0x629   :  { %1156 = vmatpush1.bf16.msra.mxu0 %v5253_v4  ;;  %4053 = vmatpush3.bf16.msra.mxu1 %v5259_v5  ;;  %v3501_v4 = vld [vmem:[%s6234_s0 + $0x128] sm:$0xff] }
 0x62a   :  { %1157 = vmatprep.subr.bf16.mxu0 %v5265_v6  ;;  %4054 = vmatprep.subr.bf16.mxu1 %v4670_v1 }
 0x62d   :  { %1158 = vmatpush1.bf16.msra.mxu0 %v5272_v7  ;;  %4055 = vmatpush3.bf16.msra.mxu1 %v5278_v8  ;;  %v3504_v7 = vld [vmem:[%s6234_s0 + $0x140] sm:$0xff] }
 0x62e   :  { %1159 = vmatprep.subr.bf16.mxu0 %v5284_v9  ;;  %4056 = vmatprep.subr.bf16.mxu1 %v4670_v1 }
 0x631   :  { %1160 = vmatpush1.bf16.msra.mxu0 %v5291_v10  ;;  %4057 = vmatpush3.bf16.msra.mxu1 %v5297_v11 }
 0x632   :  { %1161 = vmatprep.subr.bf16.mxu0 %v5303_v12  ;;  %4058 = vmatprep.subr.bf16.mxu1 %v4670_v1 }
 0x635   :  { %1162 = vmatpush1.bf16.msra.mxu0 %v5310_v13  ;;  %4059 = vmatpush3.bf16.msra.mxu1 %v5316_v14 }
 0x636   :  { %1163 = vmatprep.subr.bf16.mxu0 %v5322_v15  ;;  %4060 = vmatprep.subr.bf16.mxu1 %v4670_v1 }
 0x639   :  { %1164 = vmatpush1.bf16.msra.mxu0 %v5329_v16  ;;  %4061 = vmatpush3.bf16.msra.mxu1 %v5335_v17 }
 0x63a   :  { %4066 = vmatprep.subr.bf16.mxu1 %v4670_v1  ;;  %1444 = vmatprep.subr.bf16.mxu0 %v5441_v23 }
 0x6dc   :  { %v1047_v35 = vpop.f32.mrf.mxu0  ;;  %v1090_v39 = vpop.f32.mrf.mxu1 }
 0x6dd   :  { %v1097_v40 = vadd.f32 %v3500_v34, %v1047_v35  ;;  %v1125_v53 = vadd.f32 %v5417_v49, %v1090_v39  ;;  %v5493_v34 = vld [vmem:[%s6236_s3 + $0x60] ss:$12 sps:$4 sm:$0xff]   ;;  %v4256_v35 = vld [vmem:[%s6236_s3 + $0x68] ss:$12 sps:$4 sm:$0xff]  }
 0x6de   :  { %v1049_v41 = vpop.f32.mrf.mxu0  ;;  %v4044_v0 = vpop.f32.mrf.mxu1  ;;  %v5503_v39 = vld [vmem:[%s6236_s3 + $0x4c] ss:$12 sps:$4 sm:$0xff]  }
 0x6df   :  { %v3506_v43 = vmul.f32 -1.442695, %v1097_v40  ;;  %v1111_v9 = vadd.f32 %v3501_v4, %v1049_v41  ;;  %v5509_v40 = vld [vmem:[%s6236_s3 + $0x48] ss:$12 sps:$4 sm:$0xff]   ;;  %v4260_v41 = vld [vmem:[%s6236_s3 + $0x50] ss:$12 sps:$4 sm:$0xff]  }
 0x6e0   :  { %v1051_v44 = vpop.f32.mrf.mxu0  ;;  %v1093_v45 = vpop.f32.mrf.mxu1  ;;  %v5518_v0 = vld [vmem:[%s6236_s3 + $0x34] ss:$12 sps:$4 sm:$0xff]   ;;  %v5548_v4 = vld [vmem:[%s6236_s3 + $0x4] ss:$12 sps:$4 sm:$0xff]  }
 0x6e1   :  { %4465 = vpow2.f32 %v3506_v43  ;;  %v1098_v46 = vadd.f32 %v3503_v42, %v1051_v44  ;;  %v3508_v11 = vmul.f32 -1.442695, %v1111_v9  ;;  %v1126_v60 = vadd.f32 %v5417_v49, %v1093_v45  ;;  %v5524_v42 = vld [vmem:[%s6236_s3 + $0x30] ss:$12 sps:$4 sm:$0xff]   ;;  %v4264_v43 = vld [vmem:[%s6236_s3 + $0x38] ss:$12 sps:$4 sm:$0xff]  }
 0x6e2   :  { %v4045_v5 = vpop.f32.mrf.mxu1  ;;  %v1053_v8 = vpop.f32.mrf.mxu0  ;;  %v5532_v44 = vld [vmem:[%s6236_s3 + $0x1c] ss:$12 sps:$4 sm:$0xff]   ;;  %v5540_v45 = vld [vmem:[%s6236_s3 + $0x18] ss:$12 sps:$4 sm:$0xff]  }
 0x6e3   :  { %v3507_v6 = vmul.f32 -1.442695, %v1098_v46  ;;  %v1112_v10 = vadd.f32 %v3504_v7, %v1053_v8  ;;  %v4268_v46 = vld [vmem:[%s6236_s3 + $0x20] ss:$12 sps:$4 sm:$0xff]   ;;  %v3510_v7 = vld [vmem:[%s6234_s0 + $0x150] sm:$0xff] }
 0x6e4   :  { %v5556_v5 = vld [vmem:[%s6236_s3] ss:$12 sps:$4 sm:$0xff]  }
 0x6e5   :  { %4467 = vpow2.f32 %v3507_v6  ;;  %v3509_v12 = vmul.f32 -1.442695, %v1112_v10  ;;  %v4272_v6 = vld [vmem:[%s6236_s3 + $0x8] ss:$12 sps:$4 sm:$0xff]  }
 0x6e6   :  { %4469 = vpow2.f32 %v3508_v11 }
 0x6e7   :  { %4471 = vpow2.f32 %v3509_v12 }
 0x6ee   :  { %v4466_v13 = vpop.eup %4465 }
 0x6ef   :  { %v1105_v14 = vadd.f32 1.0, %v4466_v13  ;;  %v3513_v13 = vld [vmem:[%s6234_s0 + $0x168] sm:$0xff] }
 0x6f1   :  { %4473 = vrcp.f32 %v1105_v14 }
 0x6f2   :  { %v4468_v15 = vpop.eup %4467 }
 0x6f3   :  { %v1106_v16 = vadd.f32 1.0, %v4468_v15  ;;  %v4470_v17 = vpop.eup %4469 }
 0x6f4   :  { %v4472_v52 = vpop.eup %4471  ;;  %v1119_v56 = vadd.f32 1.0, %v4470_v17 }
 0x6f5   :  { %4475 = vrcp.f32 %v1106_v16  ;;  %v1120_v57 = vadd.f32 1.0, %v4472_v52  ;;  %v3511_v52 = vld [vmem:[%s6234_s0 + $0x158] sm:$0xff] }
 0x6f6   :  { %4477 = vrcp.f32 %v1119_v56 }
 0x6f7   :  { %4479 = vrcp.f32 %v1120_v57 }
 0x6fe   :  { %v4474_v37 = vpop.eup %4473 }
 0x6ff   :  { %v1127_v58 = vmul.f32 %v4474_v37, %v1125_v53  ;;  %v3514_v37 = vld [vmem:[%s6234_s0 + $0x170] sm:$0xff] }
 0x701   :  { %v1129_v59 = vadd.f32 %v3502_v38, %v1127_v58 }
 0x702   :  { %v4476_v61 = vpop.eup %4475 }
 0x703   :  { %4481 = vtanh.f32 %v1129_v59  ;;  %v1128_v63 = vmul.f32 %v4476_v61, %v1126_v60  ;;  %v4478_v28 = vpop.eup %4477 }
 0x704   :  { %v4480_v26 = vpop.eup %4479  ;;  %v1133_v32 = vsub.f32 1.0, %v4478_v28  ;;  %v1137_v18 = vmul.f32 %v4478_v28, %v5362_v47  ;;  %v5477_v47 = vld [vmem:[%s6236_s3 + $0x78] ss:$12 sps:$4 sm:$0xff]  }
 0x705   :  { %v1130_v27 = vadd.f32 %v3505_v62, %v1128_v63  ;;  %v1134_v54 = vsub.f32 1.0, %v4480_v26  ;;  %v1138_v19 = vmul.f32 %v4480_v26, %v5364_v48  ;;  %v4252_v48 = vld [vmem:[%s6236_s3 + $0x80] ss:$12 sps:$4 sm:$0xff]  }
 0x707   :  { %4483 = vtanh.f32 %v1130_v27 }
 0x710   :  { %v4482_v29 = vpop.eup %4481 }
 0x711   :  { %v1135_v55 = vmul.f32 %v4482_v29, %v1133_v32 }
 0x713   :  { %v5429_v20 = vadd.f32 %v1137_v18, %v1135_v55  ;;  %v3512_v55 = vld [vmem:[%s6234_s0 + $0x160] sm:$0xff] }
 0x714   :  { %v4484_v33 = vpop.eup %4483 }
 0x715   :  { %v1136_v36 = vmul.f32 %v4484_v33, %v1134_v54 }
 0x717   :  { %v5431_v21 = vadd.f32 %v1138_v19, %v1136_v36 }
 0x719   :  { %v1148_v22 = vpack.c.bf16 %v5431_v21, %v5429_v20 }
 0x71b   :  { %1182 = vmatmul.mubr.bf16.vlgmr.msra.gmra.mxu0 %v1148_v22  ;;  %4063 = vmatmul.mubr.bf16.vlgmr.msra.gmra.mxu1 %v1148_v22 }
 0x71c   :  { %1476 = vmatprep.mubr.bf16.mxu0 %v4671_v2  ;;  %4082 = vmatprep.mubr.msk.bf16.mxu1 %vm4672_vm0, %v4670_v1 }
 0x71d   :  { %1445 = vmatpush1.bf16.msra.mxu0 %v5446_v24  ;;  %4067 = vmatpush3.bf16.msra.mxu1 %v4244_v25  ;;  %v3515_v25 = vld [vmem:[%s6234_s0 + $0x178] sm:$0xff] }
 0x71e   :  { %4068 = vmatprep.subr.bf16.mxu1 %v4670_v1  ;;  %1446 = vmatprep.subr.bf16.mxu0 %v5456_v30 }
 0x721   :  { %1447 = vmatpush1.bf16.msra.mxu0 %v5461_v3  ;;  %4069 = vmatpush3.bf16.msra.mxu1 %v4248_v50 }
 0x722   :  { %4070 = vmatprep.subr.bf16.mxu1 %v4670_v1  ;;  %1448 = vmatprep.subr.bf16.mxu0 %v5472_v31 }
 0x725   :  { %1449 = vmatpush1.bf16.msra.mxu0 %v5477_v47  ;;  %4071 = vmatpush3.bf16.msra.mxu1 %v4252_v48 }
 0x726   :  { %4072 = vmatprep.subr.bf16.mxu1 %v4670_v1  ;;  %1450 = vmatprep.subr.bf16.mxu0 %v5488_v51 }
 0x729   :  { %1451 = vmatpush1.bf16.msra.mxu0 %v5493_v34  ;;  %4073 = vmatpush3.bf16.msra.mxu1 %v4256_v35 }
 0x72a   :  { %1452 = vmatprep.subr.bf16.mxu0 %v5503_v39  ;;  %4074 = vmatprep.subr.bf16.mxu1 %v4670_v1 }
 0x72d   :  { %1453 = vmatpush1.bf16.msra.mxu0 %v5509_v40  ;;  %4075 = vmatpush3.bf16.msra.mxu1 %v4260_v41 }
 0x72e   :  { %1454 = vmatprep.subr.bf16.mxu0 %v5518_v0  ;;  %4076 = vmatprep.subr.bf16.mxu1 %v4670_v1 }
 0x731   :  { %1455 = vmatpush1.bf16.msra.mxu0 %v5524_v42  ;;  %4077 = vmatpush3.bf16.msra.mxu1 %v4264_v43 }
 0x732   :  { %1456 = vmatprep.subr.bf16.mxu0 %v5532_v44  ;;  %4078 = vmatprep.subr.bf16.mxu1 %v4670_v1 }
 0x735   :  { %1457 = vmatpush1.bf16.msra.mxu0 %v5540_v45  ;;  %4079 = vmatpush3.bf16.msra.mxu1 %v4268_v46 }
 0x736   :  { %1458 = vmatprep.subr.bf16.mxu0 %v5548_v4  ;;  %4080 = vmatprep.subr.bf16.mxu1 %v4670_v1 }
 0x739   :  { %1459 = vmatpush1.bf16.msra.mxu0 %v5556_v5  ;;  %4081 = vmatpush3.bf16.msra.mxu1 %v4272_v6 }
 0x73a   :  { %1749 = vmatprep.subr.bf16.mxu0 %v5441_v23  ;;  %4086 = vmatprep.subr.bf16.mxu1 %v4670_v1 }
 0x7db   :  { %v1183_v8 = vpop.f32.mrf.mxu0  ;;  %v1226_v9 = vpop.f32.mrf.mxu1 }
 0x7dc   :  { %v1233_v10 = vadd.f32 %v3510_v7, %v1183_v8  ;;  %v1261_v29 = vadd.f32 %v5417_v49, %v1226_v9 }
 0x7dd   :  { %v1185_v11 = vpop.f32.mrf.mxu0  ;;  %v4064_v12 = vpop.f32.mrf.mxu1 }
 0x7de   :  { %v3516_v14 = vmul.f32 -1.442695, %v1233_v10  ;;  %v1247_v57 = vadd.f32 %v3511_v52, %v1185_v11  ;;  %v4279_v52 = vld [vmem:[%s6236_s3 + $0x20] ss:$12 sps:$4 sm:$0xff]  }
 0x7df   :  { %v1187_v15 = vpop.f32.mrf.mxu0  ;;  %v1229_v16 = vpop.f32.mrf.mxu1 }
 0x7e0   :  { %4485 = vpow2.f32 %v3516_v14  ;;  %v1234_v17 = vadd.f32 %v3513_v13, %v1187_v15  ;;  %v3518_v59 = vmul.f32 -1.442695, %v1247_v57  ;;  %v1262_v19 = vadd.f32 %v5417_v49, %v1229_v16  ;;  %v4275_v14 = vld [vmem:[%s6236_s3 + $0x80] ss:$12 sps:$4 sm:$0xff]   ;;  %v4276_v15 = vld [vmem:[%s6236_s3 + $0x68] ss:$12 sps:$4 sm:$0xff]  }
 0x7e1   :  { %v4065_v53 = vpop.f32.mrf.mxu1  ;;  %v1189_v38 = vpop.f32.mrf.mxu0  ;;  %v4277_v16 = vld [vmem:[%s6236_s3 + $0x50] ss:$12 sps:$4 sm:$0xff]  }
 0x7e2   :  { %v3517_v56 = vmul.f32 -1.442695, %v1234_v17  ;;  %v1248_v58 = vadd.f32 %v3514_v37, %v1189_v38  ;;  %v4278_v17 = vld [vmem:[%s6236_s3 + $0x38] ss:$12 sps:$4 sm:$0xff]   ;;  %v4280_v53 = vld [vmem:[%s6236_s3 + $0x8] ss:$12 sps:$4 sm:$0xff]  }
 0x7e4   :  { %4487 = vpow2.f32 %v3517_v56  ;;  %v3519_v60 = vmul.f32 -1.442695, %v1248_v58  ;;  %v1277_v56 = vld [vmem:[%s6237_s1] sm:$0xff] }
 0x7e5   :  { %4489 = vpow2.f32 %v3518_v59 }
 0x7e6   :  { %4491 = vpow2.f32 %v3519_v60  ;;  %v1280_v60 = vld [vmem:[%s6237_s1 + $0x18] sm:$0xff] }
 0x7ed   :  { %v4486_v61 = vpop.eup %4485 }
 0x7ee   :  { %v1241_v62 = vadd.f32 1.0, %v4486_v61 }
 0x7f0   :  { %4493 = vrcp.f32 %v1241_v62  ;;  %v1278_v62 = vld [vmem:[%s6237_s1 + $0x8] sm:$0xff] }
 0x7f1   :  { %v4488_v63 = vpop.eup %4487 }
 0x7f2   :  { %v1242_v27 = vadd.f32 1.0, %v4488_v63  ;;  %v4490_v28 = vpop.eup %4489 }
 0x7f3   :  { %v4492_v26 = vpop.eup %4491  ;;  %v1255_v32 = vadd.f32 1.0, %v4490_v28 }
 0x7f4   :  { %4495 = vrcp.f32 %v1242_v27  ;;  %v1256_v33 = vadd.f32 1.0, %v4492_v26 }
 0x7f5   :  { %4497 = vrcp.f32 %v1255_v32 }
 0x7f6   :  { %4499 = vrcp.f32 %v1256_v33 }
 0x7fd   :  { %v4494_v54 = vpop.eup %4493 }
 0x7fe   :  { %v1263_v36 = vmul.f32 %v4494_v54, %v1261_v29  ;;  %v1281_v54 = vld [vmem:[%s6237_s1 + $0x20] sm:$0xff] }
 0x800   :  { %v1265_v18 = vadd.f32 %v3512_v55, %v1263_v36 }
 0x801   :  { %v4496_v22 = vpop.eup %4495 }
 0x802   :  { %4501 = vtanh.f32 %v1265_v18  ;;  %v1264_v50 = vmul.f32 %v4496_v22, %v1262_v19  ;;  %v4498_v35 = vpop.eup %4497 }
 0x803   :  { %v4500_v41 = vpop.eup %4499  ;;  %v1269_v46 = vsub.f32 1.0, %v4498_v35  ;;  %v1273_v49 = vmul.f32 %v4498_v35, %v5429_v20  ;;  %v4273_v20 = vld [vmem:[%s6236_s3 + $0xb0] ss:$12 sps:$4 sm:$0xff]   ;;  %v5661_v35 = vld [vmem:[%s6238_s5] ss:$0 sm:$0xff] }
 0x804   :  { %v1266_v48 = vadd.f32 %v3515_v25, %v1264_v50  ;;  %v1270_v6 = vsub.f32 1.0, %v4500_v41  ;;  %v1274_v10 = vmul.f32 %v4500_v41, %v5431_v21  ;;  %v4274_v21 = vld [vmem:[%s6236_s3 + $0x98] ss:$12 sps:$4 sm:$0xff]  }
 0x806   :  { %4503 = vtanh.f32 %v1266_v48 }
 0x80f   :  { %v4502_v43 = vpop.eup %4501 }
 0x810   :  { %v1271_v7 = vmul.f32 %v4502_v43, %v1269_v46 }
 0x812   :  { %v5589_v11 = vadd.f32 %v1273_v49, %v1271_v7  ;;  %v1279_v7 = vld [vmem:[%s6237_s1 + $0x10] sm:$0xff] }
 0x813   :  { %v4504_v8 = vpop.eup %4503 }
 0x814   :  { %v1272_v9 = vmul.f32 %v4504_v8, %v1270_v6 }
 0x816   :  { %v5591_v12 = vadd.f32 %v1274_v10, %v1272_v9 }
 0x818   :  { %v1283_v13 = vpack.c.bf16 %v5591_v12, %v5589_v11 }
 0x81a   :  { %1477 = vmatmul.mubr.bf16.vlgmr.msra.gmra.mxu0 %v1283_v13  ;;  %4083 = vmatmul.mubr.bf16.vlgmr.msra.gmra.mxu1 %v1283_v13 }
 0x81b   :  { %1750 = vmatpush1.bf16.msra.mxu0 %v5446_v24  ;;  %1781 = vmatprep.mubr.bf16.mxu0 %v4671_v2 }
 0x81c   :  { %1751 = vmatprep.subr.bf16.mxu0 %v5456_v30  ;;  %4102 = vmatprep.mubr.msk.bf16.mxu1 %vm4672_vm0, %v4670_v1 }
 0x81d   :  { %4087 = vmatpush3.bf16.msra.mxu1 %v4273_v20  ;;  %v1282_v20 = vld [vmem:[%s6237_s1 + $0x28] sm:$0xff] }
 0x81e   :  { %4088 = vmatprep.subr.bf16.mxu1 %v4670_v1 }
 0x81f   :  { %1752 = vmatpush1.bf16.msra.mxu0 %v5461_v3 }
 0x820   :  { %1753 = vmatprep.subr.bf16.mxu0 %v5472_v31 }
 0x821   :  { %4089 = vmatpush3.bf16.msra.mxu1 %v4274_v21 }
 0x822   :  { %4090 = vmatprep.subr.bf16.mxu1 %v4670_v1 }
 0x823   :  { %1754 = vmatpush1.bf16.msra.mxu0 %v5477_v47 }
 0x824   :  { %1755 = vmatprep.subr.bf16.mxu0 %v5488_v51 }
 0x825   :  { %4091 = vmatpush3.bf16.msra.mxu1 %v4275_v14 }
 0x826   :  { %4092 = vmatprep.subr.bf16.mxu1 %v4670_v1 }
 0x827   :  { %1756 = vmatpush1.bf16.msra.mxu0 %v5493_v34 }
 0x828   :  { %1757 = vmatprep.subr.bf16.mxu0 %v5503_v39 }
 0x829   :  { %4093 = vmatpush3.bf16.msra.mxu1 %v4276_v15 }
 0x82a   :  { %4094 = vmatprep.subr.bf16.mxu1 %v4670_v1 }
 0x82b   :  { %1758 = vmatpush1.bf16.msra.mxu0 %v5509_v40 }
 0x82c   :  { %1759 = vmatprep.subr.bf16.mxu0 %v5518_v0 }
 0x82d   :  { %4095 = vmatpush3.bf16.msra.mxu1 %v4277_v16 }
 0x82e   :  { %4096 = vmatprep.subr.bf16.mxu1 %v4670_v1 }
 0x82f   :  { %1760 = vmatpush1.bf16.msra.mxu0 %v5524_v42 }
 0x830   :  { %1761 = vmatprep.subr.bf16.mxu0 %v5532_v44 }
 0x831   :  { %4097 = vmatpush3.bf16.msra.mxu1 %v4278_v17 }
 0x832   :  { %4098 = vmatprep.subr.bf16.mxu1 %v4670_v1 }
 0x833   :  { %1762 = vmatpush1.bf16.msra.mxu0 %v5540_v45 }
 0x834   :  { %1763 = vmatprep.subr.bf16.mxu0 %v5548_v4 }
 0x835   :  { %4099 = vmatpush3.bf16.msra.mxu1 %v4279_v52 }
 0x836   :  { %4100 = vmatprep.subr.bf16.mxu1 %v4670_v1 }
 0x837   :  { %1764 = vmatpush1.bf16.msra.mxu0 %v5556_v5 }
 0x838   :  { %2055 = vmatprep.subr.bf16.mxu0 %v5441_v23 }
 0x839   :  { %4101 = vmatpush3.bf16.msra.mxu1 %v4280_v53 }
 0x83a   :  { %4106 = vmatprep.subr.bf16.mxu1 %v4670_v1 }
 0x8da   :  { %v1478_v37 = vpop.f32.mrf.mxu0  ;;  %v1521_v38 = vpop.f32.mrf.mxu1 }
 0x8db   :  { %v1528_v57 = vadd.f32 %v1478_v37, %v1277_v56  ;;  %v1563_v46 = vadd.f32 %v5661_v35, %v1521_v38 }
 0x8dc   :  { %v1480_v58 = vpop.f32.mrf.mxu0  ;;  %v4084_v59 = vpop.f32.mrf.mxu1 }
 0x8dd   :  { %v3544_v61 = vmul.f32 -1.442695, %v1528_v57  ;;  %v1542_v29 = vadd.f32 %v1480_v58, %v1278_v62  ;;  %v4283_v62 = vld [vmem:[%s6236_s3 + $0x80] ss:$12 sps:$4 sm:$0xff]  }
 0x8de   :  { %v1482_v63 = vpop.f32.mrf.mxu0  ;;  %v1524_v27 = vpop.f32.mrf.mxu1 }
 0x8df   :  { %4505 = vpow2.f32 %v3544_v61  ;;  %v1529_v28 = vadd.f32 %v1482_v63, %v1280_v60  ;;  %v3546_v36 = vmul.f32 -1.442695, %v1542_v29  ;;  %v1564_v10 = vadd.f32 %v5661_v35, %v1524_v27  ;;  %v4282_v61 = vld [vmem:[%s6236_s3 + $0x98] ss:$12 sps:$4 sm:$0xff]   ;;  %v4285_v63 = vld [vmem:[%s6236_s3 + $0x50] ss:$12 sps:$4 sm:$0xff]  }
 0x8e0   :  { %v4085_v26 = vpop.f32.mrf.mxu1  ;;  %v1484_v55 = vpop.f32.mrf.mxu0  ;;  %v4286_v27 = vld [vmem:[%s6236_s3 + $0x38] ss:$12 sps:$4 sm:$0xff]   ;;  %v3549_v29 = vld [vmem:[%s6237_s1 + $0x30] sm:$0xff] }
 0x8e1   :  { %v3545_v32 = vmul.f32 -1.442695, %v1529_v28  ;;  %v1543_v33 = vadd.f32 %v1484_v55, %v1281_v54  ;;  %v4287_v28 = vld [vmem:[%s6236_s3 + $0x20] ss:$12 sps:$4 sm:$0xff]   ;;  %v4288_v26 = vld [vmem:[%s6236_s3 + $0x8] ss:$12 sps:$4 sm:$0xff]  }
 0x8e3   :  { %4507 = vpow2.f32 %v3545_v32  ;;  %v3547_v18 = vmul.f32 -1.442695, %v1543_v33 }
 0x8e4   :  { %4509 = vpow2.f32 %v3546_v36 }
 0x8e5   :  { %4511 = vpow2.f32 %v3547_v18  ;;  %v3552_v18 = vld [vmem:[%s6237_s1 + $0x48] sm:$0xff] }
 0x8ec   :  { %v4506_v19 = vpop.eup %4505 }
 0x8ed   :  { %v1536_v22 = vadd.f32 1.0, %v4506_v19 }
 0x8ef   :  { %4513 = vrcp.f32 %v1536_v22  ;;  %v3550_v22 = vld [vmem:[%s6237_s1 + $0x38] sm:$0xff] }
 0x8f0   :  { %v4508_v25 = vpop.eup %4507 }
 0x8f1   :  { %v1537_v50 = vadd.f32 1.0, %v4508_v25  ;;  %v4510_v48 = vpop.eup %4509 }
 0x8f2   :  { %v4512_v41 = vpop.eup %4511  ;;  %v1550_v43 = vadd.f32 1.0, %v4510_v48 }
 0x8f3   :  { %4515 = vrcp.f32 %v1537_v50  ;;  %v1551_v8 = vadd.f32 1.0, %v4512_v41 }
 0x8f4   :  { %4517 = vrcp.f32 %v1550_v43 }
 0x8f5   :  { %4519 = vrcp.f32 %v1551_v8 }
 0x8fc   :  { %v4514_v6 = vpop.eup %4513 }
 0x8fd   :  { %v1565_v9 = vmul.f32 %v4514_v6, %v1563_v46  ;;  %v3553_v6 = vld [vmem:[%s6237_s1 + $0x50] sm:$0xff] }
 0x8ff   :  { %v1567_v49 = vadd.f32 %v1565_v9, %v1279_v7 }
 0x900   :  { %v4516_v13 = vpop.eup %4515 }
 0x901   :  { %4521 = vtanh.f32 %v1567_v49  ;;  %v1566_v21 = vmul.f32 %v4516_v13, %v1564_v10  ;;  %v4518_v15 = vpop.eup %4517 }
 0x902   :  { %v4520_v16 = vpop.eup %4519  ;;  %v1571_v17 = vsub.f32 1.0, %v4518_v15  ;;  %v1575_v56 = vmul.f32 %v4518_v15, %v5589_v11 }
 0x903   :  { %v1568_v14 = vadd.f32 %v1566_v21, %v1282_v20  ;;  %v1572_v37 = vsub.f32 1.0, %v4520_v16  ;;  %v1576_v59 = vmul.f32 %v4520_v16, %v5591_v12  ;;  %v4281_v12 = vld [vmem:[%s6236_s3 + $0xb0] ss:$12 sps:$4 sm:$0xff]  }
 0x905   :  { %4523 = vtanh.f32 %v1568_v14 }
 0x90e   :  { %v4522_v52 = vpop.eup %4521 }
 0x90f   :  { %v1573_v53 = vmul.f32 %v4522_v52, %v1571_v17 }
 0x911   :  { %v5672_v38 = vadd.f32 %v1575_v56, %v1573_v53  ;;  %v3551_v53 = vld [vmem:[%s6237_s1 + $0x40] sm:$0xff] }
 0x912   :  { %v4524_v57 = vpop.eup %4523 }
 0x913   :  { %v1574_v58 = vmul.f32 %v4524_v57, %v1572_v37  ;;  %1579 = vst [vmem:[%s6239_s6] sm:$0xff] %v5672_v38 }
 0x915   :  { %v5679_v60 = vadd.f32 %v1576_v59, %v1574_v58 }
 0x917   :  { %1580 = vst [vmem:[%s6239_s6 + $0x8] sm:$0xff] %v5679_v60  ;;  %v1588_v11 = vpack.c.bf16 %v5679_v60, %v5672_v38 }
 0x919   :  { %1782 = vmatmul.mubr.bf16.vlgmr.msra.gmra.mxu0 %v1588_v11  ;;  %4103 = vmatmul.mubr.bf16.vlgmr.msra.gmra.mxu1 %v1588_v11  ;;  %v3554_v11 = vld [vmem:[%s6237_s1 + $0x58] sm:$0xff] }
 0x91a   :  { %2056 = vmatpush1.bf16.msra.mxu0 %v5446_v24  ;;  %2087 = vmatprep.mubr.bf16.mxu0 %v4671_v2 }
 0x91b   :  { %2057 = vmatprep.subr.bf16.mxu0 %v5456_v30  ;;  %4122 = vmatprep.mubr.msk.bf16.mxu1 %vm4672_vm0, %v4670_v1 }
 0x91c   :  { %4107 = vmatpush3.bf16.msra.mxu1 %v4281_v12 }
 0x91d   :  { %4108 = vmatprep.subr.bf16.mxu1 %v4670_v1 }
 0x91e   :  { %2058 = vmatpush1.bf16.msra.mxu0 %v5461_v3 }
 0x91f   :  { %2059 = vmatprep.subr.bf16.mxu0 %v5472_v31 }
 0x920   :  { %4109 = vmatpush3.bf16.msra.mxu1 %v4282_v61 }
 0x921   :  { %4110 = vmatprep.subr.bf16.mxu1 %v4670_v1 }
 0x922   :  { %2060 = vmatpush1.bf16.msra.mxu0 %v5477_v47 }
 0x923   :  { %2061 = vmatprep.subr.bf16.mxu0 %v5488_v51 }
 0x924   :  { %4111 = vmatpush3.bf16.msra.mxu1 %v4283_v62 }
 0x925   :  { %4112 = vmatprep.subr.bf16.mxu1 %v4670_v1 }
 0x926   :  { %2062 = vmatpush1.bf16.msra.mxu0 %v5493_v34 }
 0x927   :  { %2063 = vmatprep.subr.bf16.mxu0 %v5503_v39 }
 0x92a   :  { %2064 = vmatpush1.bf16.msra.mxu0 %v5509_v40 }
 0x92b   :  { %2065 = vmatprep.subr.bf16.mxu0 %v5518_v0 }
 0x92e   :  { %2066 = vmatpush1.bf16.msra.mxu0 %v5524_v42 }
 0x92f   :  { %2067 = vmatprep.subr.bf16.mxu0 %v5532_v44 }
 0x932   :  { %2068 = vmatpush1.bf16.msra.mxu0 %v5540_v45 }
 0x933   :  { %2069 = vmatprep.subr.bf16.mxu0 %v5548_v4 }
 0x936   :  { %2070 = vmatpush1.bf16.msra.mxu0 %v5556_v5 }
 0x937   :  { %2361 = vmatprep.subr.bf16.mxu0 %v5441_v23  ;;  %v4284_v23 = vld [vmem:[%s6236_s3 + $0x68] ss:$12 sps:$4 sm:$0xff]  }
 0x938   :  { %4113 = vmatpush3.bf16.msra.mxu1 %v4284_v23 }
 0x939   :  { %4114 = vmatprep.subr.bf16.mxu1 %v4670_v1 }
 0x93c   :  { %4115 = vmatpush3.bf16.msra.mxu1 %v4285_v63 }
 0x93d   :  { %4116 = vmatprep.subr.bf16.mxu1 %v4670_v1 }
 0x940   :  { %4117 = vmatpush3.bf16.msra.mxu1 %v4286_v27 }
 0x941   :  { %4118 = vmatprep.subr.bf16.mxu1 %v4670_v1 }
 0x944   :  { %4119 = vmatpush3.bf16.msra.mxu1 %v4287_v28 }
 0x945   :  { %4120 = vmatprep.subr.bf16.mxu1 %v4670_v1 }
 0x948   :  { %4121 = vmatpush3.bf16.msra.mxu1 %v4288_v26 }
 0x949   :  { %4126 = vmatprep.subr.bf16.mxu1 %v4670_v1 }
 0x9d9   :  { %v1783_v32 = vpop.f32.mrf.mxu0  ;;  %v1826_v54 = vpop.f32.mrf.mxu1 }
 0x9da   :  { %v1833_v55 = vadd.f32 %v3549_v29, %v1783_v32  ;;  %v1868_v17 = vadd.f32 %v5661_v35, %v1826_v54 }
 0x9db   :  { %v1785_v33 = vpop.f32.mrf.mxu0  ;;  %v4104_v36 = vpop.f32.mrf.mxu1 }
 0x9dc   :  { %v3579_v19 = vmul.f32 -1.442695, %v1833_v55  ;;  %v1847_v43 = vadd.f32 %v3550_v22, %v1785_v33 }
 0x9dd   :  { %v1787_v25 = vpop.f32.mrf.mxu0  ;;  %v1829_v50 = vpop.f32.mrf.mxu1 }
 0x9de   :  { %4525 = vpow2.f32 %v3579_v19  ;;  %v1834_v48 = vadd.f32 %v3552_v18, %v1787_v25  ;;  %v3581_v9 = vmul.f32 -1.442695, %v1847_v43  ;;  %v1869_v58 = vadd.f32 %v5661_v35, %v1829_v50  ;;  %v3587_v18 = vld [vmem:[%s6237_s1 + $0x68] sm:$0xff]  ;;  %v3590_v43 = vld [vmem:[%s6237_s1 + $0x80] sm:$0xff] }
 0x9df   :  { %v4105_v41 = vpop.f32.mrf.mxu1  ;;  %v1789_v7 = vpop.f32.mrf.mxu0 }
 0x9e0   :  { %v3580_v46 = vmul.f32 -1.442695, %v1834_v48  ;;  %v1848_v8 = vadd.f32 %v3553_v6, %v1789_v7 }
 0x9e2   :  { %4527 = vpow2.f32 %v3580_v46  ;;  %v3582_v49 = vmul.f32 -1.442695, %v1848_v8 }
 0x9e3   :  { %4529 = vpow2.f32 %v3581_v9 }
 0x9e4   :  { %4531 = vpow2.f32 %v3582_v49 }
 0x9eb   :  { %v4526_v10 = vpop.eup %4525 }
 0x9ec   :  { %v1841_v13 = vadd.f32 1.0, %v4526_v10 }
 0x9ee   :  { %4533 = vrcp.f32 %v1841_v13 }
 0x9ef   :  { %v4528_v20 = vpop.eup %4527 }
 0x9f0   :  { %v1842_v21 = vadd.f32 1.0, %v4528_v20  ;;  %v4530_v14 = vpop.eup %4529 }
 0x9f1   :  { %v4532_v15 = vpop.eup %4531  ;;  %v1855_v16 = vadd.f32 1.0, %v4530_v14 }
 0x9f2   :  { %4535 = vrcp.f32 %v1842_v21  ;;  %v1856_v56 = vadd.f32 1.0, %v4532_v15 }
 0x9f3   :  { %4537 = vrcp.f32 %v1855_v16 }
 0x9f4   :  { %4539 = vrcp.f32 %v1856_v56 }
 0x9fb   :  { %v4534_v52 = vpop.eup %4533 }
 0x9fc   :  { %v1870_v37 = vmul.f32 %v4534_v52, %v1868_v17  ;;  %v3588_v17 = vld [vmem:[%s6237_s1 + $0x70] sm:$0xff] }
 0x9fe   :  { %v1872_v57 = vadd.f32 %v3551_v53, %v1870_v37 }
 0x9ff   :  { %v4536_v59 = vpop.eup %4535 }
 0xa00   :  { %4541 = vtanh.f32 %v1872_v57  ;;  %v1871_v12 = vmul.f32 %v4536_v59, %v1869_v58  ;;  %v4538_v62 = vpop.eup %4537  ;;  %v3591_v58 = vld [vmem:[%s6237_s1 + $0x88] sm:$0xff] }
 0xa01   :  { %v4540_v23 = vpop.eup %4539  ;;  %v1876_v63 = vsub.f32 1.0, %v4538_v62  ;;  %v1880_v26 = vmul.f32 %v4538_v62, %v5672_v38 }
 0xa02   :  { %v1873_v61 = vadd.f32 %v3554_v11, %v1871_v12  ;;  %v1877_v29 = vsub.f32 1.0, %v4540_v23  ;;  %v1881_v33 = vmul.f32 %v4540_v23, %v5679_v60 }
 0xa04   :  { %4543 = vtanh.f32 %v1873_v61 }
 0xa0d   :  { %v4542_v27 = vpop.eup %4541 }
 0xa0e   :  { %v1878_v28 = vmul.f32 %v4542_v27, %v1876_v63 }
 0xa10   :  { %v5759_v32 = vadd.f32 %v1880_v26, %v1878_v28 }
 0xa11   :  { %v4544_v54 = vpop.eup %4543 }
 0xa12   :  { %v1879_v55 = vmul.f32 %v4544_v54, %v1877_v29  ;;  %3584 = vst [vmem:[%s6239_s6 + $0x10] sm:$0xff] %v5759_v32 }
 0xa14   :  { %v5766_v36 = vadd.f32 %v1881_v33, %v1879_v55 }
 0xa16   :  { %3585 = vst [vmem:[%s6239_s6 + $0x18] sm:$0xff] %v5766_v36  ;;  %v1894_v38 = vpack.c.bf16 %v5766_v36, %v5759_v32 }
 0xa18   :  { %2088 = vmatmul.mubr.bf16.vlgmr.msra.gmra.mxu0 %v1894_v38  ;;  %4123 = vmatmul.mubr.bf16.vlgmr.msra.gmra.mxu1 %v1894_v38  ;;  %v5871_v38 = vld [vmem:[%s6236_s3 + $0xa8] ss:$12 sps:$4 sm:$0xff]  }
 0xa19   :  { %2362 = vmatpush1.bf16.msra.mxu0 %v5446_v24  ;;  %2393 = vmatprep.mubr.bf16.mxu0 %v4671_v2  ;;  %v4289_v24 = vld [vmem:[%s6236_s3 + $0xb0] ss:$12 sps:$4 sm:$0xff]  }
 0xa1a   :  { %2363 = vmatprep.subr.bf16.mxu0 %v5456_v30  ;;  %4142 = vmatprep.mubr.msk.bf16.mxu1 %vm4672_vm0, %v4670_v1  ;;  %v4290_v30 = vld [vmem:[%s6236_s3 + $0x98] ss:$12 sps:$4 sm:$0xff]  }
 0xa1b   :  { %4127 = vmatpush3.bf16.msra.mxu1 %v4289_v24  ;;  %v4300_v24 = vld [vmem:[%s6236_s3 + $0xb0] ss:$12 sps:$4 sm:$0xff]  }
 0xa1c   :  { %4128 = vmatprep.subr.bf16.mxu1 %v4670_v1 }
 0xa1d   :  { %2364 = vmatpush1.bf16.msra.mxu0 %v5461_v3  ;;  %v4291_v3 = vld [vmem:[%s6236_s3 + $0x80] ss:$12 sps:$4 sm:$0xff]  }
 0xa1e   :  { %2365 = vmatprep.subr.bf16.mxu0 %v5472_v31  ;;  %v4292_v31 = vld [vmem:[%s6236_s3 + $0x68] ss:$12 sps:$4 sm:$0xff]  }
 0xa1f   :  { %4129 = vmatpush3.bf16.msra.mxu1 %v4290_v30  ;;  %v5881_v30 = vld [vmem:[%s6236_s3 + $0x94] ss:$12 sps:$4 sm:$0xff]  }
 0xa20   :  { %4130 = vmatprep.subr.bf16.mxu1 %v4670_v1 }
 0xa21   :  { %2366 = vmatpush1.bf16.msra.mxu0 %v5477_v47  ;;  %v4293_v47 = vld [vmem:[%s6236_s3 + $0x50] ss:$12 sps:$4 sm:$0xff]  }
 0xa22   :  { %2367 = vmatprep.subr.bf16.mxu0 %v5488_v51  ;;  %v4294_v51 = vld [vmem:[%s6236_s3 + $0x38] ss:$12 sps:$4 sm:$0xff]  }
 0xa23   :  { %4131 = vmatpush3.bf16.msra.mxu1 %v4291_v3  ;;  %v5887_v3 = vld [vmem:[%s6236_s3 + $0x90] ss:$12 sps:$4 sm:$0xff]  }
 0xa24   :  { %4132 = vmatprep.subr.bf16.mxu1 %v4670_v1 }
 0xa25   :  { %2368 = vmatpush1.bf16.msra.mxu0 %v5493_v34  ;;  %v4295_v34 = vld [vmem:[%s6236_s3 + $0x20] ss:$12 sps:$4 sm:$0xff]  }
 0xa26   :  { %2369 = vmatprep.subr.bf16.mxu0 %v5503_v39  ;;  %v4296_v39 = vld [vmem:[%s6236_s3 + $0x8] ss:$12 sps:$4 sm:$0xff]  }
 0xa27   :  { %4133 = vmatpush3.bf16.msra.mxu1 %v4292_v31  ;;  %v4304_v31 = vld [vmem:[%s6236_s3 + $0x98] ss:$12 sps:$4 sm:$0xff]  }
 0xa28   :  { %4134 = vmatprep.subr.bf16.mxu1 %v4670_v1 }
 0xa29   :  { %2370 = vmatpush1.bf16.msra.mxu0 %v5509_v40  ;;  %v3586_v40 = vld [vmem:[%s6237_s1 + $0x60] sm:$0xff] }
 0xa2a   :  { %2371 = vmatprep.subr.bf16.mxu0 %v5518_v0 }
 0xa2b   :  { %4135 = vmatpush3.bf16.msra.mxu1 %v4293_v47  ;;  %v5897_v47 = vld [vmem:[%s6236_s3 + $0x7c] ss:$12 sps:$4 sm:$0xff]  }
 0xa2c   :  { %4136 = vmatprep.subr.bf16.mxu1 %v4670_v1 }
 0xa2d   :  { %2372 = vmatpush1.bf16.msra.mxu0 %v5524_v42 }
 0xa2e   :  { %2373 = vmatprep.subr.bf16.mxu0 %v5532_v44 }
 0xa2f   :  { %4137 = vmatpush3.bf16.msra.mxu1 %v4294_v51  ;;  %v5903_v51 = vld [vmem:[%s6236_s3 + $0x78] ss:$12 sps:$4 sm:$0xff]  }
 0xa30   :  { %4138 = vmatprep.subr.bf16.mxu1 %v4670_v1 }
 0xa31   :  { %2374 = vmatpush1.bf16.msra.mxu0 %v5540_v45 }
 0xa32   :  { %2375 = vmatprep.subr.bf16.mxu0 %v5548_v4 }
 0xa33   :  { %4139 = vmatpush3.bf16.msra.mxu1 %v4295_v34  ;;  %v4308_v34 = vld [vmem:[%s6236_s3 + $0x80] ss:$12 sps:$4 sm:$0xff]  }
 0xa34   :  { %4140 = vmatprep.subr.bf16.mxu1 %v4670_v1 }
 0xa35   :  { %2376 = vmatpush1.bf16.msra.mxu0 %v5556_v5  ;;  %v3589_v5 = vld [vmem:[%s6237_s1 + $0x78] sm:$0xff] }
 0xa37   :  { %4141 = vmatpush3.bf16.msra.mxu1 %v4296_v39  ;;  %v5913_v39 = vld [vmem:[%s6236_s3 + $0x64] ss:$12 sps:$4 sm:$0xff]  }
 0xa38   :  { %4146 = vmatprep.subr.bf16.mxu1 %v4670_v1 }
 0xad8   :  { %v2089_v0 = vpop.f32.mrf.mxu0  ;;  %v2132_v42 = vpop.f32.mrf.mxu1 }
 0xad9   :  { %v2139_v44 = vadd.f32 %v3586_v40, %v2089_v0  ;;  %v2174_v15 = vadd.f32 %v5661_v35, %v2132_v42  ;;  %v5919_v40 = vld [vmem:[%s6236_s3 + $0x60] ss:$12 sps:$4 sm:$0xff]   ;;  %v4312_v0 = vld [vmem:[%s6236_s3 + $0x68] ss:$12 sps:$4 sm:$0xff]  }
 0xada   :  { %v2091_v45 = vpop.f32.mrf.mxu0  ;;  %v4124_v4 = vpop.f32.mrf.mxu1  ;;  %v5928_v42 = vld [vmem:[%s6236_s3 + $0x4c] ss:$12 sps:$4 sm:$0xff]  }
 0xadb   :  { %v3616_v60 = vmul.f32 -1.442695, %v2139_v44  ;;  %v2153_v48 = vadd.f32 %v3587_v18, %v2091_v45  ;;  %v5934_v44 = vld [vmem:[%s6236_s3 + $0x48] ss:$12 sps:$4 sm:$0xff]   ;;  %v4316_v45 = vld [vmem:[%s6236_s3 + $0x50] ss:$12 sps:$4 sm:$0xff]  }
 0xadc   :  { %v2093_v19 = vpop.f32.mrf.mxu0  ;;  %v2135_v22 = vpop.f32.mrf.mxu1  ;;  %v5944_v4 = vld [vmem:[%s6236_s3 + $0x34] ss:$12 sps:$4 sm:$0xff]   ;;  %v5960_v18 = vld [vmem:[%s6236_s3 + $0x1c] ss:$12 sps:$4 sm:$0xff]  }
 0xadd   :  { %4545 = vpow2.f32 %v3616_v60  ;;  %v2140_v25 = vadd.f32 %v3589_v5, %v2093_v19  ;;  %v3618_v7 = vmul.f32 -1.442695, %v2153_v48  ;;  %v2175_v37 = vadd.f32 %v5661_v35, %v2135_v22  ;;  %v5950_v5 = vld [vmem:[%s6236_s3 + $0x30] ss:$12 sps:$4 sm:$0xff]   ;;  %v4320_v60 = vld [vmem:[%s6236_s3 + $0x38] ss:$12 sps:$4 sm:$0xff]  }
 0xade   :  { %v4125_v50 = vpop.f32.mrf.mxu1  ;;  %v2095_v46 = vpop.f32.mrf.mxu0  ;;  %v5966_v19 = vld [vmem:[%s6236_s3 + $0x18] ss:$12 sps:$4 sm:$0xff]   ;;  %v4324_v22 = vld [vmem:[%s6236_s3 + $0x20] ss:$12 sps:$4 sm:$0xff]   ;;  %v4328_v48 = vld [vmem:[%s6236_s3 + $0x8] ss:$12 sps:$4 sm:$0xff]  }
 0xadf   :  { %v3617_v41 = vmul.f32 -1.442695, %v2140_v25  ;;  %v2154_v6 = vadd.f32 %v3590_v43, %v2095_v46  ;;  %v5976_v25 = vld [vmem:[%s6236_s3 + $0x4] ss:$12 sps:$4 sm:$0xff]   ;;  %v5982_v50 = vld [vmem:[%s6236_s3] ss:$12 sps:$4 sm:$0xff]  }
 0xae1   :  { %4547 = vpow2.f32 %v3617_v41  ;;  %v3619_v8 = vmul.f32 -1.442695, %v2154_v6  ;;  %v3623_v41 = vld [vmem:[%s6237_s1 + $0x90] sm:$0xff] }
 0xae2   :  { %4549 = vpow2.f32 %v3618_v7 }
 0xae3   :  { %4551 = vpow2.f32 %v3619_v8 }
 0xaea   :  { %v4546_v9 = vpop.eup %4545 }
 0xaeb   :  { %v2147_v49 = vadd.f32 1.0, %v4546_v9  ;;  %v3626_v9 = vld [vmem:[%s6237_s1 + $0xa8] sm:$0xff] }
 0xaed   :  { %4553 = vrcp.f32 %v2147_v49 }
 0xaee   :  { %v4548_v10 = vpop.eup %4547 }
 0xaef   :  { %v2148_v13 = vadd.f32 1.0, %v4548_v10  ;;  %v4550_v20 = vpop.eup %4549  ;;  %v3624_v10 = vld [vmem:[%s6237_s1 + $0x98] sm:$0xff] }
 0xaf0   :  { %v4552_v21 = vpop.eup %4551  ;;  %v2161_v14 = vadd.f32 1.0, %v4550_v20 }
 0xaf1   :  { %4555 = vrcp.f32 %v2148_v13  ;;  %v2162_v52 = vadd.f32 1.0, %v4552_v21 }
 0xaf2   :  { %4557 = vrcp.f32 %v2161_v14 }
 0xaf3   :  { %4559 = vrcp.f32 %v2162_v52 }
 0xafa   :  { %v4554_v16 = vpop.eup %4553 }
 0xafb   :  { %v2176_v53 = vmul.f32 %v4554_v16, %v2174_v15 }
 0xafd   :  { %v2178_v56 = vadd.f32 %v3588_v17, %v2176_v53  ;;  %v3627_v17 = vld [vmem:[%s6237_s1 + $0xb0] sm:$0xff] }
 0xafe   :  { %v4556_v57 = vpop.eup %4555 }
 0xaff   :  { %4561 = vtanh.f32 %v2178_v56  ;;  %v2177_v59 = vmul.f32 %v4556_v57, %v2175_v37  ;;  %v4558_v12 = vpop.eup %4557 }
 0xb00   :  { %v4560_v61 = vpop.eup %4559  ;;  %v2182_v62 = vsub.f32 1.0, %v4558_v12  ;;  %v2186_v27 = vmul.f32 %v4558_v12, %v5759_v32 }
 0xb01   :  { %v2179_v11 = vadd.f32 %v3591_v58, %v2177_v59  ;;  %v2183_v28 = vsub.f32 1.0, %v4560_v61  ;;  %v2187_v55 = vmul.f32 %v4560_v61, %v5766_v36  ;;  %v5866_v36 = vld [vmem:[%s6236_s3 + $0xac] ss:$12 sps:$4 sm:$0xff]  }
 0xb02   :  { %2667 = vmatprep.subr.bf16.mxu0 %v5866_v36 }
 0xb03   :  { %4563 = vtanh.f32 %v2179_v11 }
 0xb0c   :  { %v4562_v23 = vpop.eup %4561 }
 0xb0d   :  { %v2184_v63 = vmul.f32 %v4562_v23, %v2182_v62 }
 0xb0f   :  { %v5845_v26 = vadd.f32 %v2186_v27, %v2184_v63  ;;  %v3625_v27 = vld [vmem:[%s6237_s1 + $0xa0] sm:$0xff] }
 0xb10   :  { %v4564_v29 = vpop.eup %4563 }
 0xb11   :  { %v2185_v54 = vmul.f32 %v4564_v29, %v2183_v28  ;;  %3621 = vst [vmem:[%s6239_s6 + $0x20] sm:$0xff] %v5845_v26 }
 0xb13   :  { %v5852_v33 = vadd.f32 %v2187_v55, %v2185_v54 }
 0xb15   :  { %3622 = vst [vmem:[%s6239_s6 + $0x28] sm:$0xff] %v5852_v33  ;;  %v2200_v32 = vpack.c.bf16 %v5852_v33, %v5845_v26 }
 0xb17   :  { %2394 = vmatmul.mubr.bf16.vlgmr.msra.gmra.mxu0 %v2200_v32  ;;  %4143 = vmatmul.mubr.bf16.vlgmr.msra.gmra.mxu1 %v2200_v32 }
 0xb18   :  { %2699 = vmatprep.mubr.bf16.mxu0 %v4671_v2  ;;  %4162 = vmatprep.mubr.msk.bf16.mxu1 %vm4672_vm0, %v4670_v1 }
 0xb19   :  { %2668 = vmatpush1.bf16.msra.mxu0 %v5871_v38  ;;  %4147 = vmatpush3.bf16.msra.mxu1 %v4300_v24  ;;  %v3628_v24 = vld [vmem:[%s6237_s1 + $0xb8] sm:$0xff] }
 0xb1a   :  { %4148 = vmatprep.subr.bf16.mxu1 %v4670_v1  ;;  %2669 = vmatprep.subr.bf16.mxu0 %v5881_v30 }
 0xb1d   :  { %2670 = vmatpush1.bf16.msra.mxu0 %v5887_v3  ;;  %4149 = vmatpush3.bf16.msra.mxu1 %v4304_v31 }
 0xb1e   :  { %4150 = vmatprep.subr.bf16.mxu1 %v4670_v1  ;;  %2671 = vmatprep.subr.bf16.mxu0 %v5897_v47 }
 0xb21   :  { %2672 = vmatpush1.bf16.msra.mxu0 %v5903_v51  ;;  %4151 = vmatpush3.bf16.msra.mxu1 %v4308_v34 }
 0xb22   :  { %4152 = vmatprep.subr.bf16.mxu1 %v4670_v1  ;;  %2673 = vmatprep.subr.bf16.mxu0 %v5913_v39 }
 0xb25   :  { %2674 = vmatpush1.bf16.msra.mxu0 %v5919_v40  ;;  %4153 = vmatpush3.bf16.msra.mxu1 %v4312_v0 }
 0xb26   :  { %2675 = vmatprep.subr.bf16.mxu0 %v5928_v42  ;;  %4154 = vmatprep.subr.bf16.mxu1 %v4670_v1 }
 0xb29   :  { %2676 = vmatpush1.bf16.msra.mxu0 %v5934_v44  ;;  %4155 = vmatpush3.bf16.msra.mxu1 %v4316_v45 }
 0xb2a   :  { %2677 = vmatprep.subr.bf16.mxu0 %v5944_v4  ;;  %4156 = vmatprep.subr.bf16.mxu1 %v4670_v1 }
 0xb2d   :  { %2678 = vmatpush1.bf16.msra.mxu0 %v5950_v5  ;;  %4157 = vmatpush3.bf16.msra.mxu1 %v4320_v60 }
 0xb2e   :  { %2679 = vmatprep.subr.bf16.mxu0 %v5960_v18  ;;  %4158 = vmatprep.subr.bf16.mxu1 %v4670_v1 }
 0xb31   :  { %2680 = vmatpush1.bf16.msra.mxu0 %v5966_v19  ;;  %4159 = vmatpush3.bf16.msra.mxu1 %v4324_v22 }
 0xb32   :  { %2681 = vmatprep.subr.bf16.mxu0 %v5976_v25  ;;  %4160 = vmatprep.subr.bf16.mxu1 %v4670_v1 }
 0xb35   :  { %2682 = vmatpush1.bf16.msra.mxu0 %v5982_v50  ;;  %4161 = vmatpush3.bf16.msra.mxu1 %v4328_v48 }
 0xb36   :  { %2973 = vmatprep.subr.bf16.mxu0 %v5866_v36  ;;  %4166 = vmatprep.subr.bf16.mxu1 %v4670_v1 }
 0xbd7   :  { %v2395_v43 = vpop.f32.mrf.mxu0  ;;  %v2438_v46 = vpop.f32.mrf.mxu1 }
 0xbd8   :  { %v2445_v6 = vadd.f32 %v3623_v41, %v2395_v43  ;;  %v2480_v23 = vadd.f32 %v5661_v35, %v2438_v46 }
 0xbd9   :  { %v2397_v7 = vpop.f32.mrf.mxu0  ;;  %v4144_v8 = vpop.f32.mrf.mxu1 }
 0xbda   :  { %v3653_v49 = vmul.f32 -1.442695, %v2445_v6  ;;  %v2459_v15 = vadd.f32 %v3624_v10, %v2397_v7  ;;  %v4333_v10 = vld [vmem:[%s6236_s3 + $0x50] ss:$12 sps:$4 sm:$0xff]  }
 0xbdb   :  { %v2399_v13 = vpop.f32.mrf.mxu0  ;;  %v2441_v20 = vpop.f32.mrf.mxu1 }
 0xbdc   :  { %4565 = vpow2.f32 %v3653_v49  ;;  %v2446_v21 = vadd.f32 %v3626_v9, %v2399_v13  ;;  %v3655_v56 = vmul.f32 -1.442695, %v2459_v15  ;;  %v2481_v55 = vadd.f32 %v5661_v35, %v2441_v20  ;;  %v4330_v9 = vld [vmem:[%s6236_s3 + $0x98] ss:$12 sps:$4 sm:$0xff]   ;;  %v4331_v49 = vld [vmem:[%s6236_s3 + $0x80] ss:$12 sps:$4 sm:$0xff]  }
 0xbdd   :  { %v4145_v14 = vpop.f32.mrf.mxu1  ;;  %v2401_v52 = vpop.f32.mrf.mxu0  ;;  %v4334_v13 = vld [vmem:[%s6236_s3 + $0x38] ss:$12 sps:$4 sm:$0xff]   ;;  %v4335_v20 = vld [vmem:[%s6236_s3 + $0x20] ss:$12 sps:$4 sm:$0xff]  }
 0xbde   :  { %v3654_v16 = vmul.f32 -1.442695, %v2446_v21  ;;  %v2460_v53 = vadd.f32 %v3627_v17, %v2401_v52  ;;  %v4336_v21 = vld [vmem:[%s6236_s3 + $0x8] ss:$12 sps:$4 sm:$0xff]   ;;  %v3660_v14 = vld [vmem:[%s6237_s1 + $0xc0] sm:$0xff] }
 0xbe0   :  { %4567 = vpow2.f32 %v3654_v16  ;;  %v3656_v37 = vmul.f32 -1.442695, %v2460_v53 }
 0xbe1   :  { %4569 = vpow2.f32 %v3655_v56  ;;  %v3663_v56 = vld [vmem:[%s6237_s1 + $0xd8] sm:$0xff] }
 0xbe2   :  { %4571 = vpow2.f32 %v3656_v37 }
 0xbe9   :  { %v4566_v57 = vpop.eup %4565 }
 0xbea   :  { %v2453_v58 = vadd.f32 1.0, %v4566_v57  ;;  %v3661_v57 = vld [vmem:[%s6237_s1 + $0xc8] sm:$0xff] }
 0xbec   :  { %4573 = vrcp.f32 %v2453_v58 }
 0xbed   :  { %v4568_v59 = vpop.eup %4567 }
 0xbee   :  { %v2454_v11 = vadd.f32 1.0, %v4568_v59  ;;  %v4570_v12 = vpop.eup %4569 }
 0xbef   :  { %v4572_v61 = vpop.eup %4571  ;;  %v2467_v62 = vadd.f32 1.0, %v4570_v12 }
 0xbf0   :  { %4575 = vrcp.f32 %v2454_v11  ;;  %v2468_v28 = vadd.f32 1.0, %v4572_v61 }
 0xbf1   :  { %4577 = vrcp.f32 %v2467_v62 }
 0xbf2   :  { %4579 = vrcp.f32 %v2468_v28 }
 0xbf9   :  { %v4574_v63 = vpop.eup %4573 }
 0xbfa   :  { %v2482_v29 = vmul.f32 %v4574_v63, %v2480_v23  ;;  %v3664_v23 = vld [vmem:[%s6237_s1 + $0xe0] sm:$0xff] }
 0xbfc   :  { %v2484_v54 = vadd.f32 %v3625_v27, %v2482_v29 }
 0xbfd   :  { %v4576_v32 = vpop.eup %4575 }
 0xbfe   :  { %4581 = vtanh.f32 %v2484_v54  ;;  %v2483_v31 = vmul.f32 %v4576_v32, %v2481_v55  ;;  %v4578_v0 = vpop.eup %4577 }
 0xbff   :  { %v4580_v45 = vpop.eup %4579  ;;  %v2488_v60 = vsub.f32 1.0, %v4578_v0  ;;  %v2492_v41 = vmul.f32 %v4578_v0, %v5845_v26 }
 0xc00   :  { %v2485_v34 = vadd.f32 %v3628_v24, %v2483_v31  ;;  %v2489_v43 = vsub.f32 1.0, %v4580_v45  ;;  %v2493_v7 = vmul.f32 %v4580_v45, %v5852_v33  ;;  %v4329_v33 = vld [vmem:[%s6236_s3 + $0xb0] ss:$12 sps:$4 sm:$0xff]  }
 0xc02   :  { %4583 = vtanh.f32 %v2485_v34  ;;  %v6094_v34 = vld [vmem:[%s6238_s5] ss:$0 sm:$0xff] }
 0xc0b   :  { %v4582_v22 = vpop.eup %4581 }
 0xc0c   :  { %v2490_v48 = vmul.f32 %v4582_v22, %v2488_v60 }
 0xc0e   :  { %v6013_v46 = vadd.f32 %v2492_v41, %v2490_v48  ;;  %v3662_v48 = vld [vmem:[%s6237_s1 + $0xd0] sm:$0xff] }
 0xc0f   :  { %v4584_v35 = vpop.eup %4583 }
 0xc10   :  { %v2491_v6 = vmul.f32 %v4584_v35, %v2489_v43  ;;  %3658 = vst [vmem:[%s6239_s6 + $0x30] sm:$0xff] %v6013_v46 }
 0xc12   :  { %v6020_v8 = vadd.f32 %v2493_v7, %v2491_v6 }
 0xc14   :  { %3659 = vst [vmem:[%s6239_s6 + $0x38] sm:$0xff] %v6020_v8  ;;  %v2506_v26 = vpack.c.bf16 %v6020_v8, %v6013_v46 }
 0xc16   :  { %2700 = vmatmul.mubr.bf16.vlgmr.msra.gmra.mxu0 %v2506_v26  ;;  %4163 = vmatmul.mubr.bf16.vlgmr.msra.gmra.mxu1 %v2506_v26  ;;  %v3665_v26 = vld [vmem:[%s6237_s1 + $0xe8] sm:$0xff] }
 0xc17   :  { %2974 = vmatpush1.bf16.msra.mxu0 %v5871_v38  ;;  %3005 = vmatprep.mubr.bf16.mxu0 %v4671_v2 }
 0xc18   :  { %2975 = vmatprep.subr.bf16.mxu0 %v5881_v30  ;;  %4182 = vmatprep.mubr.msk.bf16.mxu1 %vm4672_vm0, %v4670_v1 }
 0xc19   :  { %4167 = vmatpush3.bf16.msra.mxu1 %v4329_v33 }
 0xc1a   :  { %4168 = vmatprep.subr.bf16.mxu1 %v4670_v1 }
 0xc1b   :  { %2976 = vmatpush1.bf16.msra.mxu0 %v5887_v3 }
 0xc1c   :  { %2977 = vmatprep.subr.bf16.mxu0 %v5897_v47 }
 0xc1d   :  { %4169 = vmatpush3.bf16.msra.mxu1 %v4330_v9 }
 0xc1e   :  { %4170 = vmatprep.subr.bf16.mxu1 %v4670_v1 }
 0xc1f   :  { %2978 = vmatpush1.bf16.msra.mxu0 %v5903_v51 }
 0xc20   :  { %2979 = vmatprep.subr.bf16.mxu0 %v5913_v39 }
 0xc21   :  { %4171 = vmatpush3.bf16.msra.mxu1 %v4331_v49 }
 0xc22   :  { %4172 = vmatprep.subr.bf16.mxu1 %v4670_v1 }
 0xc23   :  { %2980 = vmatpush1.bf16.msra.mxu0 %v5919_v40 }
 0xc24   :  { %2981 = vmatprep.subr.bf16.mxu0 %v5928_v42 }
 0xc27   :  { %2982 = vmatpush1.bf16.msra.mxu0 %v5934_v44 }
 0xc28   :  { %2983 = vmatprep.subr.bf16.mxu0 %v5944_v4 }
 0xc2b   :  { %2984 = vmatpush1.bf16.msra.mxu0 %v5950_v5 }
 0xc2c   :  { %2985 = vmatprep.subr.bf16.mxu0 %v5960_v18 }
 0xc2f   :  { %2986 = vmatpush1.bf16.msra.mxu0 %v5966_v19 }
 0xc30   :  { %2987 = vmatprep.subr.bf16.mxu0 %v5976_v25 }
 0xc33   :  { %2988 = vmatpush1.bf16.msra.mxu0 %v5982_v50 }
 0xc34   :  { %3279 = vmatprep.subr.bf16.mxu0 %v5866_v36  ;;  %v4332_v36 = vld [vmem:[%s6236_s3 + $0x68] ss:$12 sps:$4 sm:$0xff]  }
 0xc35   :  { %4173 = vmatpush3.bf16.msra.mxu1 %v4332_v36 }
 0xc36   :  { %4174 = vmatprep.subr.bf16.mxu1 %v4670_v1 }
 0xc39   :  { %4175 = vmatpush3.bf16.msra.mxu1 %v4333_v10 }
 0xc3a   :  { %4176 = vmatprep.subr.bf16.mxu1 %v4670_v1 }
 0xc3d   :  { %4177 = vmatpush3.bf16.msra.mxu1 %v4334_v13 }
 0xc3e   :  { %4178 = vmatprep.subr.bf16.mxu1 %v4670_v1 }
 0xc41   :  { %4179 = vmatpush3.bf16.msra.mxu1 %v4335_v20 }
 0xc42   :  { %4180 = vmatprep.subr.bf16.mxu1 %v4670_v1 }
 0xc45   :  { %4181 = vmatpush3.bf16.msra.mxu1 %v4336_v21 }
 0xc46   :  { %4186 = vmatprep.subr.bf16.mxu1 %v4670_v1 }
 0xcd6   :  { %v2701_v15 = vpop.f32.mrf.mxu0  ;;  %v2744_v16 = vpop.f32.mrf.mxu1 }
 0xcd7   :  { %v2751_v17 = vadd.f32 %v3660_v14, %v2701_v15  ;;  %v2786_v60 = vadd.f32 %v6094_v34, %v2744_v16 }
 0xcd8   :  { %v2703_v52 = vpop.f32.mrf.mxu0  ;;  %v4164_v53 = vpop.f32.mrf.mxu1 }
 0xcd9   :  { %v3690_v37 = vmul.f32 -1.442695, %v2751_v17  ;;  %v2765_v61 = vadd.f32 %v3661_v57, %v2703_v52 }
 0xcda   :  { %v2705_v58 = vpop.f32.mrf.mxu0  ;;  %v2747_v59 = vpop.f32.mrf.mxu1 }
 0xcdb   :  { %4585 = vpow2.f32 %v3690_v37  ;;  %v2752_v11 = vadd.f32 %v3663_v56, %v2705_v58  ;;  %v3692_v28 = vmul.f32 -1.442695, %v2765_v61  ;;  %v2787_v6 = vadd.f32 %v6094_v34, %v2747_v59 }
 0xcdc   :  { %v4165_v12 = vpop.f32.mrf.mxu1  ;;  %v2707_v63 = vpop.f32.mrf.mxu0 }
 0xcdd   :  { %v3691_v62 = vmul.f32 -1.442695, %v2752_v11  ;;  %v2766_v27 = vadd.f32 %v3664_v23, %v2707_v63  ;;  %v3701_v11 = vld [vmem:[%s6237_s1 + $0x110] sm:$0xff] }
 0xcdf   :  { %4587 = vpow2.f32 %v3691_v62  ;;  %v3693_v29 = vmul.f32 -1.442695, %v2766_v27 }
 0xce0   :  { %4589 = vpow2.f32 %v3692_v28 }
 0xce1   :  { %4591 = vpow2.f32 %v3693_v29 }
 0xce8   :  { %v4586_v54 = vpop.eup %4585 }
 0xce9   :  { %v2759_v55 = vadd.f32 1.0, %v4586_v54 }
 0xceb   :  { %4593 = vrcp.f32 %v2759_v55 }
 0xcec   :  { %v4588_v32 = vpop.eup %4587 }
 0xced   :  { %v2760_v24 = vadd.f32 1.0, %v4588_v32  ;;  %v4590_v31 = vpop.eup %4589 }
 0xcee   :  { %v4592_v0 = vpop.eup %4591  ;;  %v2773_v45 = vadd.f32 1.0, %v4590_v31 }
 0xcef   :  { %4595 = vrcp.f32 %v2760_v24  ;;  %v2774_v41 = vadd.f32 1.0, %v4592_v0  ;;  %v3699_v0 = vld [vmem:[%s6237_s1 + $0x100] sm:$0xff] }
 0xcf0   :  { %4597 = vrcp.f32 %v2773_v45 }
 0xcf1   :  { %4599 = vrcp.f32 %v2774_v41 }
 0xcf8   :  { %v4594_v22 = vpop.eup %4593 }
 0xcf9   :  { %v2788_v43 = vmul.f32 %v4594_v22, %v2786_v60 }
 0xcfb   :  { %v2790_v35 = vadd.f32 %v3662_v48, %v2788_v43  ;;  %v3702_v43 = vld [vmem:[%s6237_s1 + $0x118] sm:$0xff] }
 0xcfc   :  { %v4596_v7 = vpop.eup %4595 }
 0xcfd   :  { %4601 = vtanh.f32 %v2790_v35  ;;  %v2789_v33 = vmul.f32 %v4596_v7, %v2787_v6  ;;  %v4598_v49 = vpop.eup %4597 }
 0xcfe   :  { %v4600_v36 = vpop.eup %4599  ;;  %v2794_v10 = vsub.f32 1.0, %v4598_v49  ;;  %v2798_v21 = vmul.f32 %v4598_v49, %v6013_v46 }
 0xcff   :  { %v2791_v9 = vadd.f32 %v3665_v26, %v2789_v33  ;;  %v2795_v14 = vsub.f32 1.0, %v4600_v36  ;;  %v2799_v52 = vmul.f32 %v4600_v36, %v6020_v8  ;;  %v3698_v8 = vld [vmem:[%s6237_s1 + $0xf8] sm:$0xff] }
 0xd01   :  { %4603 = vtanh.f32 %v2791_v9 }
 0xd0a   :  { %v4602_v13 = vpop.eup %4601 }
 0xd0b   :  { %v2796_v20 = vmul.f32 %v4602_v13, %v2794_v10 }
 0xd0d   :  { %v6105_v15 = vadd.f32 %v2798_v21, %v2796_v20 }
 0xd0e   :  { %v4604_v16 = vpop.eup %4603 }
 0xd0f   :  { %v2797_v17 = vmul.f32 %v4604_v16, %v2795_v14  ;;  %3695 = vst [vmem:[%s6239_s6 + $0x40] sm:$0xff] %v6105_v15 }
 0xd11   :  { %v6112_v53 = vadd.f32 %v2799_v52, %v2797_v17  ;;  %v3734_v17 = vld [vmem:[%s6237_s1 + $0x120] sm:$0xff] }
 0xd13   :  { %3696 = vst [vmem:[%s6239_s6 + $0x48] sm:$0xff] %v6112_v53  ;;  %v2812_v46 = vpack.c.bf16 %v6112_v53, %v6105_v15 }
 0xd15   :  { %3006 = vmatmul.mubr.bf16.vlgmr.msra.gmra.mxu0 %v2812_v46  ;;  %4183 = vmatmul.mubr.bf16.vlgmr.msra.gmra.mxu1 %v2812_v46 }
 0xd16   :  { %3280 = vmatpush1.bf16.msra.mxu0 %v5871_v38  ;;  %3311 = vmatprep.mubr.bf16.mxu0 %v4671_v2  ;;  %v4337_v2 = vld [vmem:[%s6236_s3 + $0xb0] ss:$12 sps:$4 sm:$0xff]   ;;  %v4338_v38 = vld [vmem:[%s6236_s3 + $0x98] ss:$12 sps:$4 sm:$0xff]  }
 0xd17   :  { %3281 = vmatprep.subr.bf16.mxu0 %v5881_v30  ;;  %4202 = vmatprep.mubr.msk.bf16.mxu1 %vm4672_vm0, %v4670_v1  ;;  %v4339_v30 = vld [vmem:[%s6236_s3 + $0x80] ss:$12 sps:$4 sm:$0xff]  }
 0xd18   :  { %4187 = vmatpush3.bf16.msra.mxu1 %v4337_v2 }
 0xd19   :  { %4188 = vmatprep.subr.bf16.mxu1 %v4670_v1 }
 0xd1a   :  { %3282 = vmatpush1.bf16.msra.mxu0 %v5887_v3  ;;  %v4340_v3 = vld [vmem:[%s6236_s3 + $0x68] ss:$12 sps:$4 sm:$0xff]  }
 0xd1b   :  { %3283 = vmatprep.subr.bf16.mxu0 %v5897_v47  ;;  %v4341_v47 = vld [vmem:[%s6236_s3 + $0x50] ss:$12 sps:$4 sm:$0xff]  }
 0xd1c   :  { %4189 = vmatpush3.bf16.msra.mxu1 %v4338_v38 }
 0xd1d   :  { %4190 = vmatprep.subr.bf16.mxu1 %v4670_v1 }
 0xd1e   :  { %3284 = vmatpush1.bf16.msra.mxu0 %v5903_v51  ;;  %v4342_v51 = vld [vmem:[%s6236_s3 + $0x38] ss:$12 sps:$4 sm:$0xff]  }
 0xd1f   :  { %3285 = vmatprep.subr.bf16.mxu0 %v5913_v39  ;;  %v4343_v39 = vld [vmem:[%s6236_s3 + $0x20] ss:$12 sps:$4 sm:$0xff]  }
 0xd20   :  { %4191 = vmatpush3.bf16.msra.mxu1 %v4339_v30  ;;  %v3737_v30 = vld [vmem:[%s6237_s1 + $0x138] sm:$0xff] }
 0xd21   :  { %4192 = vmatprep.subr.bf16.mxu1 %v4670_v1 }
 0xd22   :  { %3286 = vmatpush1.bf16.msra.mxu0 %v5919_v40  ;;  %v4344_v40 = vld [vmem:[%s6236_s3 + $0x8] ss:$12 sps:$4 sm:$0xff]  }
 0xd23   :  { %3287 = vmatprep.subr.bf16.mxu0 %v5928_v42  ;;  %v3697_v42 = vld [vmem:[%s6237_s1 + $0xf0] sm:$0xff] }
 0xd24   :  { %4193 = vmatpush3.bf16.msra.mxu1 %v4340_v3 }
 0xd25   :  { %4194 = vmatprep.subr.bf16.mxu1 %v4670_v1 }
 0xd26   :  { %3288 = vmatpush1.bf16.msra.mxu0 %v5934_v44 }
 0xd27   :  { %3289 = vmatprep.subr.bf16.mxu0 %v5944_v4 }
 0xd28   :  { %4195 = vmatpush3.bf16.msra.mxu1 %v4341_v47  ;;  %v3735_v47 = vld [vmem:[%s6237_s1 + $0x128] sm:$0xff] }
 0xd29   :  { %4196 = vmatprep.subr.bf16.mxu1 %v4670_v1 }
 0xd2a   :  { %3290 = vmatpush1.bf16.msra.mxu0 %v5950_v5 }
 0xd2b   :  { %3291 = vmatprep.subr.bf16.mxu0 %v5960_v18 }
 0xd2c   :  { %4197 = vmatpush3.bf16.msra.mxu1 %v4342_v51 }
 0xd2d   :  { %4198 = vmatprep.subr.bf16.mxu1 %v4670_v1 }
 0xd2e   :  { %3292 = vmatpush1.bf16.msra.mxu0 %v5966_v19 }
 0xd2f   :  { %3293 = vmatprep.subr.bf16.mxu0 %v5976_v25  ;;  %v3700_v25 = vld [vmem:[%s6237_s1 + $0x108] sm:$0xff] }
 0xd30   :  { %4199 = vmatpush3.bf16.msra.mxu1 %v4343_v39 }
 0xd31   :  { %4200 = vmatprep.subr.bf16.mxu1 %v4670_v1 }
 0xd32   :  { %3294 = vmatpush1.bf16.msra.mxu0 %v5982_v50 }
 0xd34   :  { %4201 = vmatpush3.bf16.msra.mxu1 %v4344_v40 }
 0xdd5   :  { %v3007_v44 = vpop.f32.mrf.mxu0  ;;  %v3050_v4 = vpop.f32.mrf.mxu1 }
 0xdd6   :  { %v3057_v5 = vadd.f32 %v3697_v42, %v3007_v44  ;;  %v3092_v24 = vadd.f32 %v6094_v34, %v3050_v4 }
 0xdd7   :  { %v3009_v18 = vpop.f32.mrf.mxu0  ;;  %v4184_v19 = vpop.f32.mrf.mxu1 }
 0xdd8   :  { %v3727_v50 = vmul.f32 -1.442695, %v3057_v5  ;;  %v3071_v58 = vadd.f32 %v3698_v8, %v3009_v18  ;;  %v3738_v5 = vld [vmem:[%s6237_s1 + $0x140] sm:$0xff] }
 0xdd9   :  { %v3011_v1 = vpop.f32.mrf.mxu0  ;;  %v3053_v56 = vpop.f32.mrf.mxu1 }
 0xdda   :  { %4605 = vpow2.f32 %v3727_v50  ;;  %v3058_v37 = vadd.f32 %v3700_v25, %v3011_v1  ;;  %v3729_v62 = vmul.f32 -1.442695, %v3071_v58  ;;  %v3093_v48 = vadd.f32 %v6094_v34, %v3053_v56 }
 0xddb   :  { %v4185_v57 = vpop.f32.mrf.mxu1  ;;  %v3013_v12 = vpop.f32.mrf.mxu0 }
 0xddc   :  { %v3728_v59 = vmul.f32 -1.442695, %v3058_v37  ;;  %v3072_v61 = vadd.f32 %v3701_v11, %v3013_v12 }
 0xdde   :  { %4607 = vpow2.f32 %v3728_v59  ;;  %v3730_v23 = vmul.f32 -1.442695, %v3072_v61  ;;  %v3736_v61 = vld [vmem:[%s6237_s1 + $0x130] sm:$0xff] }
 0xddf   :  { %4609 = vpow2.f32 %v3729_v62 }
 0xde0   :  { %4611 = vpow2.f32 %v3730_v23 }
 0xde7   :  { %v4606_v63 = vpop.eup %4605 }
 0xde8   :  { %v3065_v27 = vadd.f32 1.0, %v4606_v63 }
 0xdea   :  { %4613 = vrcp.f32 %v3065_v27 }
 0xdeb   :  { %v4608_v28 = vpop.eup %4607 }
 0xdec   :  { %v3066_v29 = vadd.f32 1.0, %v4608_v28  ;;  %v4610_v54 = vpop.eup %4609 }
 0xded   :  { %v4612_v55 = vpop.eup %4611  ;;  %v3079_v32 = vadd.f32 1.0, %v4610_v54 }
 0xdee   :  { %4615 = vrcp.f32 %v3066_v29  ;;  %v3080_v45 = vadd.f32 1.0, %v4612_v55  ;;  %v3739_v29 = vld [vmem:[%s6237_s1 + $0x148] sm:$0xff] }
 0xdef   :  { %4617 = vrcp.f32 %v3079_v32 }
 0xdf0   :  { %4619 = vrcp.f32 %v3080_v45 }
 0xdf7   :  { %v4614_v31 = vpop.eup %4613 }
 0xdf8   :  { %v3094_v60 = vmul.f32 %v4614_v31, %v3092_v24 }
 0xdfa   :  { %v3096_v22 = vadd.f32 %v3699_v0, %v3094_v60 }
 0xdfb   :  { %v4616_v41 = vpop.eup %4615 }
 0xdfc   :  { %4621 = vtanh.f32 %v3096_v22  ;;  %v3095_v35 = vmul.f32 %v4616_v41, %v3093_v48  ;;  %v4618_v7 = vpop.eup %4617 }
 0xdfd   :  { %v4620_v26 = vpop.eup %4619  ;;  %v3100_v33 = vsub.f32 1.0, %v4618_v7  ;;  %v3104_v36 = vmul.f32 %v4618_v7, %v6105_v15 }
 0xdfe   :  { %v3097_v6 = vadd.f32 %v3702_v43, %v3095_v35  ;;  %v3101_v10 = vsub.f32 1.0, %v4620_v26  ;;  %v3105_v14 = vmul.f32 %v4620_v26, %v6112_v53 }
 0xe00   :  { %4623 = vtanh.f32 %v3097_v6 }
 0xe09   :  { %v4622_v9 = vpop.eup %4621 }
 0xe0a   :  { %v3102_v49 = vmul.f32 %v4622_v9, %v3100_v33 }
 0xe0c   :  { %v6190_v13 = vadd.f32 %v3104_v36, %v3102_v49 }
 0xe0d   :  { %v4624_v20 = vpop.eup %4623 }
 0xe0e   :  { %v3103_v21 = vmul.f32 %v4624_v20, %v3101_v10  ;;  %3732 = vst [vmem:[%s6239_s6 + $0x50] sm:$0xff] %v6190_v13 }
 0xe10   :  { %v6197_v16 = vadd.f32 %v3105_v14, %v3103_v21 }
 0xe12   :  { %3733 = vst [vmem:[%s6239_s6 + $0x58] sm:$0xff] %v6197_v16  ;;  %v3118_v15 = vpack.c.bf16 %v6197_v16, %v6190_v13 }
 0xe14   :  { %3312 = vmatmul.mubr.bf16.vlgmr.msra.gmra.mxu0 %v3118_v15  ;;  %4203 = vmatmul.mubr.bf16.vlgmr.msra.gmra.mxu1 %v3118_v15 }
 0xed4   :  { %v3313_v52 = vpop.f32.mrf.mxu0  ;;  %v3356_v53 = vpop.f32.mrf.mxu1 }
 0xed5   :  { %v3363_v46 = vadd.f32 %v3734_v17, %v3313_v52  ;;  %v3398_v11 = vadd.f32 %v6094_v34, %v3356_v53 }
 0xed6   :  { %v3315_v2 = vpop.f32.mrf.mxu0  ;;  %v4204_v38 = vpop.f32.mrf.mxu1 }
 0xed7   :  { %v3764_v3 = vmul.f32 -1.442695, %v3363_v46  ;;  %v3377_v44 = vadd.f32 %v3735_v47, %v3315_v2 }
 0xed8   :  { %v3317_v51 = vpop.f32.mrf.mxu0  ;;  %v3359_v39 = vpop.f32.mrf.mxu1 }
 0xed9   :  { %4625 = vpow2.f32 %v3764_v3  ;;  %v3364_v40 = vadd.f32 %v3737_v30, %v3317_v51  ;;  %v3766_v25 = vmul.f32 -1.442695, %v3377_v44  ;;  %v3399_v27 = vadd.f32 %v6094_v34, %v3359_v39 }
 0xeda   :  { %v4205_v42 = vpop.f32.mrf.mxu1  ;;  %v3319_v18 = vpop.f32.mrf.mxu0 }
 0xedb   :  { %v3765_v4 = vmul.f32 -1.442695, %v3364_v40  ;;  %v3378_v19 = vadd.f32 %v3738_v5, %v3319_v18 }
 0xedd   :  { %4627 = vpow2.f32 %v3765_v4  ;;  %v3767_v50 = vmul.f32 -1.442695, %v3378_v19 }
 0xede   :  { %4629 = vpow2.f32 %v3766_v25 }
 0xedf   :  { %4631 = vpow2.f32 %v3767_v50 }
 0xee6   :  { %v4626_v8 = vpop.eup %4625 }
 0xee7   :  { %v3371_v1 = vadd.f32 1.0, %v4626_v8 }
 0xee9   :  { %4633 = vrcp.f32 %v3371_v1 }
 0xeea   :  { %v4628_v56 = vpop.eup %4627 }
 0xeeb   :  { %v3372_v37 = vadd.f32 1.0, %v4628_v56  ;;  %v4630_v57 = vpop.eup %4629 }
 0xeec   :  { %v4632_v58 = vpop.eup %4631  ;;  %v3385_v59 = vadd.f32 1.0, %v4630_v57 }
 0xeed   :  { %4635 = vrcp.f32 %v3372_v37  ;;  %v3386_v62 = vadd.f32 1.0, %v4632_v58 }
 0xeee   :  { %4637 = vrcp.f32 %v3385_v59 }
 0xeef   :  { %4639 = vrcp.f32 %v3386_v62 }
 0xef6   :  { %v4634_v12 = vpop.eup %4633 }
 0xef7   :  { %v3400_v23 = vmul.f32 %v4634_v12, %v3398_v11 }
 0xef9   :  { %v3402_v63 = vadd.f32 %v3736_v61, %v3400_v23 }
 0xefa   :  { %v4636_v28 = vpop.eup %4635 }
 0xefb   :  { %4641 = vtanh.f32 %v3402_v63  ;;  %v3401_v54 = vmul.f32 %v4636_v28, %v3399_v27  ;;  %v4638_v32 = vpop.eup %4637 }
 0xefc   :  { %v4640_v24 = vpop.eup %4639  ;;  %v3406_v31 = vsub.f32 1.0, %v4638_v32  ;;  %v3410_v60 = vmul.f32 %v4638_v32, %v6190_v13 }
 0xefd   :  { %v3403_v55 = vadd.f32 %v3739_v29, %v3401_v54  ;;  %v3407_v48 = vsub.f32 1.0, %v4640_v24  ;;  %v3411_v43 = vmul.f32 %v4640_v24, %v6197_v16 }
 0xeff   :  { %4643 = vtanh.f32 %v3403_v55 }
 0xf08   :  { %v4642_v0 = vpop.eup %4641 }
 0xf09   :  { %v3408_v45 = vmul.f32 %v4642_v0, %v3406_v31 }
 0xf0b   :  { %v3412_v22 = vadd.f32 %v3410_v60, %v3408_v45 }
 0xf0c   :  { %v4644_v34 = vpop.eup %4643 }
 0xf0d   :  { %3769 = vst [vmem:[%s6239_s6 + $0x60] sm:$0xff] %v3412_v22  ;;  %v3409_v41 = vmul.f32 %v4644_v34, %v3407_v48 }
 0xf0f   :  { %v3413_v35 = vadd.f32 %v3411_v43, %v3409_v41 }
 0xf11   :  { %3770 = vst [vmem:[%s6239_s6 + $0x68] sm:$0xff] %v3413_v35 }

</bundles_post_ra>
